<compile_context>
chip_gen: v5e
topology: v5e:2x2
jax: 0.10.0
libtpu: 0.0.40
codegen_flags: <defaults>
</compile_context>

<pallas_src>
import functools

import jax
import jax.numpy as jnp
from jax.experimental import pallas as pl
from jax.experimental.pallas import tpu as pltpu

# Logical layer sizes and 128-lane-padded sizes (zero padding preserves exact
# numerics inside the logical sub-block).
DIMS = (1000, 600, 200, 86, 16, 7)


def _pad128(n: int) -> int:
    return ((n + 127) // 128) * 128


PAD_DIMS = tuple(_pad128(d) for d in DIMS)  # (1024, 640, 256, 128, 128, 128)


def mlp_kernel(x_ref,
               w1_ref, b1_ref,
               w2_ref, b2_ref,
               w3_ref, b3_ref,
               w4_ref, b4_ref,
               w5_ref, b5_ref,
               o_ref):
    # One batch tile per grid step.  x arrives already bf16 (cast fused into the
    # wrapper's padding op).  Weights are bf16 and VMEM-resident across steps.
    # MXU accumulates in f32; bias add + ReLU stay f32 on the VPU; activations
    # are re-cast to bf16 only right before the next matmul.
    h = x_ref[...]

    h = jnp.dot(h, w1_ref[...], preferred_element_type=jnp.float32) + b1_ref[...]
    h = jnp.maximum(h, 0.0).astype(jnp.bfloat16)

    h = jnp.dot(h, w2_ref[...], preferred_element_type=jnp.float32) + b2_ref[...]
    h = jnp.maximum(h, 0.0).astype(jnp.bfloat16)

    h = jnp.dot(h, w3_ref[...], preferred_element_type=jnp.float32) + b3_ref[...]
    h = jnp.maximum(h, 0.0).astype(jnp.bfloat16)

    h = jnp.dot(h, w4_ref[...], preferred_element_type=jnp.float32) + b4_ref[...]
    h = jnp.maximum(h, 0.0).astype(jnp.bfloat16)

    h = jnp.dot(h, w5_ref[...], preferred_element_type=jnp.float32) + b5_ref[...]

    o_ref[...] = h.astype(o_ref.dtype)


def prepare_padded_params(params):
    """Pad & cast parameters once (call outside the hot path, keep the result).

    params: list of (W [in, out] f32, b [out] f32).
    Returns a flat tuple (W1_p, b1_p, ..., W5_p, b5_p) with bf16 weights padded
    to (PAD_in, PAD_out) and f32 biases as (1, PAD_out).
    """
    flat = []
    for li, (W, b) in enumerate(params):
        in_p, out_p = PAD_DIMS[li], PAD_DIMS[li + 1]
        W_p = jnp.zeros((in_p, out_p), jnp.bfloat16)
        W_p = W_p.at[:W.shape[0], :W.shape[1]].set(W.astype(jnp.bfloat16))
        b_p = jnp.zeros((1, out_p), jnp.float32).at[0, :b.shape[0]].set(b)
        flat.extend([W_p, b_p])
    return tuple(flat)


@functools.partial(jax.jit, static_argnames=("block_m",))
def mlp_forward(x, padded_params, block_m=512):
    """x: [B, 1000] float32.  padded_params: output of prepare_padded_params."""
    B = x.shape[0]
    # bf16 activations -> 16-row sublane packing alignment.
    B16 = max(16, ((B + 15) // 16) * 16)
    tm = block_m if B16 >= block_m else B16          # batch tile
    # Ensure >= 2 grid steps when the batch allows it, so the "parallel" batch
    # axis can span both TensorCores on v7x.
    if (B16 + tm - 1) // tm < 2 and B16 >= 32:
        tm = (((B16 + 1) // 2 + 15) // 16) * 16
    B_pad = ((B16 + tm - 1) // tm) * tm              # whole number of tiles

    # Fused pad + cast: single pass over x, written as bf16 (half the HBM
    # traffic of the old f32 staging buffer).  Explicit zero-padding of the
    # feature columns 1000..1023 keeps the padded matmul exact (no reliance on
    # out-of-bounds reads).
    x_p = jnp.zeros((B_pad, PAD_DIMS[0]), jnp.bfloat16)
    x_p = x_p.at[:B, :DIMS[0]].set(x.astype(jnp.bfloat16))

    grid = (B_pad // tm,)
    x_spec = pl.BlockSpec((tm, PAD_DIMS[0]), lambda i: (i, 0))
    out_spec = pl.BlockSpec((tm, PAD_DIMS[-1]), lambda i: (i, 0))

    param_specs = []
    for li in range(len(DIMS) - 1):
        in_p, out_p = PAD_DIMS[li], PAD_DIMS[li + 1]
        # Constant index_map -> DMA'd once, stays VMEM-resident across batch tiles.
        param_specs.append(pl.BlockSpec((in_p, out_p), lambda i: (0, 0)))
        param_specs.append(pl.BlockSpec((1, out_p), lambda i: (0, 0)))

    out_padded = pl.pallas_call(
        mlp_kernel,
        out_shape=jax.ShapeDtypeStruct((B_pad, PAD_DIMS[-1]), jnp.float32),
        grid=grid,
        in_specs=[x_spec] + param_specs,
        out_specs=out_spec,
        compiler_params=pltpu.CompilerParams(
            # Batch tiles are independent -> shard across TensorCores (v7x).
            dimension_semantics=(pltpu.PARALLEL,),
            # ~3.5 MiB double-buffered weights + ~2 MiB bf16 x buffers +
            # ~0.5 MiB f32 out buffers at tm=512: well under 16 MiB on every gen.
            vmem_limit_bytes=16 << 20,
        ),
    )(x_p, *padded_params)

    return out_padded[:B, :DIMS[-1]]


def init_params(key):
    """Deterministic init matching the PyTorch Linear shapes.

    PyTorch Linear(in, out) stores weight [out, in]; we store the transpose
    [in, out] so the kernel computes x @ W + b (same math as x @ weight.T + b).
    Uses uniform(-1/sqrt(in), 1/sqrt(in)) like torch's default init.
    """
    params = []
    for li in range(len(DIMS) - 1):
        fan_in, fan_out = DIMS[li], DIMS[li + 1]
        key, kw, kb = jax.random.split(key, 3)
        bound = 1.0 / (fan_in ** 0.5)
        W = jax.random.uniform(kw, (fan_in, fan_out), jnp.float32, -bound, bound)
        b = jax.random.uniform(kb, (fan_out,), jnp.float32, -bound, bound)
        params.append((W, b))
    return params


def mlp_reference(x, params):
    h = x
    for i, (W, b) in enumerate(params):
        h = h @ W + b
        if i < len(params) - 1:
            h = jnp.maximum(h, 0.0)
    return h


if __name__ == "__main__":
    key = jax.random.PRNGKey(0)
    key, kx = jax.random.split(key)

    B = 8
    x = jax.random.normal(kx, (B, DIMS[0]), jnp.float32)
    params = init_params(key)

    # One-time parameter padding/cast (hoisted out of the per-call hot path).
    padded_params = prepare_padded_params(params)
    padded_params = jax.tree_util.tree_map(jax.block_until_ready, padded_params)

    out = mlp_forward(x, padded_params)
    jax.block_until_ready(out)

    ref = mlp_reference(x, params)
    assert out.shape == (B, 7), out.shape
    # bf16 weights/activations with f32 accumulation -> loosened tolerance.
    assert jnp.allclose(out, ref, atol=3e-2, rtol=3e-2), float(jnp.max(jnp.abs(out - ref)))

    print("KERNEL_OK")
</pallas_src>

<mosaic_0001>
module attributes {stable_mosaic.version = 11 : i64} {
  func.func @mlp_kernel(%arg0: i32, %arg1: memref<16x1024xbf16, #tpu.memory_space<vmem>>, %arg2: memref<1024x640xbf16, #tpu.memory_space<vmem>>, %arg3: memref<1x640xf32, #tpu.memory_space<vmem>>, %arg4: memref<640x256xbf16, #tpu.memory_space<vmem>>, %arg5: memref<1x256xf32, #tpu.memory_space<vmem>>, %arg6: memref<256x128xbf16, #tpu.memory_space<vmem>>, %arg7: memref<1x128xf32, #tpu.memory_space<vmem>>, %arg8: memref<128x128xbf16, #tpu.memory_space<vmem>>, %arg9: memref<1x128xf32, #tpu.memory_space<vmem>>, %arg10: memref<128x128xbf16, #tpu.memory_space<vmem>>, %arg11: memref<1x128xf32, #tpu.memory_space<vmem>>, %arg12: memref<16x128xf32, #tpu.memory_space<vmem>>) attributes {dimension_semantics = [#tpu.dimension_semantics<parallel>], iteration_bounds = array<i64: 1>, scalar_prefetch = 0 : i64, scratch_operands = 0 : i64, tpu.core_type = #tpu.core_type<tc>, window_params = [{transform_indices = @transform_0, window_bounds = array<i64: 16, 1024>}, {pipeline_mode = #tpu.pipeline_mode<synchronous>, transform_indices = @transform_1, window_bounds = array<i64: 1024, 640>}, {pipeline_mode = #tpu.pipeline_mode<synchronous>, transform_indices = @transform_2, window_bounds = array<i64: 1, 640>}, {pipeline_mode = #tpu.pipeline_mode<synchronous>, transform_indices = @transform_3, window_bounds = array<i64: 640, 256>}, {pipeline_mode = #tpu.pipeline_mode<synchronous>, transform_indices = @transform_4, window_bounds = array<i64: 1, 256>}, {pipeline_mode = #tpu.pipeline_mode<synchronous>, transform_indices = @transform_5, window_bounds = array<i64: 256, 128>}, {pipeline_mode = #tpu.pipeline_mode<synchronous>, transform_indices = @transform_6, window_bounds = array<i64: 1, 128>}, {pipeline_mode = #tpu.pipeline_mode<synchronous>, transform_indices = @transform_7, window_bounds = array<i64: 128, 128>}, {pipeline_mode = #tpu.pipeline_mode<synchronous>, transform_indices = @transform_8, window_bounds = array<i64: 1, 128>}, {pipeline_mode = #tpu.pipeline_mode<synchronous>, transform_indices = @transform_9, window_bounds = array<i64: 128, 128>}, {pipeline_mode = #tpu.pipeline_mode<synchronous>, transform_indices = @transform_10, window_bounds = array<i64: 1, 128>}, {transform_indices = @transform_11, window_bounds = array<i64: 16, 128>}]} {
    %c0 = arith.constant 0 : index
    %c0_0 = arith.constant 0 : index
    %0 = vector.load %arg1[%c0, %c0_0] : memref<16x1024xbf16, #tpu.memory_space<vmem>>, vector<16x1024xbf16>
    %c0_1 = arith.constant 0 : index
    %c0_2 = arith.constant 0 : index
    %1 = vector.load %arg2[%c0_1, %c0_2] : memref<1024x640xbf16, #tpu.memory_space<vmem>>, vector<1024x640xbf16>
    %cst = arith.constant dense<0.000000e+00> : vector<16x640xf32>
    %2 = tpu.matmul %0, %1, %cst {dimension_numbers = #tpu.dot_dimension_numbers<[1], [0], [0], [1], [0, 0, 1, 1], [], []>} : vector<16x1024xbf16>, vector<1024x640xbf16>, vector<16x640xf32> -> vector<16x640xf32>
    %c0_3 = arith.constant 0 : index
    %c0_4 = arith.constant 0 : index
    %3 = vector.load %arg3[%c0_3, %c0_4] : memref<1x640xf32, #tpu.memory_space<vmem>>, vector<1x640xf32>
    %4 = vector.broadcast %3 : vector<1x640xf32> to vector<16x640xf32>
    %5 = arith.addf %2, %4 : vector<16x640xf32>
    %cst_5 = arith.constant 0.000000e+00 : f32
    %6 = vector.broadcast %cst_5 : f32 to vector<16x640xf32>
    %7 = arith.maximumf %5, %6 : vector<16x640xf32>
    %8 = arith.truncf %7 : vector<16x640xf32> to vector<16x640xbf16>
    %c0_6 = arith.constant 0 : index
    %c0_7 = arith.constant 0 : index
    %9 = vector.load %arg4[%c0_6, %c0_7] : memref<640x256xbf16, #tpu.memory_space<vmem>>, vector<640x256xbf16>
    %cst_8 = arith.constant dense<0.000000e+00> : vector<16x256xf32>
    %10 = tpu.matmul %8, %9, %cst_8 {dimension_numbers = #tpu.dot_dimension_numbers<[1], [0], [0], [1], [0, 0, 1, 1], [], []>} : vector<16x640xbf16>, vector<640x256xbf16>, vector<16x256xf32> -> vector<16x256xf32>
    %c0_9 = arith.constant 0 : index
    %c0_10 = arith.constant 0 : index
    %11 = vector.load %arg5[%c0_9, %c0_10] : memref<1x256xf32, #tpu.memory_space<vmem>>, vector<1x256xf32>
    %12 = vector.broadcast %11 : vector<1x256xf32> to vector<16x256xf32>
    %13 = arith.addf %10, %12 : vector<16x256xf32>
    %cst_11 = arith.constant 0.000000e+00 : f32
    %14 = vector.broadcast %cst_11 : f32 to vector<16x256xf32>
    %15 = arith.maximumf %13, %14 : vector<16x256xf32>
    %16 = arith.truncf %15 : vector<16x256xf32> to vector<16x256xbf16>
    %c0_12 = arith.constant 0 : index
    %c0_13 = arith.constant 0 : index
    %17 = vector.load %arg6[%c0_12, %c0_13] : memref<256x128xbf16, #tpu.memory_space<vmem>>, vector<256x128xbf16>
    %cst_14 = arith.constant dense<0.000000e+00> : vector<16x128xf32>
    %18 = tpu.matmul %16, %17, %cst_14 {dimension_numbers = #tpu.dot_dimension_numbers<[1], [0], [0], [1], [0, 0, 1, 1], [], []>} : vector<16x256xbf16>, vector<256x128xbf16>, vector<16x128xf32> -> vector<16x128xf32>
    %c0_15 = arith.constant 0 : index
    %c0_16 = arith.constant 0 : index
    %19 = vector.load %arg7[%c0_15, %c0_16] : memref<1x128xf32, #tpu.memory_space<vmem>>, vector<1x128xf32>
    %20 = vector.broadcast %19 : vector<1x128xf32> to vector<16x128xf32>
    %21 = arith.addf %18, %20 : vector<16x128xf32>
    %cst_17 = arith.constant 0.000000e+00 : f32
    %22 = vector.broadcast %cst_17 : f32 to vector<16x128xf32>
    %23 = arith.maximumf %21, %22 : vector<16x128xf32>
    %24 = arith.truncf %23 : vector<16x128xf32> to vector<16x128xbf16>
    %c0_18 = arith.constant 0 : index
    %c0_19 = arith.constant 0 : index
    %25 = vector.load %arg8[%c0_18, %c0_19] : memref<128x128xbf16, #tpu.memory_space<vmem>>, vector<128x128xbf16>
    %cst_20 = arith.constant dense<0.000000e+00> : vector<16x128xf32>
    %26 = tpu.matmul %24, %25, %cst_20 {dimension_numbers = #tpu.dot_dimension_numbers<[1], [0], [0], [1], [0, 0, 1, 1], [], []>} : vector<16x128xbf16>, vector<128x128xbf16>, vector<16x128xf32> -> vector<16x128xf32>
    %c0_21 = arith.constant 0 : index
    %c0_22 = arith.constant 0 : index
    %27 = vector.load %arg9[%c0_21, %c0_22] : memref<1x128xf32, #tpu.memory_space<vmem>>, vector<1x128xf32>
    %28 = vector.broadcast %27 : vector<1x128xf32> to vector<16x128xf32>
    %29 = arith.addf %26, %28 : vector<16x128xf32>
    %cst_23 = arith.constant 0.000000e+00 : f32
    %30 = vector.broadcast %cst_23 : f32 to vector<16x128xf32>
    %31 = arith.maximumf %29, %30 : vector<16x128xf32>
    %32 = arith.truncf %31 : vector<16x128xf32> to vector<16x128xbf16>
    %c0_24 = arith.constant 0 : index
    %c0_25 = arith.constant 0 : index
    %33 = vector.load %arg10[%c0_24, %c0_25] : memref<128x128xbf16, #tpu.memory_space<vmem>>, vector<128x128xbf16>
    %cst_26 = arith.constant dense<0.000000e+00> : vector<16x128xf32>
    %34 = tpu.matmul %32, %33, %cst_26 {dimension_numbers = #tpu.dot_dimension_numbers<[1], [0], [0], [1], [0, 0, 1, 1], [], []>} : vector<16x128xbf16>, vector<128x128xbf16>, vector<16x128xf32> -> vector<16x128xf32>
    %c0_27 = arith.constant 0 : index
    %c0_28 = arith.constant 0 : index
    %35 = vector.load %arg11[%c0_27, %c0_28] : memref<1x128xf32, #tpu.memory_space<vmem>>, vector<1x128xf32>
    %36 = vector.broadcast %35 : vector<1x128xf32> to vector<16x128xf32>
    %37 = arith.addf %34, %36 : vector<16x128xf32>
    %c0_29 = arith.constant 0 : index
    %c0_30 = arith.constant 0 : index
    %38 = vector.load %arg12[%c0_29, %c0_30] : memref<16x128xf32, #tpu.memory_space<vmem>>, vector<16x128xf32>
    tpu.vector_store %arg12[%c0_29, %c0_30], %37 {strides = array<i32>} : memref<16x128xf32, #tpu.memory_space<vmem>>, vector<16x128xf32>,
    return
  }
  func.func @transform_0(%arg0: i32) -> (i32, i32) {
    %c0_i32 = arith.constant 0 : i32
    %c0_i32_0 = arith.constant 0 : i32
    return %arg0, %c0_i32 : i32, i32
  }
  func.func @transform_1(%arg0: i32) -> (i32, i32) {
    %c0_i32 = arith.constant 0 : i32
    %c0_i32_0 = arith.constant 0 : i32
    %c0_i32_1 = arith.constant 0 : i32
    return %c0_i32, %c0_i32_0 : i32, i32
  }
  func.func @transform_2(%arg0: i32) -> (i32, i32) {
    %c0_i32 = arith.constant 0 : i32
    %c0_i32_0 = arith.constant 0 : i32
    %c0_i32_1 = arith.constant 0 : i32
    return %c0_i32, %c0_i32_0 : i32, i32
  }
  func.func @transform_3(%arg0: i32) -> (i32, i32) {
    %c0_i32 = arith.constant 0 : i32
    %c0_i32_0 = arith.constant 0 : i32
    %c0_i32_1 = arith.constant 0 : i32
    return %c0_i32, %c0_i32_0 : i32, i32
  }
  func.func @transform_4(%arg0: i32) -> (i32, i32) {
    %c0_i32 = arith.constant 0 : i32
    %c0_i32_0 = arith.constant 0 : i32
    %c0_i32_1 = arith.constant 0 : i32
    return %c0_i32, %c0_i32_0 : i32, i32
  }
  func.func @transform_5(%arg0: i32) -> (i32, i32) {
    %c0_i32 = arith.constant 0 : i32
    %c0_i32_0 = arith.constant 0 : i32
    %c0_i32_1 = arith.constant 0 : i32
    return %c0_i32, %c0_i32_0 : i32, i32
  }
  func.func @transform_6(%arg0: i32) -> (i32, i32) {
    %c0_i32 = arith.constant 0 : i32
    %c0_i32_0 = arith.constant 0 : i32
    %c0_i32_1 = arith.constant 0 : i32
    return %c0_i32, %c0_i32_0 : i32, i32
  }
  func.func @transform_7(%arg0: i32) -> (i32, i32) {
    %c0_i32 = arith.constant 0 : i32
    %c0_i32_0 = arith.constant 0 : i32
    %c0_i32_1 = arith.constant 0 : i32
    return %c0_i32, %c0_i32_0 : i32, i32
  }
  func.func @transform_8(%arg0: i32) -> (i32, i32) {
    %c0_i32 = arith.constant 0 : i32
    %c0_i32_0 = arith.constant 0 : i32
    %c0_i32_1 = arith.constant 0 : i32
    return %c0_i32, %c0_i32_0 : i32, i32
  }
  func.func @transform_9(%arg0: i32) -> (i32, i32) {
    %c0_i32 = arith.constant 0 : i32
    %c0_i32_0 = arith.constant 0 : i32
    %c0_i32_1 = arith.constant 0 : i32
    return %c0_i32, %c0_i32_0 : i32, i32
  }
  func.func @transform_10(%arg0: i32) -> (i32, i32) {
    %c0_i32 = arith.constant 0 : i32
    %c0_i32_0 = arith.constant 0 : i32
    %c0_i32_1 = arith.constant 0 : i32
    return %c0_i32, %c0_i32_0 : i32, i32
  }
  func.func @transform_11(%arg0: i32) -> (i32, i32) {
    %c0_i32 = arith.constant 0 : i32
    %c0_i32_0 = arith.constant 0 : i32
    return %arg0, %c0_i32 : i32, i32
  }
}

</mosaic_0001>

<bundles_post_ra>
// kernel: mlp_forward.1
= control target key start
LH: loop header
LB: loop body
LE: loop exit
PB: predicated region body
PF: predicated region fallthrough
CT: control target
= control target key end

     0   :  { %16 = vsyncpa [#allocation3], 0  ;;  %s6636_s0 = inlined_call_operand.vmem [shape: bf16[16,1024], index: 0, kind: input, shape index: {}]   ;;  %s6637_s1 = inlined_call_operand.hbm [shape: bf16[1024,640], index: 1, kind: input, shape index: {}]   ;;  %s6638_s2 = inlined_call_operand.hbm [shape: f32[1,640], index: 2, kind: input, shape index: {}]   ;;  %s6639_s3 = inlined_call_operand.hbm [shape: bf16[640,256], index: 3, kind: input, shape index: {}]   ;;  %s6640_s4 = inlined_call_operand.hbm [shape: f32[1,256], index: 4, kind: input, shape index: {}]   ;;  %s6641_s5 = inlined_call_operand.hbm [shape: bf16[256,128], index: 5, kind: input, shape index: {}]   ;;  %s6642_s6 = inlined_call_operand.hbm [shape: f32[1,128], index: 6, kind: input, shape index: {}]   ;;  %s6643_s7 = inlined_call_operand.hbm [shape: bf16[128,128], index: 7, kind: input, shape index: {}]   ;;  %s6644_s8 = inlined_call_operand.hbm [shape: f32[1,128], index: 8, kind: input, shape index: {}]   ;;  %s6645_s9 = inlined_call_operand.hbm [shape: bf16[128,128], index: 9, kind: input, shape index: {}]   ;;  %s6646_s10 = inlined_call_operand.hbm [shape: f32[1,128], index: 10, kind: input, shape index: {}]   ;;  %s6647_s11 = inlined_call_operand.vmem [shape: f32[16,128], index: 11, kind: output, shape index: {}]  }
   0x1   :  { %17 = vsyncpa [#allocation5], 0 }
   0x2   :  { %18 = vsyncpa [#allocation8], 0 }
   0x3   :  { %19 = vsyncpa [#allocation11], 0 }
   0x4   :  { %20 = vsyncpa [#allocation14], 0  ;;  %s42_s19 = sshll.u32 %s6638_s2, 4  ;;  %s43_s19 = int_to_ptr.hbm [resolvable:$true] %s42_s19 }
   0x5   :  { %21 = vsyncpa [#allocation17], 0  ;;  %s6313_s20 = smov [#allocation4]   ;;  %s66_s24 = sshll.u32 %s6640_s4, 4  ;;  %s67_s24 = int_to_ptr.hbm [resolvable:$true] %s66_s24 }
   0x6   :  { %s44_s21 = sshll.u32 %s6313_s20, 4  ;;  %s6314_s25 = smov [#allocation7]   ;;  %s45_s21 = int_to_ptr.vmem [resolvable:$true] %s44_s21 }
   0x7   :  { %47 = dma.hbm_to_vmem [thread:$0]  %s43_s19, 80, %s45_s21, [#allocation5]  }
   0x8   :  { %s68_s26 = sshll.u32 %s6314_s25, 4  ;;  %s90_s29 = sshll.u32 %s6642_s6, 4  ;;  %s69_s26 = int_to_ptr.vmem [resolvable:$true] %s68_s26  ;;  %s91_s29 = int_to_ptr.hbm [resolvable:$true] %s90_s29 }
   0x9   :  { %71 = dma.hbm_to_vmem [thread:$0]  %s67_s24, 32, %s69_s26, [#allocation8]  }
   0xa   :  { %s114_s12 = sshll.u32 %s6644_s8, 4  ;;  %s6315_s13 = smov [#allocation10]   ;;  %s115_s12 = int_to_ptr.hbm [resolvable:$true] %s114_s12 }
   0xb   :  { %s92_s14 = sshll.u32 %s6315_s13, 4  ;;  %s6316_s4 = smov [#allocation13]   ;;  %s93_s14 = int_to_ptr.vmem [resolvable:$true] %s92_s14 }
   0xc   :  { %95 = dma.hbm_to_vmem [thread:$0]  %s91_s29, 16, %s93_s14, [#allocation11]  }
   0xd   :  { %s116_s15 = sshll.u32 %s6316_s4, 4  ;;  %s28_s18 = sshll.u32 %s6637_s1, 4  ;;  %s117_s15 = int_to_ptr.vmem [resolvable:$true] %s116_s15  ;;  %s29_s18 = int_to_ptr.hbm [resolvable:$true] %s28_s18 }
   0xe   :  { %119 = dma.hbm_to_vmem [thread:$0]  %s115_s12, 16, %s117_s15, [#allocation14]  }
   0xf   :  { %s6317_s6 = smov [#allocation2]   ;;  %s52_s8 = sshll.u32 %s6639_s3, 4  ;;  %s53_s8 = int_to_ptr.hbm [resolvable:$true] %s52_s8 }
  0x10   :  { %s30_s19 = sshll.u32 %s6317_s6, 4  ;;  %s6318_s22 = smov 320   ;;  %s31_s19 = int_to_ptr.vmem [resolvable:$true] %s30_s19 }
  0x11   :  { %s6319_s23 = smov 20   ;;  %s6320_s24 = smov [#allocation6]  }
  0x12   :  { %36 = dma.hbm_to_vmem [thread:$0]  %s29_s18, 40960, %s31_s19, [#allocation3], %s6318_s22, %s6318_s22, %s6319_s23  }
  0x13   :  { %s54_s25 = sshll.u32 %s6320_s24, 4  ;;  %s6321_s26 = smov 128   ;;  %s55_s25 = int_to_ptr.vmem [resolvable:$true] %s54_s25 }
  0x14   :  { %s6322_s27 = smov 8   ;;  %s76_s29 = sshll.u32 %s6641_s5, 4  ;;  %s77_s29 = int_to_ptr.hbm [resolvable:$true] %s76_s29 }
  0x15   :  { %60 = dma.hbm_to_vmem [thread:$0]  %s53_s8, 10240, %s55_s25, [#allocation5], %s6321_s26, %s6321_s26, %s6322_s27  }
  0x16   :  { %s6323_s2 = smov [#allocation9]   ;;  %s100_s13 = sshll.u32 %s6643_s7, 4  ;;  %s101_s13 = int_to_ptr.hbm [resolvable:$true] %s100_s13 }
  0x17   :  { %s78_s30 = sshll.u32 %s6323_s2, 4  ;;  %s6324_s14 = smov 64   ;;  %s79_s30 = int_to_ptr.vmem [resolvable:$true] %s78_s30 }
  0x18   :  { %s6325_s4 = smov 4   ;;  %s6326_s15 = smov [#allocation12]  }
  0x19   :  { %84 = dma.hbm_to_vmem [thread:$0]  %s77_s29, 2048, %s79_s30, [#allocation8], %s6324_s14, %s6324_s14, %s6325_s4  }
  0x1a   :  { %s102_s16 = sshll.u32 %s6326_s15, 4  ;;  %s124_s6 = sshll.u32 %s6645_s9, 4  ;;  %s103_s16 = int_to_ptr.vmem [resolvable:$true] %s102_s16  ;;  %s125_s6 = int_to_ptr.hbm [resolvable:$true] %s124_s6 }
  0x1b   :  { %108 = dma.hbm_to_vmem [thread:$0]  %s101_s13, 1024, %s103_s16, [#allocation11], %s6324_s14, %s6324_s14, %s6325_s4  }
  0x1c   :  { %s138_s20 = sshll.u32 %s6646_s10, 4  ;;  %s6327_s21 = smov [#allocation15]   ;;  %s139_s20 = int_to_ptr.hbm [resolvable:$true] %s138_s20 }
  0x1d   :  { %s126_s8 = sshll.u32 %s6327_s21, 4  ;;  %s6328_s7 = smov [#allocation16]   ;;  %s127_s8 = int_to_ptr.vmem [resolvable:$true] %s126_s8 }
  0x1e   :  { %132 = dma.hbm_to_vmem [thread:$0]  %s125_s6, 1024, %s127_s8, [#allocation14], %s6324_s14, %s6324_s14, %s6325_s4  }
  0x1f   :  { %s140_s22 = sshll.u32 %s6328_s7, 4  ;;  %s141_s22 = int_to_ptr.vmem [resolvable:$true] %s140_s22 }
  0x20   :  { %143 = dma.hbm_to_vmem [thread:$0]  %s139_s20, 16, %s141_s22, [#allocation17]  }
  0x21   :  { %6301 = dma.done.wait [#allocation3], 40960  }
  0x22   :  { %6302 = vsyncadd [#allocation3], 4294926336 }
  0x23   :  { %6303 = dma.done.wait [#allocation5], 10320  }
  0x24   :  { %6304 = vsyncadd [#allocation5], 4294956976 }
  0x25   :  { %6305 = dma.done.wait [#allocation8], 2080  }
  0x26   :  { %6306 = vsyncadd [#allocation8], 4294965216 }
  0x27   :  { %6307 = dma.done.wait [#allocation11], 1040  }
  0x28   :  { %6308 = vsyncadd [#allocation11], 4294966256 }
  0x29   :  { %6309 = dma.done.wait [#allocation14], 1040  }
  0x2a   :  { %6310 = vsyncadd [#allocation14], 4294966256 }
  0x2b   :  { %6311 = dma.done.wait [#allocation17], 16  }
  0x2c   :  { %6312 = vsyncadd [#allocation17], 4294967280  ;;  %v4015_v0 = vld [vmem:[#allocation2 + $0x118] sm:$0xf]  ;;  %v5646_v1 = vld [vmem:[#allocation2 + $0x128] sm:$0xf0] }
  0x2d   :  { %v4175_v2 = vld [vmem:[#allocation2 + $0x258] sm:$0xf]  ;;  %v4016_v3 = vor.u32 %v5646_v1, %v4015_v0  ;;  %v5686_v4 = vld [vmem:[#allocation2 + $0x268] sm:$0xf0]  ;;  %v3995_v11 = vld [vmem:[#allocation2 + $0xf0] sm:$0xf] }
  0x2e   :  { %v4335_v5 = vld [vmem:[#allocation2 + $0x398] sm:$0xf]  ;;  %v5726_v6 = vld [vmem:[#allocation2 + $0x3a8] sm:$0xf0]  ;;  %v4176_v7 = vor.u32 %v5686_v4, %v4175_v2  ;;  %v5641_v13 = vld [vmem:[#allocation2 + $0x100] sm:$0xf0] }
  0x2f   :  { %v4336_v8 = vor.u32 %v5726_v6, %v4335_v5  ;;  %v4495_v9 = vld [vmem:[#allocation2 + $0x4d8] sm:$0xf]  ;;  %v5766_v10 = vld [vmem:[#allocation2 + $0x4e8] sm:$0xf0]  ;;  %2292 = vmatpush.bf16.msra.mxu0 %v4016_v3  ;;  %v4155_v14 = vld [vmem:[#allocation2 + $0x230] sm:$0xf]  ;;  %v3996_v16 = vor.u32 %v5641_v13, %v3995_v11 }
  0x30   :  { %v4496_v12 = vor.u32 %v5766_v10, %v4495_v9  ;;  %v5681_v15 = vld [vmem:[#allocation2 + $0x240] sm:$0xf0]  ;;  %2306 = vmatpush.bf16.msra.mxu1 %v4176_v7  ;;  %v4315_v18 = vld [vmem:[#allocation2 + $0x370] sm:$0xf]  ;;  %v3975_v23 = vld [vmem:[#allocation2 + $0xc8] sm:$0xf] }
  0x31   :  { %2320 = vmatpush.bf16.msra.mxu2 %v4336_v8  ;;  %v4156_v17 = vor.u32 %v5681_v15, %v4155_v14  ;;  %v5721_v19 = vld [vmem:[#allocation2 + $0x380] sm:$0xf0]  ;;  %v4475_v20 = vld [vmem:[#allocation2 + $0x4b0] sm:$0xf]  ;;  %v5636_v24 = vld [vmem:[#allocation2 + $0xd8] sm:$0xf0] }
  0x32   :  { %2334 = vmatpush.bf16.msra.mxu3 %v4496_v12  ;;  %v4316_v21 = vor.u32 %v5721_v19, %v4315_v18  ;;  %v5761_v22 = vld [vmem:[#allocation2 + $0x4c0] sm:$0xf0]  ;;  %v4135_v26 = vld [vmem:[#allocation2 + $0x208] sm:$0xf]  ;;  %v5676_v27 = vld [vmem:[#allocation2 + $0x218] sm:$0xf0]  ;;  %v3976_v29 = vor.u32 %v5636_v24, %v3975_v23 }
  0x33   :  { %v4476_v25 = vor.u32 %v5761_v22, %v4475_v20  ;;  %v4295_v28 = vld [vmem:[#allocation2 + $0x348] sm:$0xf]  ;;  %2293 = vmatpush.bf16.msra.mxu0 %v3996_v16  ;;  %v5716_v30 = vld [vmem:[#allocation2 + $0x358] sm:$0xf0]  ;;  %v4136_v33 = vor.u32 %v5676_v27, %v4135_v26  ;;  %v3955_v35 = vld [vmem:[#allocation2 + $0xa0] sm:$0xf] }
  0x34   :  { %v4455_v31 = vld [vmem:[#allocation2 + $0x488] sm:$0xf]  ;;  %v5756_v32 = vld [vmem:[#allocation2 + $0x498] sm:$0xf0]  ;;  %2307 = vmatpush.bf16.msra.mxu1 %v4156_v17  ;;  %v4296_v34 = vor.u32 %v5716_v30, %v4295_v28  ;;  %v5631_v36 = vld [vmem:[#allocation2 + $0xb0] sm:$0xf0] }
  0x35   :  { %2321 = vmatpush.bf16.msra.mxu2 %v4316_v21  ;;  %v4115_v37 = vld [vmem:[#allocation2 + $0x1e0] sm:$0xf]  ;;  %v4456_v38 = vor.u32 %v5756_v32, %v4455_v31  ;;  %v5671_v39 = vld [vmem:[#allocation2 + $0x1f0] sm:$0xf0]  ;;  %v3956_v44 = vor.u32 %v5631_v36, %v3955_v35  ;;  %v3935_v47 = vld [vmem:[#allocation2 + $0x78] sm:$0xf] }
  0x36   :  { %2335 = vmatpush.bf16.msra.mxu3 %v4476_v25  ;;  %v4275_v40 = vld [vmem:[#allocation2 + $0x320] sm:$0xf]  ;;  %v5711_v41 = vld [vmem:[#allocation2 + $0x330] sm:$0xf0]  ;;  %v4116_v45 = vor.u32 %v5671_v39, %v4115_v37  ;;  %v5626_v48 = vld [vmem:[#allocation2 + $0x88] sm:$0xf0] }
  0x37   :  { %v4435_v42 = vld [vmem:[#allocation2 + $0x460] sm:$0xf]  ;;  %v5751_v43 = vld [vmem:[#allocation2 + $0x470] sm:$0xf0]  ;;  %2294 = vmatpush.bf16.msra.mxu0 %v3976_v29  ;;  %v4276_v46 = vor.u32 %v5711_v41, %v4275_v40  ;;  %v4095_v49 = vld [vmem:[#allocation2 + $0x1b8] sm:$0xf]  ;;  %v3936_v56 = vor.u32 %v5626_v48, %v3935_v47 }
  0x38   :  { %2308 = vmatpush.bf16.msra.mxu1 %v4136_v33  ;;  %v4436_v50 = vor.u32 %v5751_v43, %v4435_v42  ;;  %v5666_v51 = vld [vmem:[#allocation2 + $0x1c8] sm:$0xf0]  ;;  %v4255_v52 = vld [vmem:[#allocation2 + $0x2f8] sm:$0xf]  ;;  %v3915_v59 = vld [vmem:[#allocation2 + $0x50] sm:$0xf] }
  0x39   :  { %2322 = vmatpush.bf16.msra.mxu2 %v4296_v34  ;;  %v5706_v53 = vld [vmem:[#allocation2 + $0x308] sm:$0xf0]  ;;  %v4415_v54 = vld [vmem:[#allocation2 + $0x438] sm:$0xf]  ;;  %v4096_v57 = vor.u32 %v5666_v51, %v4095_v49  ;;  %v5621_v60 = vld [vmem:[#allocation2 + $0x60] sm:$0xf0] }
  0x3a   :  { %2336 = vmatpush.bf16.msra.mxu3 %v4456_v38  ;;  %v5746_v55 = vld [vmem:[#allocation2 + $0x448] sm:$0xf0]  ;;  %v4256_v58 = vor.u32 %v5706_v53, %v4255_v52  ;;  %v4075_v61 = vld [vmem:[#allocation2 + $0x190] sm:$0xf]  ;;  %v5661_v63 = vld [vmem:[#allocation2 + $0x1a0] sm:$0xf0]  ;;  %v3916_v4 = vor.u32 %v5621_v60, %v3915_v59 }
  0x3b   :  { %2295 = vmatpush.bf16.msra.mxu0 %v3956_v44  ;;  %v4416_v62 = vor.u32 %v5746_v55, %v4415_v54  ;;  %v4235_v0 = vld [vmem:[#allocation2 + $0x2d0] sm:$0xf]  ;;  %v5701_v1 = vld [vmem:[#allocation2 + $0x2e0] sm:$0xf0]  ;;  %v4076_v5 = vor.u32 %v5661_v63, %v4075_v61  ;;  %v3895_v7 = vld [vmem:[#allocation2 + $0x28] sm:$0xf] }
  0x3c   :  { %2309 = vmatpush.bf16.msra.mxu1 %v4116_v45  ;;  %v4395_v2 = vld [vmem:[#allocation2 + $0x410] sm:$0xf]  ;;  %v5741_v3 = vld [vmem:[#allocation2 + $0x420] sm:$0xf0]  ;;  %v4236_v6 = vor.u32 %v5701_v1, %v4235_v0  ;;  %v5616_v8 = vld [vmem:[#allocation2 + $0x38] sm:$0xf0] }
  0x3d   :  { %2323 = vmatpush.bf16.msra.mxu2 %v4276_v46  ;;  %v4055_v9 = vld [vmem:[#allocation2 + $0x168] sm:$0xf]  ;;  %v4396_v10 = vor.u32 %v5741_v3, %v4395_v2  ;;  %v5656_v11 = vld [vmem:[#allocation2 + $0x178] sm:$0xf0]  ;;  %v3896_v16 = vor.u32 %v5616_v8, %v3895_v7  ;;  %v3875_v17 = vld [vmem:[#allocation2] sm:$0xf] }
  0x3e   :  { %2337 = vmatpush.bf16.msra.mxu3 %v4436_v50  ;;  %v4215_v12 = vld [vmem:[#allocation2 + $0x2a8] sm:$0xf]  ;;  %v5696_v13 = vld [vmem:[#allocation2 + $0x2b8] sm:$0xf0]  ;;  %v5611_v18 = vld [vmem:[#allocation2 + $0x10] sm:$0xf0]  ;;  %v4056_v19 = vor.u32 %v5656_v11, %v4055_v9 }
  0x3f   :  { %2296 = vmatpush.bf16.msra.mxu0 %v3936_v56  ;;  %v4375_v14 = vld [vmem:[#allocation2 + $0x3e8] sm:$0xf]  ;;  %v5736_v15 = vld [vmem:[#allocation2 + $0x3f8] sm:$0xf0]  ;;  %v4216_v20 = vor.u32 %v5696_v13, %v4215_v12  ;;  %v4035_v21 = vld [vmem:[#allocation2 + $0x140] sm:$0xf]  ;;  %v3876_v31 = vor.u32 %v5611_v18, %v3875_v17 }
  0x40   :  { %2310 = vmatpush.bf16.msra.mxu1 %v4096_v57  ;;  %v5651_v22 = vld [vmem:[#allocation2 + $0x150] sm:$0xf0]  ;;  %v4195_v23 = vld [vmem:[#allocation2 + $0x280] sm:$0xf]  ;;  %v4376_v24 = vor.u32 %v5736_v15, %v4375_v14  ;;  %v4655_v28 = vld [vmem:[#allocation2 + $0x618] sm:$0xf] }
  0x41   :  { %2324 = vmatpush.bf16.msra.mxu2 %v4256_v58  ;;  %v5691_v25 = vld [vmem:[#allocation2 + $0x290] sm:$0xf0]  ;;  %v4355_v26 = vld [vmem:[#allocation2 + $0x3c0] sm:$0xf]  ;;  %v5806_v29 = vld [vmem:[#allocation2 + $0x628] sm:$0xf0]  ;;  %v4036_v35 = vor.u32 %v5651_v22, %v4035_v21 }
  0x42   :  { %2338 = vmatpush.bf16.msra.mxu3 %v4416_v62  ;;  %v5731_v27 = vld [vmem:[#allocation2 + $0x3d0] sm:$0xf0]  ;;  %v4815_v30 = vld [vmem:[#allocation2 + $0x758] sm:$0xf]  ;;  %v5846_v32 = vld [vmem:[#allocation2 + $0x768] sm:$0xf0]  ;;  %v4196_v36 = vor.u32 %v5691_v25, %v4195_v23  ;;  %v4656_v40 = vor.u32 %v5806_v29, %v4655_v28 }
  0x43   :  { %2297 = vmatpush.bf16.msra.mxu0 %v3916_v4  ;;  %v4975_v33 = vld [vmem:[#allocation2 + $0x898] sm:$0xf]  ;;  %v5886_v34 = vld [vmem:[#allocation2 + $0x8a8] sm:$0xf0]  ;;  %v4356_v39 = vor.u32 %v5731_v27, %v4355_v26  ;;  %v4635_v41 = vld [vmem:[#allocation2 + $0x5f0] sm:$0xf]  ;;  %v4816_v43 = vor.u32 %v5846_v32, %v4815_v30 }
  0x44   :  { %2311 = vmatpush.bf16.msra.mxu1 %v4076_v5  ;;  %v5135_v37 = vld [vmem:[#allocation2 + $0x9d8] sm:$0xf]  ;;  %v5926_v38 = vld [vmem:[#allocation2 + $0x9e8] sm:$0xf0]  ;;  %v5801_v42 = vld [vmem:[#allocation2 + $0x600] sm:$0xf0]  ;;  %v4976_v44 = vor.u32 %v5886_v34, %v4975_v33 }
  0x45   :  { %2325 = vmatpush.bf16.msra.mxu2 %v4236_v6  ;;  %v4795_v45 = vld [vmem:[#allocation2 + $0x730] sm:$0xf]  ;;  %v5841_v46 = vld [vmem:[#allocation2 + $0x740] sm:$0xf0]  ;;  %v5136_v48 = vor.u32 %v5926_v38, %v5135_v37  ;;  %v3843_v52 = vld [vmem:[%s6636_s0] sm:$0xf]  ;;  %v4636_v55 = vor.u32 %v5801_v42, %v4635_v41 }
  0x46   :  { %2339 = vmatpush.bf16.msra.mxu3 %v4396_v10  ;;  %v4955_v47 = vld [vmem:[#allocation2 + $0x870] sm:$0xf]  ;;  %v5881_v49 = vld [vmem:[#allocation2 + $0x880] sm:$0xf0]  ;;  %v5605_v53 = vld [vmem:[%s6636_s0 + $0x1c] sm:$0xf0]  ;;  %v4796_v60 = vor.u32 %v5841_v46, %v4795_v45 }
  0x47   :  { %2298 = vmatpush.bf16.msra.mxu0 %v3896_v16  ;;  %v5115_v50 = vld [vmem:[#allocation2 + $0x9b0] sm:$0xf]  ;;  %v5921_v51 = vld [vmem:[#allocation2 + $0x9c0] sm:$0xf0]  ;;  %v3851_v54 = vld [vmem:[%s6636_s0 + $0x8] sm:$0xf]  ;;  %v6428_v58 = vor.u32 %v5605_v53, %v3843_v52  ;;  %v4956_v61 = vor.u32 %v5881_v49, %v4955_v47 }
  0x48   :  { %2312 = vmatpush.bf16.msra.mxu1 %v4056_v19  ;;  %v4615_v56 = vld [vmem:[#allocation2 + $0x5c8] sm:$0xf]  ;;  %v5796_v57 = vld [vmem:[#allocation2 + $0x5d8] sm:$0xf0]  ;;  %v5116_v2 = vor.u32 %v5921_v51, %v5115_v50  ;;  %v5601_v6 = vld [vmem:[%s6636_s0 + $0x4] sm:$0xf] }
  0x49   :  { %2326 = vmatpush.bf16.msra.mxu2 %v4216_v20  ;;  %v5606_v59 = vld [vmem:[%s6636_s0 + $0x24] sm:$0xf0]  ;;  %v5836_v63 = vld [vmem:[#allocation2 + $0x718] sm:$0xf0]  ;;  %v3845_v7 = vld [vmem:[%s6636_s0 + $0x20] sm:$0xf0]  ;;  %v4616_v9 = vor.u32 %v5796_v57, %v4615_v56 }
  0x4a   :  { %2340 = vmatpush.bf16.msra.mxu3 %v4376_v24  ;;  %v4775_v62 = vld [vmem:[#allocation2 + $0x708] sm:$0xf]  ;;  %v6433_v1 = vor.u32 %v5606_v59, %v3851_v54  ;;  %v5876_v3 = vld [vmem:[#allocation2 + $0x858] sm:$0xf0]  ;;  %v5602_v8 = vld [vmem:[%s6636_s0 + $0xc] sm:$0xf]  ;;  %v6446_v10 = vor.u32 %v5601_v6, %v3845_v7 }
  0x4b   :  { %2299 = vmatpush.bf16.msra.mxu0 %v3876_v31  ;;  %v4935_v0 = vld [vmem:[#allocation2 + $0x848] sm:$0xf]  ;;  %v5916_v5 = vld [vmem:[#allocation2 + $0x998] sm:$0xf0]  ;;  %v3853_v11 = vld [vmem:[%s6636_s0 + $0x28] sm:$0xf0]  ;;  %v4776_v12 = vor.u32 %v5836_v63, %v4775_v62 }
  0x4c   :  { %2313 = vmatpush.bf16.msra.mxu1 %v4036_v35  ;;  %v5095_v4 = vld [vmem:[#allocation2 + $0x988] sm:$0xf]  ;;  %v4936_v13 = vor.u32 %v5876_v3, %v4935_v0  ;;  %v4595_v14 = vld [vmem:[#allocation2 + $0x5a0] sm:$0xf]  ;;  %v5791_v15 = vld [vmem:[#allocation2 + $0x5b0] sm:$0xf0]  ;;  %v6451_v17 = vor.u32 %v5602_v8, %v3853_v11 }
  0x4d   :  { %2327 = vmatpush.bf16.msra.mxu2 %v4196_v36  ;;  %v4755_v16 = vld [vmem:[#allocation2 + $0x6e0] sm:$0xf]  ;;  %v5096_v18 = vor.u32 %v5916_v5, %v5095_v4  ;;  %v5831_v19 = vld [vmem:[#allocation2 + $0x6f0] sm:$0xf0]  ;;  %v4596_v24 = vor.u32 %v5791_v15, %v4595_v14  ;;  %v4575_v27 = vld [vmem:[#allocation2 + $0x578] sm:$0xf] }
  0x4e   :  { %2341 = vmatpush.bf16.msra.mxu3 %v4356_v39  ;;  %2300 = vmatmul.bf16.vlgmr.msra.gmra.mxu0 %v6428_v58  ;;  %v4915_v20 = vld [vmem:[#allocation2 + $0x820] sm:$0xf]  ;;  %v5871_v21 = vld [vmem:[#allocation2 + $0x830] sm:$0xf0]  ;;  %v4756_v25 = vor.u32 %v5831_v19, %v4755_v16  ;;  %v5786_v28 = vld [vmem:[#allocation2 + $0x588] sm:$0xf0] }
  0x4f   :  { %2348 = vmatpush.bf16.msrb.mxu0 %v4656_v40  ;;  %2314 = vmatmul.bf16.vlgmr.msra.gmra.mxu1 %v6446_v10  ;;  %v5075_v22 = vld [vmem:[#allocation2 + $0x960] sm:$0xf]  ;;  %v5911_v23 = vld [vmem:[#allocation2 + $0x970] sm:$0xf0]  ;;  %v4916_v26 = vor.u32 %v5871_v21, %v4915_v20  ;;  %v4735_v29 = vld [vmem:[#allocation2 + $0x6b8] sm:$0xf]  ;;  %v4576_v36 = vor.u32 %v5786_v28, %v4575_v27 }
  0x50   :  { %2362 = vmatpush.bf16.msrb.mxu1 %v4816_v43  ;;  %2328 = vmatmul.bf16.vlgmr.msra.gmra.mxu2 %v6433_v1  ;;  %v5076_v30 = vor.u32 %v5911_v23, %v5075_v22  ;;  %v5826_v31 = vld [vmem:[#allocation2 + $0x6c8] sm:$0xf0]  ;;  %v4895_v32 = vld [vmem:[#allocation2 + $0x7f8] sm:$0xf]  ;;  %v4555_v39 = vld [vmem:[#allocation2 + $0x550] sm:$0xf] }
  0x51   :  { %2376 = vmatpush.bf16.msrb.mxu2 %v4976_v44  ;;  %2342 = vmatmul.bf16.vlgmr.msra.gmra.mxu3 %v6451_v17  ;;  %v5866_v33 = vld [vmem:[#allocation2 + $0x808] sm:$0xf0]  ;;  %v5055_v34 = vld [vmem:[#allocation2 + $0x938] sm:$0xf]  ;;  %v4736_v37 = vor.u32 %v5826_v31, %v4735_v29  ;;  %v5781_v40 = vld [vmem:[#allocation2 + $0x560] sm:$0xf0] }
  0x52   :  { %2390 = vmatpush.bf16.msrb.mxu3 %v5136_v48  ;;  %v5906_v35 = vld [vmem:[#allocation2 + $0x948] sm:$0xf0]  ;;  %v4896_v38 = vor.u32 %v5866_v33, %v4895_v32  ;;  %v4715_v41 = vld [vmem:[#allocation2 + $0x690] sm:$0xf]  ;;  %v5821_v43 = vld [vmem:[#allocation2 + $0x6a0] sm:$0xf0]  ;;  %v4556_v48 = vor.u32 %v5781_v40, %v4555_v39 }
  0x53   :  { %2349 = vmatpush.bf16.msrb.mxu0 %v4636_v55  ;;  %v5056_v42 = vor.u32 %v5906_v35, %v5055_v34  ;;  %v4875_v44 = vld [vmem:[#allocation2 + $0x7d0] sm:$0xf]  ;;  %v5861_v45 = vld [vmem:[#allocation2 + $0x7e0] sm:$0xf0]  ;;  %v4535_v49 = vld [vmem:[#allocation2 + $0x528] sm:$0xf]  ;;  %v4716_v50 = vor.u32 %v5821_v43, %v4715_v41 }
  0x54   :  { %2363 = vmatpush.bf16.msrb.mxu1 %v4796_v60  ;;  %v5035_v46 = vld [vmem:[#allocation2 + $0x910] sm:$0xf]  ;;  %v5901_v47 = vld [vmem:[#allocation2 + $0x920] sm:$0xf0]  ;;  %v4876_v51 = vor.u32 %v5861_v45, %v4875_v44  ;;  %v5776_v52 = vld [vmem:[#allocation2 + $0x538] sm:$0xf0] }
  0x55   :  { %2377 = vmatpush.bf16.msrb.mxu2 %v4956_v61  ;;  %v4695_v53 = vld [vmem:[#allocation2 + $0x668] sm:$0xf]  ;;  %v5816_v54 = vld [vmem:[#allocation2 + $0x678] sm:$0xf0]  ;;  %v5036_v55 = vor.u32 %v5901_v47, %v5035_v46  ;;  %v4515_v61 = vld [vmem:[#allocation2 + $0x500] sm:$0xf]  ;;  %v4536_v63 = vor.u32 %v5776_v52, %v4535_v49 }
  0x56   :  { %2391 = vmatpush.bf16.msrb.mxu3 %v5116_v2  ;;  %v4855_v56 = vld [vmem:[#allocation2 + $0x7a8] sm:$0xf]  ;;  %v5856_v57 = vld [vmem:[#allocation2 + $0x7b8] sm:$0xf0]  ;;  %v5771_v62 = vld [vmem:[#allocation2 + $0x510] sm:$0xf0]  ;;  %v4696_v5 = vor.u32 %v5816_v54, %v4695_v53 }
  0x57   :  { %2350 = vmatpush.bf16.msrb.mxu0 %v4616_v9  ;;  %v5015_v59 = vld [vmem:[#allocation2 + $0x8e8] sm:$0xf]  ;;  %v5896_v60 = vld [vmem:[#allocation2 + $0x8f8] sm:$0xf0]  ;;  %v4675_v0 = vld [vmem:[#allocation2 + $0x640] sm:$0xf]  ;;  %v4856_v6 = vor.u32 %v5856_v57, %v4855_v56  ;;  %v4516_v19 = vor.u32 %v5771_v62, %v4515_v61 }
  0x58   :  { %2364 = vmatpush.bf16.msrb.mxu1 %v4776_v12  ;;  %v5811_v2 = vld [vmem:[#allocation2 + $0x650] sm:$0xf0]  ;;  %v4835_v3 = vld [vmem:[#allocation2 + $0x780] sm:$0xf]  ;;  %v5644_v9 = vld [vmem:[#allocation2 + $0x11c] sm:$0xf]  ;;  %v5016_v11 = vor.u32 %v5896_v60, %v5015_v59 }
  0x59   :  { %2378 = vmatpush.bf16.msrb.mxu2 %v4936_v13  ;;  %v5851_v4 = vld [vmem:[#allocation2 + $0x790] sm:$0xf0]  ;;  %v4995_v7 = vld [vmem:[#allocation2 + $0x8c0] sm:$0xf]  ;;  %v4017_v12 = vld [vmem:[#allocation2 + $0x12c] sm:$0xf0]  ;;  %v4676_v23 = vor.u32 %v5811_v2, %v4675_v0 }
  0x5a   :  { %2392 = vmatpush.bf16.msrb.mxu3 %v5096_v18  ;;  %v5891_v8 = vld [vmem:[#allocation2 + $0x8d0] sm:$0xf0]  ;;  %v5684_v13 = vld [vmem:[#allocation2 + $0x25c] sm:$0xf]  ;;  %v4177_v14 = vld [vmem:[#allocation2 + $0x26c] sm:$0xf0]  ;;  %v4020_v29 = vor.u32 %v5644_v9, %v4017_v12 }
  0x5b   :  { %2351 = vmatpush.bf16.msrb.mxu0 %v4596_v24  ;;  %v5724_v15 = vld [vmem:[#allocation2 + $0x39c] sm:$0xf]  ;;  %v4337_v16 = vld [vmem:[#allocation2 + $0x3ac] sm:$0xf0]  ;;  %v4836_v24 = vor.u32 %v5851_v4, %v4835_v3  ;;  %v5603_v27 = vld [vmem:[%s6636_s0 + $0x14] sm:$0xf]  ;;  %v4996_v28 = vor.u32 %v5891_v8, %v4995_v7  ;;  %v4180_v33 = vor.u32 %v5684_v13, %v4177_v14 }
  0x5c   :  { %2365 = vmatpush.bf16.msrb.mxu1 %v4756_v25  ;;  %v5764_v18 = vld [vmem:[#allocation2 + $0x4dc] sm:$0xf]  ;;  %v4497_v20 = vld [vmem:[#allocation2 + $0x4ec] sm:$0xf0]  ;;  %v3867_v25 = vld [vmem:[%s6636_s0 + $0x18] sm:$0xf]  ;;  %v4340_v34 = vor.u32 %v5724_v15, %v4337_v16 }
  0x5d   :  { %2379 = vmatpush.bf16.msrb.mxu2 %v4916_v26  ;;  %v3859_v21 = vld [vmem:[%s6636_s0 + $0x10] sm:$0xf]  ;;  %v5608_v26 = vld [vmem:[%s6636_s0 + $0x34] sm:$0xf0]  ;;  %v5604_v31 = vld [vmem:[%s6636_s0 + $0x1c] sm:$0xf] }
  0x5e   :  { %2393 = vmatpush.bf16.msrb.mxu3 %v5076_v30  ;;  %v5607_v22 = vld [vmem:[%s6636_s0 + $0x2c] sm:$0xf0]  ;;  %v3861_v30 = vld [vmem:[%s6636_s0 + $0x30] sm:$0xf0]  ;;  %v3869_v32 = vld [vmem:[%s6636_s0 + $0x38] sm:$0xf0]  ;;  %v6481_v43 = vor.u32 %v5608_v26, %v3867_v25 }
  0x5f   :  { %2352 = vmatpush.bf16.msrb.mxu0 %v4576_v36  ;;  %v5639_v35 = vld [vmem:[#allocation2 + $0xf4] sm:$0xf]  ;;  %v3997_v36 = vld [vmem:[#allocation2 + $0x104] sm:$0xf0]  ;;  %v6479_v39 = vor.u32 %v5607_v22, %v3859_v21  ;;  %v6483_v44 = vor.u32 %v5603_v27, %v3861_v30  ;;  %v6485_v47 = vor.u32 %v5604_v31, %v3869_v32  ;;  %v3977_v52 = vld [vmem:[#allocation2 + $0xdc] sm:$0xf0] }
  0x60   :  { %2366 = vmatpush.bf16.msrb.mxu1 %v4736_v37  ;;  %v5679_v37 = vld [vmem:[#allocation2 + $0x234] sm:$0xf]  ;;  %v4157_v40 = vld [vmem:[#allocation2 + $0x244] sm:$0xf0]  ;;  %v5674_v53 = vld [vmem:[#allocation2 + $0x20c] sm:$0xf] }
  0x61   :  { %2380 = vmatpush.bf16.msrb.mxu2 %v4896_v38  ;;  %v4500_v38 = vor.u32 %v5764_v18, %v4497_v20  ;;  %v5719_v41 = vld [vmem:[#allocation2 + $0x374] sm:$0xf]  ;;  %v4477_v46 = vld [vmem:[#allocation2 + $0x4c4] sm:$0xf0]  ;;  %v4160_v49 = vor.u32 %v5679_v37, %v4157_v40  ;;  %v5714_v56 = vld [vmem:[#allocation2 + $0x34c] sm:$0xf] }
  0x62   :  { %2394 = vmatpush.bf16.msrb.mxu3 %v5056_v42  ;;  %v4317_v42 = vld [vmem:[#allocation2 + $0x384] sm:$0xf0]  ;;  %v5759_v45 = vld [vmem:[#allocation2 + $0x4b4] sm:$0xf]  ;;  %v4297_v57 = vld [vmem:[#allocation2 + $0x35c] sm:$0xf0] }
  0x63   :  { %2353 = vmatpush.bf16.msrb.mxu0 %v4556_v48  ;;  %v4000_v48 = vor.u32 %v5639_v35, %v3997_v36  ;;  %v4480_v54 = vor.u32 %v5759_v45, %v4477_v46  ;;  %v5754_v59 = vld [vmem:[#allocation2 + $0x48c] sm:$0xf]  ;;  %v4457_v60 = vld [vmem:[#allocation2 + $0x49c] sm:$0xf0]  ;;  %v5629_v0 = vld [vmem:[#allocation2 + $0xa4] sm:$0xf] }
  0x64   :  { %2367 = vmatpush.bf16.msrb.mxu1 %v4716_v50  ;;  %v4320_v50 = vor.u32 %v5719_v41, %v4317_v42  ;;  %v3957_v2 = vld [vmem:[#allocation2 + $0xb4] sm:$0xf0]  ;;  %v5669_v3 = vld [vmem:[#allocation2 + $0x1e4] sm:$0xf]  ;;  %v4460_v4 = vor.u32 %v5754_v59, %v4457_v60  ;;  %v5624_v14 = vld [vmem:[#allocation2 + $0x7c] sm:$0xf] }
  0x65   :  { %2381 = vmatpush.bf16.msrb.mxu2 %v4876_v51  ;;  %v5634_v51 = vld [vmem:[#allocation2 + $0xcc] sm:$0xf]  ;;  %v4277_v7 = vld [vmem:[#allocation2 + $0x334] sm:$0xf0]  ;;  %v5749_v8 = vld [vmem:[#allocation2 + $0x464] sm:$0xf] }
  0x66   :  { %2395 = vmatpush.bf16.msrb.mxu3 %v5036_v55  ;;  %v4137_v55 = vld [vmem:[#allocation2 + $0x21c] sm:$0xf0]  ;;  %v3980_v61 = vor.u32 %v5634_v51, %v3977_v52  ;;  %v4437_v9 = vld [vmem:[#allocation2 + $0x474] sm:$0xf0]  ;;  %v3937_v15 = vld [vmem:[#allocation2 + $0x8c] sm:$0xf0] }
  0x67   :  { %2354 = vmatpush.bf16.msrb.mxu0 %v4536_v63  ;;  %v4140_v62 = vor.u32 %v5674_v53, %v4137_v55  ;;  %v4300_v63 = vor.u32 %v5714_v56, %v4297_v57  ;;  %v5664_v16 = vld [vmem:[#allocation2 + $0x1bc] sm:$0xf]  ;;  %v4440_v18 = vor.u32 %v5749_v8, %v4437_v9  ;;  %v4257_v21 = vld [vmem:[#allocation2 + $0x30c] sm:$0xf0]  ;;  %v5619_v27 = vld [vmem:[#allocation2 + $0x54] sm:$0xf] }
  0x68   :  { %2368 = vmatpush.bf16.msrb.mxu1 %v4696_v5  ;;  %v4117_v5 = vld [vmem:[#allocation2 + $0x1f4] sm:$0xf0]  ;;  %v5704_v20 = vld [vmem:[#allocation2 + $0x2fc] sm:$0xf]  ;;  %v4077_v31 = vld [vmem:[#allocation2 + $0x1a4] sm:$0xf0] }
  0x69   :  { %2382 = vmatpush.bf16.msrb.mxu2 %v4856_v6  ;;  %v5709_v6 = vld [vmem:[#allocation2 + $0x324] sm:$0xf]  ;;  %v4120_v12 = vor.u32 %v5669_v3, %v4117_v5  ;;  %v5744_v22 = vld [vmem:[#allocation2 + $0x43c] sm:$0xf]  ;;  %v4260_v26 = vor.u32 %v5704_v20, %v4257_v21  ;;  %v5699_v32 = vld [vmem:[#allocation2 + $0x2d4] sm:$0xf] }
  0x6a   :  { %2396 = vmatpush.bf16.msrb.mxu3 %v5016_v11  ;;  %v3960_v11 = vor.u32 %v5629_v0, %v3957_v2  ;;  %v4280_v13 = vor.u32 %v5709_v6, %v4277_v7  ;;  %v4397_v35 = vld [vmem:[#allocation2 + $0x424] sm:$0xf0]  ;;  %v5614_v40 = vld [vmem:[#allocation2 + $0x2c] sm:$0xf]  ;;  %v3897_v41 = vld [vmem:[#allocation2 + $0x3c] sm:$0xf0] }
  0x6b   :  { %2355 = vmatpush.bf16.msrb.mxu0 %v4516_v19  ;;  %v4097_v19 = vld [vmem:[#allocation2 + $0x1cc] sm:$0xf0]  ;;  %v5654_v42 = vld [vmem:[#allocation2 + $0x16c] sm:$0xf]  ;;  %v4057_v46 = vld [vmem:[#allocation2 + $0x17c] sm:$0xf0]  ;;  %v3900_v52 = vor.u32 %v5614_v40, %v3897_v41 }
  0x6c   :  { %2369 = vmatpush.bf16.msrb.mxu1 %v4676_v23  ;;  %v4417_v23 = vld [vmem:[#allocation2 + $0x44c] sm:$0xf0]  ;;  %v4100_v25 = vor.u32 %v5664_v16, %v4097_v19  ;;  %v4377_v51 = vld [vmem:[#allocation2 + $0x3fc] sm:$0xf0]  ;;  %v5609_v53 = vld [vmem:[#allocation2 + $0x4] sm:$0xf]  ;;  %v4060_v55 = vor.u32 %v5654_v42, %v4057_v46 }
  0x6d   :  { %2383 = vmatpush.bf16.msrb.mxu2 %v4836_v24  ;;  %v3940_v24 = vor.u32 %v5624_v14, %v3937_v15  ;;  %v4420_v30 = vor.u32 %v5744_v22, %v4417_v23  ;;  %v5649_v57 = vld [vmem:[#allocation2 + $0x144] sm:$0xf]  ;;  %v4037_v59 = vld [vmem:[#allocation2 + $0x154] sm:$0xf0]  ;;  %v5804_v2 = vld [vmem:[#allocation2 + $0x61c] sm:$0xf] }
  0x6e   :  { %2397 = vmatpush.bf16.msrb.mxu3 %v4996_v28  ;;  %2356 = vmatmul.bf16.vlgmr.msrb.gmra.mxu0 %v6479_v39  ;;  %v3917_v28 = vld [vmem:[#allocation2 + $0x64] sm:$0xf0]  ;;  %v5689_v60 = vld [vmem:[#allocation2 + $0x284] sm:$0xf]  ;;  %v4357_v0 = vld [vmem:[#allocation2 + $0x3d4] sm:$0xf0]  ;;  %v4040_v9 = vor.u32 %v5649_v57, %v4037_v59 }
  0x6f   :  { %2404 = vmatpush.bf16.msra.mxu0 %v4020_v29  ;;  %2370 = vmatmul.bf16.vlgmr.msrb.gmra.mxu1 %v6483_v44  ;;  %v5659_v29 = vld [vmem:[#allocation2 + $0x194] sm:$0xf]  ;;  %v3920_v36 = vor.u32 %v5619_v27, %v3917_v28  ;;  %v4657_v3 = vld [vmem:[#allocation2 + $0x62c] sm:$0xf0]  ;;  %v5884_v7 = vld [vmem:[#allocation2 + $0x89c] sm:$0xf] }
  0x70   :  { %2418 = vmatpush.bf16.msra.mxu1 %v4180_v33  ;;  %2384 = vmatmul.bf16.vlgmr.msrb.gmra.mxu2 %v6481_v43  ;;  %v4237_v33 = vld [vmem:[#allocation2 + $0x2e4] sm:$0xf0]  ;;  %v4080_v37 = vor.u32 %v5659_v29, %v4077_v31  ;;  %v4817_v6 = vld [vmem:[#allocation2 + $0x76c] sm:$0xf0]  ;;  %v4660_v15 = vor.u32 %v5804_v2, %v4657_v3  ;;  %v5799_v19 = vld [vmem:[#allocation2 + $0x5f4] sm:$0xf] }
  0x71   :  { %2432 = vmatpush.bf16.msra.mxu2 %v4340_v34  ;;  %2398 = vmatmul.bf16.vlgmr.msrb.gmra.mxu3 %v6485_v47  ;;  %v5739_v34 = vld [vmem:[#allocation2 + $0x414] sm:$0xf]  ;;  %v4977_v8 = vld [vmem:[#allocation2 + $0x8ac] sm:$0xf0]  ;;  %v4637_v20 = vld [vmem:[#allocation2 + $0x604] sm:$0xf0] }
  0x72   :  { %2446 = vmatpush.bf16.msra.mxu3 %v4500_v38  ;;  %v4240_v38 = vor.u32 %v5699_v32, %v4237_v33  ;;  %v4400_v45 = vor.u32 %v5739_v34, %v4397_v35  ;;  %v5839_v21 = vld [vmem:[#allocation2 + $0x734] sm:$0xf]  ;;  %v4797_v23 = vld [vmem:[#allocation2 + $0x744] sm:$0xf0]  ;;  %v4640_v28 = vor.u32 %v5799_v19, %v4637_v20  ;;  %v5794_v31 = vld [vmem:[#allocation2 + $0x5cc] sm:$0xf] }
  0x73   :  { %2405 = vmatpush.bf16.msra.mxu0 %v4000_v48  ;;  %v5694_v48 = vld [vmem:[#allocation2 + $0x2ac] sm:$0xf]  ;;  %v5117_v27 = vld [vmem:[#allocation2 + $0x9c4] sm:$0xf0]  ;;  %v4800_v29 = vor.u32 %v5839_v21, %v4797_v23  ;;  %v4617_v32 = vld [vmem:[#allocation2 + $0x5dc] sm:$0xf0] }
  0x74   :  { %2419 = vmatpush.bf16.msra.mxu1 %v4160_v49  ;;  %v4217_v49 = vld [vmem:[#allocation2 + $0x2bc] sm:$0xf0]  ;;  %v5834_v33 = vld [vmem:[#allocation2 + $0x70c] sm:$0xf]  ;;  %v4620_v41 = vor.u32 %v5794_v31, %v4617_v32  ;;  %v5789_v46 = vld [vmem:[#allocation2 + $0x5a4] sm:$0xf] }
  0x75   :  { %2433 = vmatpush.bf16.msra.mxu2 %v4320_v50  ;;  %v5734_v50 = vld [vmem:[#allocation2 + $0x3ec] sm:$0xf]  ;;  %v4220_v56 = vor.u32 %v5694_v48, %v4217_v49  ;;  %v4777_v35 = vld [vmem:[#allocation2 + $0x71c] sm:$0xf0]  ;;  %v4597_v48 = vld [vmem:[#allocation2 + $0x5b4] sm:$0xf0] }
  0x76   :  { %2447 = vmatpush.bf16.msra.mxu3 %v4480_v54  ;;  %v3877_v54 = vld [vmem:[#allocation2 + $0x14] sm:$0xf0]  ;;  %v5097_v40 = vld [vmem:[#allocation2 + $0x99c] sm:$0xf0]  ;;  %v4780_v42 = vor.u32 %v5834_v33, %v4777_v35  ;;  %v5829_v49 = vld [vmem:[#allocation2 + $0x6e4] sm:$0xf] }
  0x77   :  { %2406 = vmatpush.bf16.msra.mxu0 %v3980_v61  ;;  %v4380_v61 = vor.u32 %v5734_v50, %v4377_v51  ;;  %v3880_v5 = vor.u32 %v5609_v53, %v3877_v54  ;;  %v4757_v51 = vld [vmem:[#allocation2 + $0x6f4] sm:$0xf0]  ;;  %v5909_v54 = vld [vmem:[#allocation2 + $0x964] sm:$0xf]  ;;  %v5864_v2 = vld [vmem:[#allocation2 + $0x7fc] sm:$0xf] }
  0x78   :  { %2420 = vmatpush.bf16.msra.mxu1 %v4140_v62  ;;  %v4197_v62 = vld [vmem:[#allocation2 + $0x294] sm:$0xf0]  ;;  %v4760_v57 = vor.u32 %v5829_v49, %v4757_v51  ;;  %v4897_v3 = vld [vmem:[#allocation2 + $0x80c] sm:$0xf0]  ;;  %v5037_v19 = vld [vmem:[#allocation2 + $0x924] sm:$0xf0] }
  0x79   :  { %2434 = vmatpush.bf16.msra.mxu2 %v4300_v63  ;;  %v5729_v63 = vld [vmem:[#allocation2 + $0x3c4] sm:$0xf]  ;;  %v4917_v53 = vld [vmem:[#allocation2 + $0x834] sm:$0xf0]  ;;  %v5774_v23 = vld [vmem:[#allocation2 + $0x52c] sm:$0xf] }
  0x7a   :  { %2448 = vmatpush.bf16.msra.mxu3 %v4460_v4  ;;  %v5844_v4 = vld [vmem:[#allocation2 + $0x75c] sm:$0xf]  ;;  %v4360_v14 = vor.u32 %v5729_v63, %v4357_v0  ;;  %v4737_v0 = vld [vmem:[#allocation2 + $0x6cc] sm:$0xf0]  ;;  %v5017_v31 = vld [vmem:[#allocation2 + $0x8fc] sm:$0xf0] }
  0x7b   :  { %2407 = vmatpush.bf16.msra.mxu0 %v3960_v11  ;;  %v4200_v11 = vor.u32 %v5689_v60, %v4197_v62  ;;  %v4820_v16 = vor.u32 %v5844_v4, %v4817_v6  ;;  %v5784_v60 = vld [vmem:[#allocation2 + $0x57c] sm:$0xf]  ;;  %v5769_v33 = vld [vmem:[#allocation2 + $0x504] sm:$0xf]  ;;  %v5647_v49 = vld [vmem:[#allocation2 + $0x130] sm:$0xf0] }
  0x7c   :  { %2421 = vmatpush.bf16.msra.mxu1 %v4120_v12  ;;  %v5924_v12 = vld [vmem:[#allocation2 + $0x9dc] sm:$0xf] }
  0x7d   :  { %2435 = vmatpush.bf16.msra.mxu2 %v4280_v13  ;;  %v5137_v13 = vld [vmem:[#allocation2 + $0x9ec] sm:$0xf0]  ;;  %v5824_v62 = vld [vmem:[#allocation2 + $0x6bc] sm:$0xf] }
  0x7e   :  { %2449 = vmatpush.bf16.msra.mxu3 %v4440_v18  ;;  %v4980_v18 = vor.u32 %v5884_v7, %v4977_v8  ;;  %v5140_v22 = vor.u32 %v5924_v12, %v5137_v13  ;;  %v5904_v4 = vld [vmem:[#allocation2 + $0x93c] sm:$0xf]  ;;  %v4740_v7 = vor.u32 %v5824_v62, %v4737_v0  ;;  %v4900_v8 = vor.u32 %v5864_v2, %v4897_v3  ;;  %v5819_v12 = vld [vmem:[#allocation2 + $0x694] sm:$0xf]  ;;  %v4003_v0 = vld [vmem:[#allocation2 + $0xf8] sm:$0xf] }
  0x7f   :  { %2408 = vmatpush.bf16.msra.mxu0 %v3940_v24  ;;  %v5879_v24 = vld [vmem:[#allocation2 + $0x874] sm:$0xf]  ;;  %v5642_v2 = vld [vmem:[#allocation2 + $0x108] sm:$0xf0]  ;;  %v4163_v3 = vld [vmem:[#allocation2 + $0x238] sm:$0xf] }
  0x80   :  { %2422 = vmatpush.bf16.msra.mxu1 %v4100_v25  ;;  %v4957_v25 = vld [vmem:[#allocation2 + $0x884] sm:$0xf0] }
  0x81   :  { %2436 = vmatpush.bf16.msra.mxu2 %v4260_v26  ;;  %v5919_v26 = vld [vmem:[#allocation2 + $0x9b4] sm:$0xf] }
  0x82   :  { %2450 = vmatpush.bf16.msra.mxu3 %v4420_v30  ;;  %v4960_v30 = vor.u32 %v5879_v24, %v4957_v25  ;;  %v5120_v34 = vor.u32 %v5919_v26, %v5117_v27  ;;  %v4537_v24 = vld [vmem:[#allocation2 + $0x53c] sm:$0xf0]  ;;  %v5814_v25 = vld [vmem:[#allocation2 + $0x66c] sm:$0xf] }
  0x83   :  { %2409 = vmatpush.bf16.msra.mxu0 %v3920_v36  ;;  %v5874_v36 = vld [vmem:[#allocation2 + $0x84c] sm:$0xf]  ;;  %v4697_v27 = vld [vmem:[#allocation2 + $0x67c] sm:$0xf0]  ;;  %v4540_v32 = vor.u32 %v5774_v23, %v4537_v24  ;;  %v5757_v23 = vld [vmem:[#allocation2 + $0x4a0] sm:$0xf0] }
  0x84   :  { %2423 = vmatpush.bf16.msra.mxu1 %v4080_v37  ;;  %v4937_v37 = vld [vmem:[#allocation2 + $0x85c] sm:$0xf0]  ;;  %v4700_v35 = vor.u32 %v5814_v25, %v4697_v27  ;;  %v3963_v27 = vld [vmem:[#allocation2 + $0xa8] sm:$0xf] }
  0x85   :  { %2437 = vmatpush.bf16.msra.mxu2 %v4240_v38  ;;  %v5914_v38 = vld [vmem:[#allocation2 + $0x98c] sm:$0xf] }
  0x86   :  { %2451 = vmatpush.bf16.msra.mxu3 %v4400_v45  ;;  %v4940_v45 = vor.u32 %v5874_v36, %v4937_v37  ;;  %v5100_v50 = vor.u32 %v5914_v38, %v5097_v40  ;;  %v5809_v37 = vld [vmem:[#allocation2 + $0x644] sm:$0xf]  ;;  %v4677_v38 = vld [vmem:[#allocation2 + $0x654] sm:$0xf0] }
  0x87   :  { %2410 = vmatpush.bf16.msra.mxu0 %v3900_v52  ;;  %v5869_v52 = vld [vmem:[#allocation2 + $0x824] sm:$0xf] }
  0x88   :  { %2424 = vmatpush.bf16.msra.mxu1 %v4060_v55  ;;  %v5077_v55 = vld [vmem:[#allocation2 + $0x974] sm:$0xf0]  ;;  %v4920_v59 = vor.u32 %v5869_v52, %v4917_v53  ;;  %v5849_v40 = vld [vmem:[#allocation2 + $0x784] sm:$0xf]  ;;  %v5687_v52 = vld [vmem:[#allocation2 + $0x270] sm:$0xf0] }
  0x89   :  { %2438 = vmatpush.bf16.msra.mxu2 %v4220_v56  ;;  %v4600_v56 = vor.u32 %v5789_v46, %v4597_v48  ;;  %v5080_v63 = vor.u32 %v5909_v54, %v5077_v55  ;;  %v4997_v46 = vld [vmem:[#allocation2 + $0x8d4] sm:$0xf0]  ;;  %v4023_v48 = vld [vmem:[#allocation2 + $0x120] sm:$0xf]  ;;  %v5727_v54 = vld [vmem:[#allocation2 + $0x3b0] sm:$0xf0]  ;;  %v4680_v55 = vor.u32 %v5809_v37, %v4677_v38 }
  0x8a   :  { %2452 = vmatpush.bf16.msra.mxu3 %v4380_v61  ;;  %v4577_v61 = vld [vmem:[#allocation2 + $0x58c] sm:$0xf0]  ;;  %v4343_v53 = vld [vmem:[#allocation2 + $0x3a0] sm:$0xf] }
  0x8b   :  { %2411 = vmatpush.bf16.msra.mxu0 %v3880_v5  ;;  %v5057_v5 = vld [vmem:[#allocation2 + $0x94c] sm:$0xf0]  ;;  %v4580_v6 = vor.u32 %v5784_v60, %v4577_v61  ;;  %v4024_v61 = vor.u32 %v5647_v49, %v4023_v48  ;;  %v4263_v48 = vld [vmem:[#allocation2 + $0x300] sm:$0xf]  ;;  %v5707_v49 = vld [vmem:[#allocation2 + $0x310] sm:$0xf0] }
  0x8c   :  { %2425 = vmatpush.bf16.msra.mxu1 %v4040_v9  ;;  %v5779_v9 = vld [vmem:[#allocation2 + $0x554] sm:$0xf]  ;;  %v5060_v13 = vor.u32 %v5904_v4, %v5057_v5  ;;  %v5682_v5 = vld [vmem:[#allocation2 + $0x248] sm:$0xf0] }
  0x8d   :  { %2439 = vmatpush.bf16.msra.mxu2 %v4200_v11  ;;  %v4557_v11 = vld [vmem:[#allocation2 + $0x564] sm:$0xf0] }
  0x8e   :  { %2453 = vmatpush.bf16.msra.mxu3 %v4360_v14  ;;  %2412 = vmatmul.bf16.vlgmr.msra.gmra.mxu0 %v6428_v58  ;;  %v4717_v14 = vld [vmem:[#allocation2 + $0x6a4] sm:$0xf0]  ;;  %v4560_v20 = vor.u32 %v5779_v9, %v4557_v11  ;;  %v5762_v9 = vld [vmem:[#allocation2 + $0x4c8] sm:$0xf0]  ;;  %v4004_v11 = vor.u32 %v5642_v2, %v4003_v0 }
  0x8f   :  { %2460 = vmatpush.bf16.msrb.mxu0 %v4660_v15  ;;  %2426 = vmatmul.bf16.vlgmr.msra.gmra.mxu1 %v6446_v10  ;;  %v5859_v15 = vld [vmem:[#allocation2 + $0x7d4] sm:$0xf]  ;;  %v4720_v21 = vor.u32 %v5819_v12, %v4717_v14  ;;  %v4164_v12 = vor.u32 %v5682_v5, %v4163_v3  ;;  %v3983_v14 = vld [vmem:[#allocation2 + $0xd0] sm:$0xf]  ;;  %v5742_v0 = vld [vmem:[#allocation2 + $0x428] sm:$0xf0] }
  0x90   :  { %2474 = vmatpush.bf16.msrb.mxu1 %v4820_v16  ;;  %2440 = vmatmul.bf16.vlgmr.msra.gmra.mxu2 %v6433_v1  ;;  %v4877_v16 = vld [vmem:[#allocation2 + $0x7e4] sm:$0xf0]  ;;  %v3903_v5 = vld [vmem:[#allocation2 + $0x30] sm:$0xf] }
  0x91   :  { %2488 = vmatpush.bf16.msrb.mxu2 %v4980_v18  ;;  %2454 = vmatmul.bf16.vlgmr.msra.gmra.mxu3 %v6451_v17  ;;  %v5899_v18 = vld [vmem:[#allocation2 + $0x914] sm:$0xf] }
  0x92   :  { %2502 = vmatpush.bf16.msrb.mxu3 %v5140_v22  ;;  %v4880_v22 = vor.u32 %v5859_v15, %v4877_v16  ;;  %v5040_v26 = vor.u32 %v5899_v18, %v5037_v19  ;;  %v5637_v15 = vld [vmem:[#allocation2 + $0xe0] sm:$0xf0]  ;;  %v4143_v16 = vld [vmem:[#allocation2 + $0x210] sm:$0xf] }
  0x93   :  { %2461 = vmatpush.bf16.msrb.mxu0 %v4640_v28  ;;  %v5854_v28 = vld [vmem:[#allocation2 + $0x7ac] sm:$0xf]  ;;  %v5677_v19 = vld [vmem:[#allocation2 + $0x220] sm:$0xf0]  ;;  %v3984_v24 = vor.u32 %v5637_v15, %v3983_v14 }
  0x94   :  { %2475 = vmatpush.bf16.msrb.mxu1 %v4800_v29  ;;  %v4857_v29 = vld [vmem:[#allocation2 + $0x7bc] sm:$0xf0]  ;;  %v4144_v25 = vor.u32 %v5677_v19, %v4143_v16  ;;  %v5737_v14 = vld [vmem:[#allocation2 + $0x400] sm:$0xf0]  ;;  %v3883_v16 = vld [vmem:[#allocation2 + $0x8] sm:$0xf] }
  0x95   :  { %2489 = vmatpush.bf16.msrb.mxu2 %v4960_v30  ;;  %v5894_v30 = vld [vmem:[#allocation2 + $0x8ec] sm:$0xf]  ;;  %v4860_v36 = vor.u32 %v5854_v28, %v4857_v29  ;;  %v5632_v28 = vld [vmem:[#allocation2 + $0xb8] sm:$0xf0]  ;;  %v4123_v29 = vld [vmem:[#allocation2 + $0x1e8] sm:$0xf] }
  0x96   :  { %2503 = vmatpush.bf16.msrb.mxu3 %v5120_v34  ;;  %v4517_v34 = vld [vmem:[#allocation2 + $0x514] sm:$0xf0] }
  0x97   :  { %2462 = vmatpush.bf16.msrb.mxu0 %v4620_v41  ;;  %v5020_v41 = vor.u32 %v5894_v30, %v5017_v31  ;;  %v4520_v51 = vor.u32 %v5769_v33, %v4517_v34  ;;  %v5672_v31 = vld [vmem:[#allocation2 + $0x1f8] sm:$0xf0]  ;;  %v4443_v34 = vld [vmem:[#allocation2 + $0x468] sm:$0xf] }
  0x98   :  { %2476 = vmatpush.bf16.msrb.mxu1 %v4780_v42  ;;  %v4837_v42 = vld [vmem:[#allocation2 + $0x794] sm:$0xf0]  ;;  %v5712_v33 = vld [vmem:[#allocation2 + $0x338] sm:$0xf0]  ;;  %v4124_v37 = vor.u32 %v5672_v31, %v4123_v29  ;;  %v5807_v29 = vld [vmem:[#allocation2 + $0x630] sm:$0xf0] }
  0x99   :  { %2490 = vmatpush.bf16.msrb.mxu2 %v4940_v45  ;;  %v5889_v45 = vld [vmem:[#allocation2 + $0x8c4] sm:$0xf] }
  0x9a   :  { %2504 = vmatpush.bf16.msrb.mxu3 %v5100_v50  ;;  %v4183_v50 = vld [vmem:[#allocation2 + $0x260] sm:$0xf]  ;;  %v5000_v60 = vor.u32 %v5889_v45, %v4997_v46  ;;  %v5667_v46 = vld [vmem:[#allocation2 + $0x1d0] sm:$0xf0] }
  0x9b   :  { %2463 = vmatpush.bf16.msrb.mxu0 %v4600_v56  ;;  %v4840_v56 = vor.u32 %v5849_v40, %v4837_v42  ;;  %v4184_v62 = vor.u32 %v5687_v52, %v4183_v50  ;;  %v3943_v40 = vld [vmem:[#allocation2 + $0x80] sm:$0xf] }
  0x9c   :  { %2477 = vmatpush.bf16.msrb.mxu1 %v4760_v57  ;;  %v4503_v57 = vld [vmem:[#allocation2 + $0x4e0] sm:$0xf] }
  0x9d   :  { %2491 = vmatpush.bf16.msrb.mxu2 %v4920_v59  ;;  %v5767_v59 = vld [vmem:[#allocation2 + $0x4f0] sm:$0xf0]  ;;  %v4103_v42 = vld [vmem:[#allocation2 + $0x1c0] sm:$0xf] }
  0x9e   :  { %2505 = vmatpush.bf16.msrb.mxu3 %v5080_v63  ;;  %v4344_v63 = vor.u32 %v5727_v54, %v4343_v53  ;;  %v4504_v4 = vor.u32 %v5767_v59, %v4503_v57  ;;  %v4423_v50 = vld [vmem:[#allocation2 + $0x440] sm:$0xf]  ;;  %v4104_v53 = vor.u32 %v5667_v46, %v4103_v42  ;;  %v4264_v54 = vor.u32 %v5707_v49, %v4263_v48  ;;  %v4083_v57 = vld [vmem:[#allocation2 + $0x198] sm:$0xf]  ;;  %v5802_v48 = vld [vmem:[#allocation2 + $0x608] sm:$0xf0] }
  0x9f   :  { %2464 = vmatpush.bf16.msrb.mxu0 %v4580_v6  ;;  %v4323_v6 = vld [vmem:[#allocation2 + $0x378] sm:$0xf] }
  0xa0   :  { %2478 = vmatpush.bf16.msrb.mxu1 %v4740_v7  ;;  %v5722_v7 = vld [vmem:[#allocation2 + $0x388] sm:$0xf0]  ;;  %v4643_v46 = vld [vmem:[#allocation2 + $0x5f8] sm:$0xf] }
  0xa1   :  { %2492 = vmatpush.bf16.msrb.mxu2 %v4900_v8  ;;  %v4483_v8 = vld [vmem:[#allocation2 + $0x4b8] sm:$0xf] }
  0xa2   :  { %2506 = vmatpush.bf16.msrb.mxu3 %v5060_v13  ;;  %v4324_v13 = vor.u32 %v5722_v7, %v4323_v6  ;;  %v4484_v18 = vor.u32 %v5762_v9, %v4483_v8  ;;  %v5617_v6 = vld [vmem:[#allocation2 + $0x40] sm:$0xf0]  ;;  %v4063_v7 = vld [vmem:[#allocation2 + $0x170] sm:$0xf]  ;;  %v4803_v49 = vld [vmem:[#allocation2 + $0x738] sm:$0xf] }
  0xa3   :  { %2465 = vmatpush.bf16.msrb.mxu0 %v4560_v20  ;;  %v4303_v20 = vld [vmem:[#allocation2 + $0x350] sm:$0xf]  ;;  %v5657_v9 = vld [vmem:[#allocation2 + $0x180] sm:$0xf0]  ;;  %v3904_v15 = vor.u32 %v5617_v6, %v3903_v5 }
  0xa4   :  { %2479 = vmatpush.bf16.msrb.mxu1 %v4720_v21  ;;  %v5717_v21 = vld [vmem:[#allocation2 + $0x360] sm:$0xf0]  ;;  %v4064_v19 = vor.u32 %v5657_v9, %v4063_v7  ;;  %v5103_v5 = vld [vmem:[#allocation2 + $0x990] sm:$0xf] }
  0xa5   :  { %2493 = vmatpush.bf16.msrb.mxu2 %v4880_v22  ;;  %v4463_v22 = vld [vmem:[#allocation2 + $0x490] sm:$0xf]  ;;  %v5917_v6 = vld [vmem:[#allocation2 + $0x9a0] sm:$0xf0] }
  0xa6   :  { %2507 = vmatpush.bf16.msrb.mxu3 %v5040_v26  ;;  %v4304_v26 = vor.u32 %v5717_v21, %v4303_v20  ;;  %v4464_v30 = vor.u32 %v5757_v23, %v4463_v22  ;;  %v4043_v21 = vld [vmem:[#allocation2 + $0x148] sm:$0xf]  ;;  %v5652_v22 = vld [vmem:[#allocation2 + $0x158] sm:$0xf0] }
  0xa7   :  { %2466 = vmatpush.bf16.msrb.mxu0 %v4540_v32  ;;  %v4283_v32 = vld [vmem:[#allocation2 + $0x328] sm:$0xf] }
  0xa8   :  { %2480 = vmatpush.bf16.msrb.mxu1 %v4700_v35  ;;  %v5752_v35 = vld [vmem:[#allocation2 + $0x478] sm:$0xf0]  ;;  %v4284_v38 = vor.u32 %v5712_v33, %v4283_v32  ;;  %v4203_v23 = vld [vmem:[#allocation2 + $0x288] sm:$0xf]  ;;  %v5847_v32 = vld [vmem:[#allocation2 + $0x770] sm:$0xf0] }
  0xa9   :  { %2494 = vmatpush.bf16.msrb.mxu2 %v4860_v36  ;;  %v3964_v36 = vor.u32 %v5632_v28, %v3963_v27  ;;  %v4444_v45 = vor.u32 %v5752_v35, %v4443_v34  ;;  %v5732_v27 = vld [vmem:[#allocation2 + $0x3d8] sm:$0xf0]  ;;  %v4663_v28 = vld [vmem:[#allocation2 + $0x620] sm:$0xf]  ;;  %v5887_v34 = vld [vmem:[#allocation2 + $0x8b0] sm:$0xf0]  ;;  %v4044_v35 = vor.u32 %v5652_v22, %v4043_v21 }
  0xaa   :  { %2508 = vmatpush.bf16.msrb.mxu3 %v5020_v41  ;;  %v5627_v41 = vld [vmem:[#allocation2 + $0x90] sm:$0xf0]  ;;  %v4983_v33 = vld [vmem:[#allocation2 + $0x8a0] sm:$0xf]  ;;  %v5912_v21 = vld [vmem:[#allocation2 + $0x978] sm:$0xf0] }
  0xab   :  { %2467 = vmatpush.bf16.msrb.mxu0 %v4520_v51  ;;  %v5747_v51 = vld [vmem:[#allocation2 + $0x450] sm:$0xf0]  ;;  %v3944_v52 = vor.u32 %v5627_v41, %v3943_v40  ;;  %v4664_v41 = vor.u32 %v5807_v29, %v4663_v28  ;;  %v4743_v29 = vld [vmem:[#allocation2 + $0x6c0] sm:$0xf] }
  0xac   :  { %2481 = vmatpush.bf16.msrb.mxu1 %v4680_v55  ;;  %v3923_v55 = vld [vmem:[#allocation2 + $0x58] sm:$0xf]  ;;  %v4424_v59 = vor.u32 %v5747_v51, %v4423_v50  ;;  %v5842_v51 = vld [vmem:[#allocation2 + $0x748] sm:$0xf0]  ;;  %v5787_v28 = vld [vmem:[#allocation2 + $0x590] sm:$0xf0] }
  0xad   :  { %2495 = vmatpush.bf16.msrb.mxu2 %v4840_v56  ;;  %v5622_v56 = vld [vmem:[#allocation2 + $0x68] sm:$0xf0] }
  0xae   :  { %2509 = vmatpush.bf16.msrb.mxu3 %v5000_v60  ;;  %2468 = vmatmul.bf16.vlgmr.msrb.gmra.mxu0 %v6479_v39  ;;  %v5662_v60 = vld [vmem:[#allocation2 + $0x1a8] sm:$0xf0]  ;;  %v3924_v2 = vor.u32 %v5622_v56, %v3923_v55  ;;  %v4644_v56 = vor.u32 %v5802_v48, %v4643_v46  ;;  %v4723_v46 = vld [vmem:[#allocation2 + $0x698] sm:$0xf] }
  0xaf   :  { %2516 = vmatpush.bf16.msra.mxu0 %v4024_v61  ;;  %2482 = vmatmul.bf16.vlgmr.msrb.gmra.mxu1 %v6483_v44  ;;  %v4243_v61 = vld [vmem:[#allocation2 + $0x2d8] sm:$0xf]  ;;  %v4084_v3 = vor.u32 %v5662_v60, %v4083_v57  ;;  %v5922_v55 = vld [vmem:[#allocation2 + $0x9c8] sm:$0xf0]  ;;  %v4623_v57 = vld [vmem:[#allocation2 + $0x5d0] sm:$0xf] }
  0xb0   :  { %2530 = vmatpush.bf16.msra.mxu1 %v4184_v62  ;;  %2496 = vmatmul.bf16.vlgmr.msrb.gmra.mxu2 %v6481_v43  ;;  %v5702_v62 = vld [vmem:[#allocation2 + $0x2e8] sm:$0xf0] }
  0xb1   :  { %2544 = vmatpush.bf16.msra.mxu2 %v4344_v63  ;;  %2510 = vmatmul.bf16.vlgmr.msrb.gmra.mxu3 %v6485_v47  ;;  %v4403_v63 = vld [vmem:[#allocation2 + $0x418] sm:$0xf] }
  0xb2   :  { %2558 = vmatpush.bf16.msra.mxu3 %v4504_v4  ;;  %v4244_v4 = vor.u32 %v5702_v62, %v4243_v61  ;;  %v4404_v8 = vor.u32 %v5742_v0, %v4403_v63  ;;  %v5797_v61 = vld [vmem:[#allocation2 + $0x5e0] sm:$0xf0]  ;;  %v4783_v62 = vld [vmem:[#allocation2 + $0x710] sm:$0xf] }
  0xb3   :  { %2517 = vmatpush.bf16.msra.mxu0 %v4004_v11  ;;  %v4223_v11 = vld [vmem:[#allocation2 + $0x2b0] sm:$0xf]  ;;  %v6499_v63 = vld [vmem:[#allocation4] sm:$0x1f]  ;;  %v4624_v7 = vor.u32 %v5797_v61, %v4623_v57 }
  0xb4   :  { %2531 = vmatpush.bf16.msra.mxu1 %v4164_v12  ;;  %v5697_v12 = vld [vmem:[#allocation2 + $0x2c0] sm:$0xf0] }
  0xb5   :  { %2545 = vmatpush.bf16.msra.mxu2 %v4324_v13  ;;  %v4383_v13 = vld [vmem:[#allocation2 + $0x3f0] sm:$0xf]  ;;  %v4224_v20 = vor.u32 %v5697_v12, %v4223_v11  ;;  %v4603_v12 = vld [vmem:[#allocation2 + $0x5a8] sm:$0xf]  ;;  %v5777_v61 = vld [vmem:[#allocation2 + $0x540] sm:$0xf0] }
  0xb6   :  { %2559 = vmatpush.bf16.msra.mxu3 %v4484_v18  ;;  %v5612_v18 = vld [vmem:[#allocation2 + $0x18] sm:$0xf0] }
  0xb7   :  { %2518 = vmatpush.bf16.msra.mxu0 %v3984_v24  ;;  %v4384_v24 = vor.u32 %v5737_v14, %v4383_v13  ;;  %v3884_v31 = vor.u32 %v5612_v18, %v3883_v16  ;;  %v5792_v13 = vld [vmem:[#allocation2 + $0x5b8] sm:$0xf0]  ;;  %v4763_v14 = vld [vmem:[#allocation2 + $0x6e8] sm:$0xf] }
  0xb8   :  { %2532 = vmatpush.bf16.msra.mxu1 %v4144_v25  ;;  %v5692_v25 = vld [vmem:[#allocation2 + $0x298] sm:$0xf0]  ;;  %v4923_v18 = vld [vmem:[#allocation2 + $0x828] sm:$0xf] }
  0xb9   :  { %2546 = vmatpush.bf16.msra.mxu2 %v4304_v26  ;;  %v4363_v26 = vld [vmem:[#allocation2 + $0x3c8] sm:$0xf]  ;;  %v5832_v16 = vld [vmem:[#allocation2 + $0x6f8] sm:$0xf0] }
  0xba   :  { %2560 = vmatpush.bf16.msra.mxu3 %v4464_v30  ;;  %v4823_v30 = vld [vmem:[#allocation2 + $0x760] sm:$0xf]  ;;  %v4364_v40 = vor.u32 %v5732_v27, %v4363_v26 }
  0xbb   :  { %2519 = vmatpush.bf16.msra.mxu0 %v3964_v36  ;;  %v4204_v36 = vor.u32 %v5692_v25, %v4203_v23  ;;  %v4824_v42 = vor.u32 %v5847_v32, %v4823_v30  ;;  %v4604_v23 = vor.u32 %v5792_v13, %v4603_v12  ;;  %v4764_v25 = vor.u32 %v5832_v16, %v4763_v14  ;;  %v4583_v27 = vld [vmem:[#allocation2 + $0x580] sm:$0xf]  ;;  %v4523_v12 = vld [vmem:[#allocation2 + $0x508] sm:$0xf]  ;;  %v5772_v13 = vld [vmem:[#allocation2 + $0x518] sm:$0xf0] }
  0xbc   :  { %2533 = vmatpush.bf16.msra.mxu1 %v4124_v37  ;;  %v5143_v37 = vld [vmem:[#allocation2 + $0x9e0] sm:$0xf]  ;;  %v4683_v16 = vld [vmem:[#allocation2 + $0x648] sm:$0xf] }
  0xbd   :  { %2547 = vmatpush.bf16.msra.mxu2 %v4284_v38  ;;  %v5927_v38 = vld [vmem:[#allocation2 + $0x9f0] sm:$0xf0]  ;;  %v4903_v32 = vld [vmem:[#allocation2 + $0x800] sm:$0xf] }
  0xbe   :  { %2561 = vmatpush.bf16.msra.mxu3 %v4444_v45  ;;  %v4984_v45 = vor.u32 %v5887_v34, %v4983_v33  ;;  %v5144_v50 = vor.u32 %v5927_v38, %v5143_v37  ;;  %v5867_v33 = vld [vmem:[#allocation2 + $0x810] sm:$0xf0]  ;;  %v5063_v34 = vld [vmem:[#allocation2 + $0x940] sm:$0xf]  ;;  %v4584_v37 = vor.u32 %v5787_v28, %v4583_v27  ;;  %v4524_v27 = vor.u32 %v5772_v13, %v4523_v12  ;;  %v4185_v28 = vld [vmem:[#allocation2 + $0x274] sm:$0xf0] }
  0xbf   :  { %2520 = vmatpush.bf16.msra.mxu0 %v3944_v52  ;;  %v4963_v52 = vld [vmem:[#allocation2 + $0x878] sm:$0xf]  ;;  %v5630_v12 = vld [vmem:[#allocation2 + $0xac] sm:$0xf]  ;;  %v3965_v13 = vld [vmem:[#allocation2 + $0xbc] sm:$0xf0] }
  0xc0   :  { %2534 = vmatpush.bf16.msra.mxu1 %v4104_v53  ;;  %v5882_v53 = vld [vmem:[#allocation2 + $0x888] sm:$0xf0] }
  0xc1   :  { %2548 = vmatpush.bf16.msra.mxu2 %v4264_v54  ;;  %v5123_v54 = vld [vmem:[#allocation2 + $0x9b8] sm:$0xf]  ;;  %v4964_v60 = vor.u32 %v5882_v53, %v4963_v52 }
  0xc2   :  { %2562 = vmatpush.bf16.msra.mxu3 %v4424_v59  ;;  %v4804_v59 = vor.u32 %v5842_v51, %v4803_v49  ;;  %v5124_v0 = vor.u32 %v5922_v55, %v5123_v54  ;;  %v5822_v49 = vld [vmem:[#allocation2 + $0x6a8] sm:$0xf0]  ;;  %v5043_v53 = vld [vmem:[#allocation2 + $0x918] sm:$0xf] }
  0xc3   :  { %2521 = vmatpush.bf16.msra.mxu0 %v3924_v2  ;;  %v5837_v2 = vld [vmem:[#allocation2 + $0x720] sm:$0xf0]  ;;  %v5862_v51 = vld [vmem:[#allocation2 + $0x7e8] sm:$0xf0]  ;;  %v4724_v57 = vor.u32 %v5822_v49, %v4723_v46  ;;  %v5720_v49 = vld [vmem:[#allocation2 + $0x37c] sm:$0xf] }
  0xc4   :  { %2535 = vmatpush.bf16.msra.mxu1 %v4084_v3  ;;  %v4943_v3 = vld [vmem:[#allocation2 + $0x850] sm:$0xf]  ;;  %v4784_v9 = vor.u32 %v5837_v2, %v4783_v62  ;;  %v5902_v54 = vld [vmem:[#allocation2 + $0x928] sm:$0xf0]  ;;  %v5817_v2 = vld [vmem:[#allocation2 + $0x680] sm:$0xf0] }
  0xc5   :  { %2549 = vmatpush.bf16.msra.mxu2 %v4244_v4  ;;  %v5877_v4 = vld [vmem:[#allocation2 + $0x860] sm:$0xf0]  ;;  %v4703_v62 = vld [vmem:[#allocation2 + $0x670] sm:$0xf] }
  0xc6   :  { %2563 = vmatpush.bf16.msra.mxu3 %v4404_v8  ;;  %v578_v8 = vperm.slane %v6499_v63, 0  ;;  %v4944_v11 = vor.u32 %v5877_v4, %v4943_v3  ;;  %v4863_v3 = vld [vmem:[#allocation2 + $0x7b0] sm:$0xf]  ;;  %v5857_v4 = vld [vmem:[#allocation2 + $0x7c0] sm:$0xf0]  ;;  %v4704_v14 = vor.u32 %v5817_v2, %v4703_v62 }
  0xc7   :  { %2522 = vmatpush.bf16.msra.mxu0 %v3904_v15  ;;  %v5104_v15 = vor.u32 %v5917_v6, %v5103_v5  ;;  %v5023_v6 = vld [vmem:[#allocation2 + $0x8f0] sm:$0xf]  ;;  %v4145_v62 = vld [vmem:[#allocation2 + $0x224] sm:$0xf0] }
  0xc8   :  { %2536 = vmatpush.bf16.msra.mxu1 %v4064_v19  ;;  %v5872_v19 = vld [vmem:[#allocation2 + $0x838] sm:$0xf0]  ;;  %v4305_v2 = vld [vmem:[#allocation2 + $0x364] sm:$0xf0] }
  0xc9   :  { %2550 = vmatpush.bf16.msra.mxu2 %v4224_v20  ;;  %v5083_v20 = vld [vmem:[#allocation2 + $0x968] sm:$0xf]  ;;  %v4924_v26 = vor.u32 %v5872_v19, %v4923_v18  ;;  %v5812_v18 = vld [vmem:[#allocation2 + $0x658] sm:$0xf0] }
  0xca   :  { %2564 = vmatpush.bf16.msra.mxu3 %v4384_v24  ;;  %v5084_v30 = vor.u32 %v5912_v21, %v5083_v20  ;;  %v4843_v19 = vld [vmem:[#allocation2 + $0x788] sm:$0xf]  ;;  %v5852_v21 = vld [vmem:[#allocation2 + $0x798] sm:$0xf0] }
  0xcb   :  { %2523 = vmatpush.bf16.msra.mxu0 %v3884_v31  ;;  %v2301_v22 = vpop.f32.mrf.mxu0  ;;  %v5827_v31 = vld [vmem:[#allocation2 + $0x6d0] sm:$0xf0] }
  0xcc   :  { %2537 = vmatpush.bf16.msra.mxu1 %v4044_v35  ;;  %v2302_v24 = vadd.f32 %v2301_v22, %v578_v8  ;;  %v5907_v35 = vld [vmem:[#allocation2 + $0x950] sm:$0xf0]  ;;  %v5003_v22 = vld [vmem:[#allocation2 + $0x8c8] sm:$0xf] }
  0xcd   :  { %2551 = vmatpush.bf16.msra.mxu2 %v4204_v36  ;;  %v2315_v36 = vpop.f32.mrf.mxu1  ;;  %v5064_v48 = vor.u32 %v5907_v35, %v5063_v34  ;;  %v4505_v34 = vld [vmem:[#allocation2 + $0x4f4] sm:$0xf0] }
  0xce   :  { %2565 = vmatpush.bf16.msra.mxu3 %v4364_v40  ;;  %2524 = vmatmul.bf16.vlgmr.msra.gmra.mxu0 %v6428_v58  ;;  %v2316_v38 = vadd.f32 %v2315_v36, %v2302_v24  ;;  %v4744_v40 = vor.u32 %v5827_v31, %v4743_v29  ;;  %v5645_v24 = vld [vmem:[#allocation2 + $0x124] sm:$0xf]  ;;  %v4684_v31 = vor.u32 %v5812_v18, %v4683_v16  ;;  %v4125_v18 = vld [vmem:[#allocation2 + $0x1fc] sm:$0xf0] }
  0xcf   :  { %2572 = vmatpush.bf16.msrb.mxu0 %v4664_v41  ;;  %2538 = vmatmul.bf16.vlgmr.msra.gmra.mxu1 %v6446_v10  ;;  %v4904_v41 = vor.u32 %v5867_v33, %v4903_v32  ;;  %v5725_v29 = vld [vmem:[#allocation2 + $0x3a4] sm:$0xf]  ;;  %v4844_v32 = vor.u32 %v5852_v21, %v4843_v19  ;;  %v5710_v19 = vld [vmem:[#allocation2 + $0x32c] sm:$0xf] }
  0xd0   :  { %2586 = vmatpush.bf16.msrb.mxu1 %v4824_v42  ;;  %2552 = vmatmul.bf16.vlgmr.msra.gmra.mxu2 %v6433_v1  ;;  %v4563_v42 = vld [vmem:[#allocation2 + $0x558] sm:$0xf]  ;;  %v5765_v33 = vld [vmem:[#allocation2 + $0x4e4] sm:$0xf] }
  0xd1   :  { %2600 = vmatpush.bf16.msrb.mxu2 %v4984_v45  ;;  %2566 = vmatmul.bf16.vlgmr.msra.gmra.mxu3 %v6451_v17  ;;  %v5782_v45 = vld [vmem:[#allocation2 + $0x568] sm:$0xf0]  ;;  %v4508_v46 = vor.u32 %v5765_v33, %v4505_v34  ;;  %v4105_v34 = vld [vmem:[#allocation2 + $0x1d4] sm:$0xf0] }
  0xd2   :  { %2614 = vmatpush.bf16.msrb.mxu3 %v5144_v50  ;;  %v4883_v50 = vld [vmem:[#allocation2 + $0x7d8] sm:$0xf] }
  0xd3   :  { %2573 = vmatpush.bf16.msrb.mxu0 %v4644_v56  ;;  %v2329_v52 = vpop.f32.mrf.mxu2  ;;  %v4564_v56 = vor.u32 %v5782_v45, %v4563_v42  ;;  %v4005_v42 = vld [vmem:[#allocation2 + $0x10c] sm:$0xf0]  ;;  %v5680_v45 = vld [vmem:[#allocation2 + $0x23c] sm:$0xf] }
  0xd4   :  { %2587 = vmatpush.bf16.msrb.mxu1 %v4804_v59  ;;  %v2330_v55 = vadd.f32 %v2329_v52, %v2316_v38  ;;  %v4884_v59 = vor.u32 %v5862_v51, %v4883_v50  ;;  %v2343_v5 = vpop.f32.mrf.mxu3  ;;  %v4325_v50 = vld [vmem:[#allocation2 + $0x38c] sm:$0xf0]  ;;  %v5760_v51 = vld [vmem:[#allocation2 + $0x4bc] sm:$0xf] }
  0xd5   :  { %2601 = vmatpush.bf16.msrb.mxu2 %v4964_v60  ;;  %v4543_v60 = vld [vmem:[#allocation2 + $0x530] sm:$0xf] }
  0xd6   :  { %2615 = vmatpush.bf16.msrb.mxu3 %v5124_v0  ;;  %v5044_v0 = vor.u32 %v5902_v54, %v5043_v53  ;;  %v4485_v52 = vld [vmem:[#allocation2 + $0x4cc] sm:$0xf0]  ;;  %v6512_v53 = vpop.f32.mrf.mxu1 }
  0xd7   :  { %2574 = vmatpush.bf16.msrb.mxu0 %v4624_v7  ;;  %v5897_v7 = vld [vmem:[#allocation2 + $0x900] sm:$0xf0] }
  0xd8   :  { %2588 = vmatpush.bf16.msrb.mxu1 %v4784_v9  ;;  %v6508_v9 = vadd.f32 %v2343_v5, %v2330_v55  ;;  %v5024_v20 = vor.u32 %v5897_v7, %v5023_v6 }
  0xd9   :  { %2602 = vmatpush.bf16.msrb.mxu2 %v4944_v11  ;;  %v4544_v11 = vor.u32 %v5777_v61, %v4543_v60  ;;  %v5675_v60 = vld [vmem:[#allocation2 + $0x214] sm:$0xf]  ;;  %v4488_v61 = vor.u32 %v5760_v51, %v4485_v52  ;;  %v4085_v51 = vld [vmem:[#allocation2 + $0x1ac] sm:$0xf0]  ;;  %v5700_v52 = vld [vmem:[#allocation2 + $0x2dc] sm:$0xf] }
  0xda   :  { %2616 = vmatpush.bf16.msrb.mxu3 %v5104_v15  ;;  %v4864_v15 = vor.u32 %v5857_v4, %v4863_v3  ;;  %v5755_v3 = vld [vmem:[#allocation2 + $0x494] sm:$0xf]  ;;  %v4465_v4 = vld [vmem:[#allocation2 + $0x4a4] sm:$0xf0]  ;;  %v4148_v7 = vor.u32 %v5675_v60, %v4145_v62 }
  0xdb   :  { %2575 = vmatpush.bf16.msrb.mxu0 %v4604_v23  ;;  %v5892_v23 = vld [vmem:[#allocation2 + $0x8d8] sm:$0xf0]  ;;  %v6518_v6 = vpop.f32.mrf.mxu2 }
  0xdc   :  { %2589 = vmatpush.bf16.msrb.mxu1 %v4764_v25  ;;  %v4025_v25 = vld [vmem:[#allocation2 + $0x134] sm:$0xf0]  ;;  %v5004_v35 = vor.u32 %v5892_v23, %v5003_v22  ;;  %v6520_v16 = vpop.f32.mrf.mxu3  ;;  %v5750_v22 = vld [vmem:[#allocation2 + $0x46c] sm:$0xf]  ;;  %v4445_v23 = vld [vmem:[#allocation2 + $0x47c] sm:$0xf0] }
  0xdd   :  { %2603 = vmatpush.bf16.msrb.mxu2 %v4924_v26  ;;  %v5685_v26 = vld [vmem:[#allocation2 + $0x264] sm:$0xf]  ;;  %v4028_v36 = vor.u32 %v5645_v24, %v4025_v25  ;;  %v3968_v25 = vor.u32 %v5630_v12, %v3965_v13  ;;  %v4225_v12 = vld [vmem:[#allocation2 + $0x2c4] sm:$0xf0]  ;;  %v5735_v13 = vld [vmem:[#allocation2 + $0x3f4] sm:$0xf] }
  0xde   :  { %2617 = vmatpush.bf16.msrb.mxu3 %v5084_v30  ;;  %v4345_v30 = vld [vmem:[#allocation2 + $0x3b4] sm:$0xf0] }
  0xdf   :  { %2576 = vmatpush.bf16.msrb.mxu0 %v4584_v37  ;;  %v4188_v37 = vor.u32 %v5685_v26, %v4185_v28  ;;  %v4348_v38 = vor.u32 %v5725_v29, %v4345_v30  ;;  %v5625_v29 = vld [vmem:[#allocation2 + $0x84] sm:$0xf]  ;;  %v3945_v30 = vld [vmem:[#allocation2 + $0x94] sm:$0xf0] }
  0xe0   :  { %2590 = vmatpush.bf16.msrb.mxu1 %v4744_v40  ;;  %v6510_v40 = vpop.f32.mrf.mxu0 }
  0xe1   :  { %2604 = vmatpush.bf16.msrb.mxu2 %v4904_v41  ;;  %v5640_v41 = vld [vmem:[#allocation2 + $0xfc] sm:$0xf] }
  0xe2   :  { %2618 = vmatpush.bf16.msrb.mxu3 %v5064_v48  ;;  %v4165_v48 = vld [vmem:[#allocation2 + $0x24c] sm:$0xf0]  ;;  %v4008_v54 = vor.u32 %v5640_v41, %v4005_v42  ;;  %v3948_v41 = vor.u32 %v5625_v29, %v3945_v30  ;;  %v5805_v29 = vld [vmem:[#allocation2 + $0x624] sm:$0xf]  ;;  %v4665_v30 = vld [vmem:[#allocation2 + $0x634] sm:$0xf0] }
  0xe3   :  { %2577 = vmatpush.bf16.msrb.mxu0 %v4564_v56  ;;  %v4168_v55 = vor.u32 %v5680_v45, %v4165_v48  ;;  %v4328_v56 = vor.u32 %v5720_v49, %v4325_v50  ;;  %v5620_v45 = vld [vmem:[#allocation2 + $0x5c] sm:$0xf] }
  0xe4   :  { %2591 = vmatpush.bf16.msrb.mxu1 %v4724_v57  ;;  %v5635_v57 = vld [vmem:[#allocation2 + $0xd4] sm:$0xf]  ;;  %v5660_v48 = vld [vmem:[#allocation2 + $0x19c] sm:$0xf] }
  0xe5   :  { %2605 = vmatpush.bf16.msrb.mxu2 %v4884_v59  ;;  %v3985_v59 = vld [vmem:[#allocation2 + $0xe4] sm:$0xf0]  ;;  %v4088_v62 = vor.u32 %v5660_v48, %v4085_v51  ;;  %v5800_v48 = vld [vmem:[#allocation2 + $0x5fc] sm:$0xf] }
  0xe6   :  { %2619 = vmatpush.bf16.msrb.mxu3 %v5044_v0  ;;  %v5715_v0 = vld [vmem:[#allocation2 + $0x354] sm:$0xf]  ;;  %v3988_v5 = vor.u32 %v5635_v57, %v3985_v59  ;;  %v4405_v57 = vld [vmem:[#allocation2 + $0x42c] sm:$0xf0] }
  0xe7   :  { %2578 = vmatpush.bf16.msrb.mxu0 %v4544_v11  ;;  %v4308_v11 = vor.u32 %v5715_v0, %v4305_v2  ;;  %v5615_v2 = vld [vmem:[#allocation2 + $0x34] sm:$0xf] }
  0xe8   :  { %2592 = vmatpush.bf16.msrb.mxu1 %v4704_v14  ;;  %v5670_v14 = vld [vmem:[#allocation2 + $0x1ec] sm:$0xf] }
  0xe9   :  { %2606 = vmatpush.bf16.msrb.mxu2 %v4864_v15  ;;  %v4468_v15 = vor.u32 %v5755_v3, %v4465_v4  ;;  %v4128_v26 = vor.u32 %v5670_v14, %v4125_v18  ;;  %v3905_v3 = vld [vmem:[#allocation2 + $0x44] sm:$0xf0]  ;;  %v5655_v4 = vld [vmem:[#allocation2 + $0x174] sm:$0xf]  ;;  %v5610_v18 = vld [vmem:[#allocation2 + $0xc] sm:$0xf] }
  0xea   :  { %2620 = vmatpush.bf16.msrb.mxu3 %v5024_v20  ;;  %v4285_v20 = vld [vmem:[#allocation2 + $0x33c] sm:$0xf0]  ;;  %v4385_v14 = vld [vmem:[#allocation2 + $0x404] sm:$0xf0] }
  0xeb   :  { %2579 = vmatpush.bf16.msrb.mxu0 %v4524_v27  ;;  %v2357_v21 = vpop.f32.mrf.mxu0  ;;  %v4288_v27 = vor.u32 %v5710_v19, %v4285_v20  ;;  %v3885_v19 = vld [vmem:[#allocation2 + $0x1c] sm:$0xf0] }
  0xec   :  { %2593 = vmatpush.bf16.msrb.mxu1 %v4684_v31  ;;  %v2358_v24 = vadd.f32 %v2357_v21, %v6508_v9  ;;  %v2371_v28 = vpop.f32.mrf.mxu1  ;;  %v5665_v31 = vld [vmem:[#allocation2 + $0x1c4] sm:$0xf] }
  0xed   :  { %2607 = vmatpush.bf16.msrb.mxu2 %v4844_v32  ;;  %v4448_v32 = vor.u32 %v5750_v22, %v4445_v23  ;;  %v4108_v9 = vor.u32 %v5665_v31, %v4105_v34  ;;  %v5650_v22 = vld [vmem:[#allocation2 + $0x14c] sm:$0xf]  ;;  %v4045_v23 = vld [vmem:[#allocation2 + $0x15c] sm:$0xf0]  ;;  %v5845_v31 = vld [vmem:[#allocation2 + $0x764] sm:$0xf] }
  0xee   :  { %2621 = vmatpush.bf16.msrb.mxu3 %v5004_v35  ;;  %2580 = vmatmul.bf16.vlgmr.msrb.gmra.mxu0 %v6479_v39  ;;  %v2372_v33 = vadd.f32 %v2371_v28, %v2358_v24  ;;  %v5705_v35 = vld [vmem:[#allocation2 + $0x304] sm:$0xf]  ;;  %v5690_v24 = vld [vmem:[#allocation2 + $0x28c] sm:$0xf]  ;;  %v4365_v28 = vld [vmem:[#allocation2 + $0x3dc] sm:$0xf0] }
  0xef   :  { %2628 = vmatpush.bf16.msra.mxu0 %v4028_v36  ;;  %2594 = vmatmul.bf16.vlgmr.msrb.gmra.mxu1 %v6483_v44  ;;  %v4265_v36 = vld [vmem:[#allocation2 + $0x314] sm:$0xf0]  ;;  %v5885_v34 = vld [vmem:[#allocation2 + $0x8a4] sm:$0xf] }
  0xf0   :  { %2642 = vmatpush.bf16.msra.mxu1 %v4188_v37  ;;  %2608 = vmatmul.bf16.vlgmr.msrb.gmra.mxu2 %v6481_v43  ;;  %v5745_v37 = vld [vmem:[#allocation2 + $0x444] sm:$0xf]  ;;  %v4268_v42 = vor.u32 %v5705_v35, %v4265_v36  ;;  %v4985_v35 = vld [vmem:[#allocation2 + $0x8b4] sm:$0xf0]  ;;  %v4048_v36 = vor.u32 %v5650_v22, %v4045_v23  ;;  %v4765_v23 = vld [vmem:[#allocation2 + $0x6fc] sm:$0xf0] }
  0xf1   :  { %2656 = vmatpush.bf16.msra.mxu2 %v4348_v38  ;;  %2622 = vmatmul.bf16.vlgmr.msrb.gmra.mxu3 %v6485_v47  ;;  %v4425_v38 = vld [vmem:[#allocation2 + $0x454] sm:$0xf0] }
  0xf2   :  { %2670 = vmatpush.bf16.msra.mxu3 %v4508_v46  ;;  %v3925_v46 = vld [vmem:[#allocation2 + $0x6c] sm:$0xf0]  ;;  %v4428_v49 = vor.u32 %v5745_v37, %v4425_v38  ;;  %v5925_v38 = vld [vmem:[#allocation2 + $0x9e4] sm:$0xf] }
  0xf3   :  { %2629 = vmatpush.bf16.msra.mxu0 %v4008_v54  ;;  %v2385_v50 = vpop.f32.mrf.mxu2  ;;  %v4245_v54 = vld [vmem:[#allocation2 + $0x2ec] sm:$0xf0]  ;;  %v3928_v60 = vor.u32 %v5620_v45, %v3925_v46  ;;  %v4988_v46 = vor.u32 %v5885_v34, %v4985_v35  ;;  %v4745_v35 = vld [vmem:[#allocation2 + $0x6d4] sm:$0xf0] }
  0xf4   :  { %2643 = vmatpush.bf16.msra.mxu1 %v4168_v55  ;;  %v2386_v55 = vadd.f32 %v2385_v50, %v2372_v33  ;;  %v2399_v59 = vpop.f32.mrf.mxu3  ;;  %v4248_v0 = vor.u32 %v5700_v52, %v4245_v54  ;;  %v4825_v33 = vld [vmem:[#allocation2 + $0x774] sm:$0xf0]  ;;  %v5840_v50 = vld [vmem:[#allocation2 + $0x73c] sm:$0xf]  ;;  %v4805_v52 = vld [vmem:[#allocation2 + $0x74c] sm:$0xf0] }
  0xf5   :  { %2657 = vmatpush.bf16.msra.mxu2 %v4328_v56  ;;  %v5740_v56 = vld [vmem:[#allocation2 + $0x41c] sm:$0xf]  ;;  %v4828_v45 = vor.u32 %v5845_v31, %v4825_v33  ;;  %v5785_v31 = vld [vmem:[#allocation2 + $0x584] sm:$0xf] }
  0xf6   :  { %2671 = vmatpush.bf16.msra.mxu3 %v4488_v61  ;;  %v6523_v61 = vadd.f32 %v2399_v59, %v2386_v55  ;;  %v5880_v54 = vld [vmem:[#allocation2 + $0x87c] sm:$0xf]  ;;  %v4965_v55 = vld [vmem:[#allocation2 + $0x88c] sm:$0xf0]  ;;  %v5825_v33 = vld [vmem:[#allocation2 + $0x6c4] sm:$0xf] }
  0xf7   :  { %2630 = vmatpush.bf16.msra.mxu0 %v3988_v5  ;;  %v4408_v5 = vor.u32 %v5740_v56, %v4405_v57  ;;  %v5920_v56 = vld [vmem:[#allocation2 + $0x9bc] sm:$0xf]  ;;  %v5125_v57 = vld [vmem:[#allocation2 + $0x9cc] sm:$0xf0] }
  0xf8   :  { %2644 = vmatpush.bf16.msra.mxu1 %v4148_v7  ;;  %v4065_v7 = vld [vmem:[#allocation2 + $0x184] sm:$0xf0] }
  0xf9   :  { %2658 = vmatpush.bf16.msra.mxu2 %v4308_v11  ;;  %v5695_v11 = vld [vmem:[#allocation2 + $0x2b4] sm:$0xf]  ;;  %v4068_v20 = vor.u32 %v5655_v4, %v4065_v7  ;;  %v5128_v4 = vor.u32 %v5920_v56, %v5125_v57  ;;  %v5045_v56 = vld [vmem:[#allocation2 + $0x92c] sm:$0xf0] }
  0xfa   :  { %2672 = vmatpush.bf16.msra.mxu3 %v4468_v15  ;;  %v3908_v15 = vor.u32 %v5615_v2, %v3905_v3  ;;  %v4228_v21 = vor.u32 %v5695_v11, %v4225_v12  ;;  %v4625_v2 = vld [vmem:[#allocation2 + $0x5e4] sm:$0xf0]  ;;  %v5835_v3 = vld [vmem:[#allocation2 + $0x714] sm:$0xf] }
  0xfb   :  { %2631 = vmatpush.bf16.msra.mxu0 %v3968_v25  ;;  %v4388_v25 = vor.u32 %v5735_v13, %v4385_v14  ;;  %v5875_v7 = vld [vmem:[#allocation2 + $0x854] sm:$0xf]  ;;  %v4945_v11 = vld [vmem:[#allocation2 + $0x864] sm:$0xf0] }
  0xfc   :  { %2645 = vmatpush.bf16.msra.mxu1 %v4128_v26  ;;  %v4205_v26 = vld [vmem:[#allocation2 + $0x29c] sm:$0xf0]  ;;  %v5915_v12 = vld [vmem:[#allocation2 + $0x994] sm:$0xf]  ;;  %v5105_v13 = vld [vmem:[#allocation2 + $0x9a4] sm:$0xf0] }
  0xfd   :  { %2659 = vmatpush.bf16.msra.mxu2 %v4288_v27  ;;  %v5730_v27 = vld [vmem:[#allocation2 + $0x3cc] sm:$0xf]  ;;  %v4208_v37 = vor.u32 %v5690_v24, %v4205_v26  ;;  %v5108_v22 = vor.u32 %v5915_v12, %v5105_v13  ;;  %v5025_v12 = vld [vmem:[#allocation2 + $0x904] sm:$0xf0] }
  0xfe   :  { %2673 = vmatpush.bf16.msra.mxu3 %v4448_v32  ;;  %v3888_v32 = vor.u32 %v5610_v18, %v3885_v19  ;;  %v4948_v18 = vor.u32 %v5875_v7, %v4945_v11  ;;  %v5790_v19 = vld [vmem:[#allocation2 + $0x5ac] sm:$0xf]  ;;  %v4865_v7 = vld [vmem:[#allocation2 + $0x7c4] sm:$0xf0]  ;;  %v5895_v11 = vld [vmem:[#allocation2 + $0x8f4] sm:$0xf] }
  0xff   :  { %2632 = vmatpush.bf16.msra.mxu0 %v3948_v41  ;;  %v5145_v41 = vld [vmem:[#allocation2 + $0x9f4] sm:$0xf0]  ;;  %v5870_v24 = vld [vmem:[#allocation2 + $0x82c] sm:$0xf] }
 0x100   :  { %2646 = vmatpush.bf16.msra.mxu1 %v4108_v9  ;;  %v4368_v9 = vor.u32 %v5730_v27, %v4365_v28  ;;  %v5148_v51 = vor.u32 %v5925_v38, %v5145_v41  ;;  %v5910_v26 = vld [vmem:[#allocation2 + $0x96c] sm:$0xf]  ;;  %v5085_v27 = vld [vmem:[#allocation2 + $0x97c] sm:$0xf0]  ;;  %v5905_v38 = vld [vmem:[#allocation2 + $0x944] sm:$0xf] }
 0x101   :  { %2660 = vmatpush.bf16.msra.mxu2 %v4268_v42  ;;  %v4668_v42 = vor.u32 %v5805_v29, %v4665_v30  ;;  %v5088_v34 = vor.u32 %v5910_v26, %v5085_v27  ;;  %v5065_v41 = vld [vmem:[#allocation2 + $0x954] sm:$0xf0]  ;;  %v5005_v26 = vld [vmem:[#allocation2 + $0x8dc] sm:$0xf0]  ;;  %v4031_v27 = vld [vmem:[#allocation2 + $0x128] sm:$0xf] }
 0x102   :  { %2674 = vmatpush.bf16.msra.mxu3 %v4428_v49  ;;  %v4645_v49 = vld [vmem:[#allocation2 + $0x60c] sm:$0xf0] }
 0x103   :  { %2633 = vmatpush.bf16.msra.mxu0 %v3928_v60  ;;  %v4648_v59 = vor.u32 %v5800_v48, %v4645_v49  ;;  %v4808_v60 = vor.u32 %v5840_v50, %v4805_v52  ;;  %v4565_v48 = vld [vmem:[#allocation2 + $0x56c] sm:$0xf0]  ;;  %v5820_v49 = vld [vmem:[#allocation2 + $0x69c] sm:$0xf]  ;;  %v5068_v50 = vor.u32 %v5905_v38, %v5065_v41 }
 0x104   :  { %2647 = vmatpush.bf16.msra.mxu1 %v4088_v62  ;;  %v4968_v62 = vor.u32 %v5880_v54, %v4965_v55  ;;  %v5860_v52 = vld [vmem:[#allocation2 + $0x7dc] sm:$0xf]  ;;  %v4885_v54 = vld [vmem:[#allocation2 + $0x7ec] sm:$0xf0] }
 0x105   :  { %2661 = vmatpush.bf16.msra.mxu2 %v4248_v0  ;;  %v5795_v0 = vld [vmem:[#allocation2 + $0x5d4] sm:$0xf]  ;;  %v5900_v55 = vld [vmem:[#allocation2 + $0x91c] sm:$0xf] }
 0x106   :  { %2675 = vmatpush.bf16.msra.mxu3 %v4408_v5  ;;  %v4785_v5 = vld [vmem:[#allocation2 + $0x724] sm:$0xf0]  ;;  %v4628_v14 = vor.u32 %v5795_v0, %v4625_v2  ;;  %v5815_v2 = vld [vmem:[#allocation2 + $0x674] sm:$0xf] }
 0x107   :  { %2634 = vmatpush.bf16.msra.mxu0 %v3908_v15  ;;  %v4788_v15 = vor.u32 %v5835_v3, %v4785_v5  ;;  %v4545_v0 = vld [vmem:[#allocation2 + $0x544] sm:$0xf0]  ;;  %v5048_v3 = vor.u32 %v5900_v55, %v5045_v56  ;;  %v5855_v5 = vld [vmem:[#allocation2 + $0x7b4] sm:$0xf] }
 0x108   :  { %2648 = vmatpush.bf16.msra.mxu1 %v4068_v20  ;;  %v4605_v20 = vld [vmem:[#allocation2 + $0x5bc] sm:$0xf0]  ;;  %v5763_v55 = vld [vmem:[#allocation2 + $0x4d0] sm:$0xf0] }
 0x109   :  { %2662 = vmatpush.bf16.msra.mxu2 %v4228_v21  ;;  %v5830_v21 = vld [vmem:[#allocation2 + $0x6ec] sm:$0xf]  ;;  %v4608_v28 = vor.u32 %v5790_v19, %v4605_v20  ;;  %v4868_v19 = vor.u32 %v5855_v5, %v4865_v7  ;;  %v4311_v7 = vld [vmem:[#allocation2 + $0x358] sm:$0xf] }
 0x10a   :  { %2676 = vmatpush.bf16.msra.mxu3 %v4388_v25  ;;  %v4925_v25 = vld [vmem:[#allocation2 + $0x83c] sm:$0xf0]  ;;  %v4768_v29 = vor.u32 %v5830_v21, %v4765_v23  ;;  %v5810_v20 = vld [vmem:[#allocation2 + $0x64c] sm:$0xf]  ;;  %v5028_v23 = vor.u32 %v5895_v11, %v5025_v12  ;;  %v4471_v12 = vld [vmem:[#allocation2 + $0x498] sm:$0xf] }
 0x10b   :  { %2635 = vmatpush.bf16.msra.mxu0 %v3888_v32  ;;  %v4928_v30 = vor.u32 %v5870_v24, %v4925_v25  ;;  %v4585_v32 = vld [vmem:[#allocation2 + $0x594] sm:$0xf0]  ;;  %v4685_v21 = vld [vmem:[#allocation2 + $0x65c] sm:$0xf0]  ;;  %v5890_v25 = vld [vmem:[#allocation2 + $0x8cc] sm:$0xf] }
 0x10c   :  { %2649 = vmatpush.bf16.msra.mxu1 %v4048_v36  ;;  %v5865_v36 = vld [vmem:[#allocation2 + $0x804] sm:$0xf]  ;;  %v4845_v24 = vld [vmem:[#allocation2 + $0x79c] sm:$0xf0]  ;;  %v5008_v38 = vor.u32 %v5890_v25, %v5005_v26  ;;  %v5678_v5 = vld [vmem:[#allocation2 + $0x228] sm:$0xf0] }
 0x10d   :  { %2663 = vmatpush.bf16.msra.mxu2 %v4208_v37  ;;  %v4905_v37 = vld [vmem:[#allocation2 + $0x814] sm:$0xf0]  ;;  %v5718_v11 = vld [vmem:[#allocation2 + $0x368] sm:$0xf0]  ;;  %v5713_v25 = vld [vmem:[#allocation2 + $0x340] sm:$0xf0] }
 0x10e   :  { %2677 = vmatpush.bf16.msra.mxu3 %v4368_v9  ;;  %2636 = vmatmul.bf16.vlgmr.msra.gmra.mxu0 %v6428_v58  ;;  %v4588_v9 = vor.u32 %v5785_v31, %v4585_v32  ;;  %v5688_v31 = vld [vmem:[#allocation2 + $0x278] sm:$0xf0]  ;;  %v4351_v32 = vld [vmem:[#allocation2 + $0x3a8] sm:$0xf]  ;;  %v4451_v26 = vld [vmem:[#allocation2 + $0x470] sm:$0xf] }
 0x10f   :  { %2684 = vmatpush.bf16.msrb.mxu0 %v4668_v42  ;;  %2650 = vmatmul.bf16.vlgmr.msra.gmra.mxu1 %v6446_v10  ;;  %v4748_v42 = vor.u32 %v5825_v33, %v4745_v35  ;;  %v5728_v33 = vld [vmem:[#allocation2 + $0x3b8] sm:$0xf0] }
 0x110   :  { %2698 = vmatpush.bf16.msrb.mxu1 %v4828_v45  ;;  %2664 = vmatmul.bf16.vlgmr.msra.gmra.mxu2 %v6433_v1  ;;  %v4908_v45 = vor.u32 %v5865_v36, %v4905_v37  ;;  %v4511_v36 = vld [vmem:[#allocation2 + $0x4e8] sm:$0xf]  ;;  %v5768_v37 = vld [vmem:[#allocation2 + $0x4f8] sm:$0xf0] }
 0x111   :  { %2712 = vmatpush.bf16.msrb.mxu2 %v4988_v46  ;;  %2678 = vmatmul.bf16.vlgmr.msra.gmra.mxu3 %v6451_v17  ;;  %v5780_v46 = vld [vmem:[#allocation2 + $0x55c] sm:$0xf] }
 0x112   :  { %2726 = vmatpush.bf16.msrb.mxu3 %v5148_v51  ;;  %v4725_v51 = vld [vmem:[#allocation2 + $0x6ac] sm:$0xf0]  ;;  %v4568_v57 = vor.u32 %v5780_v46, %v4565_v48  ;;  %v5643_v46 = vld [vmem:[#allocation2 + $0x110] sm:$0xf0]  ;;  %v4171_v48 = vld [vmem:[#allocation2 + $0x240] sm:$0xf] }
 0x113   :  { %2685 = vmatpush.bf16.msrb.mxu0 %v4648_v59  ;;  %v4728_v59 = vor.u32 %v5820_v49, %v4725_v51  ;;  %v4512_v49 = vor.u32 %v5768_v37, %v4511_v36  ;;  %v4331_v51 = vld [vmem:[#allocation2 + $0x380] sm:$0xf]  ;;  %v4111_v36 = vld [vmem:[#allocation2 + $0x1c8] sm:$0xf] }
 0x114   :  { %2699 = vmatpush.bf16.msrb.mxu1 %v4808_v60  ;;  %v4888_v60 = vor.u32 %v5860_v52, %v4885_v54  ;;  %v5723_v52 = vld [vmem:[#allocation2 + $0x390] sm:$0xf0]  ;;  %v4491_v54 = vld [vmem:[#allocation2 + $0x4c0] sm:$0xf] }
 0x115   :  { %2713 = vmatpush.bf16.msrb.mxu2 %v4968_v62  ;;  %v5775_v62 = vld [vmem:[#allocation2 + $0x534] sm:$0xf] }
 0x116   :  { %2727 = vmatpush.bf16.msrb.mxu3 %v5128_v4  ;;  %v4705_v4 = vld [vmem:[#allocation2 + $0x684] sm:$0xf0]  ;;  %v4548_v13 = vor.u32 %v5775_v62, %v4545_v0  ;;  %v3991_v62 = vld [vmem:[#allocation2 + $0xd8] sm:$0xf]  ;;  %v5638_v0 = vld [vmem:[#allocation2 + $0xe8] sm:$0xf0] }
 0x117   :  { %2686 = vmatpush.bf16.msrb.mxu0 %v4628_v14  ;;  %v5770_v14 = vld [vmem:[#allocation2 + $0x50c] sm:$0xf] }
 0x118   :  { %2700 = vmatpush.bf16.msrb.mxu1 %v4788_v15  ;;  %v4525_v15 = vld [vmem:[#allocation2 + $0x51c] sm:$0xf0] }
 0x119   :  { %2714 = vmatpush.bf16.msrb.mxu2 %v4948_v18  ;;  %v4708_v18 = vor.u32 %v5815_v2, %v4705_v4  ;;  %v4151_v2 = vld [vmem:[#allocation2 + $0x218] sm:$0xf]  ;;  %v4492_v4 = vor.u32 %v5763_v55, %v4491_v54  ;;  %v4091_v54 = vld [vmem:[#allocation2 + $0x1a0] sm:$0xf] }
 0x11a   :  { %2728 = vmatpush.bf16.msrb.mxu3 %v5108_v22  ;;  %v5850_v22 = vld [vmem:[#allocation2 + $0x78c] sm:$0xf] }
 0x11b   :  { %2687 = vmatpush.bf16.msrb.mxu0 %v4608_v28  ;;  %v5648_v28 = vld [vmem:[#allocation2 + $0x138] sm:$0xf0]  ;;  %v4848_v35 = vor.u32 %v5850_v22, %v4845_v24  ;;  %v4291_v24 = vld [vmem:[#allocation2 + $0x330] sm:$0xf] }
 0x11c   :  { %2701 = vmatpush.bf16.msrb.mxu1 %v4768_v29  ;;  %v4191_v29 = vld [vmem:[#allocation2 + $0x268] sm:$0xf]  ;;  %v4032_v41 = vor.u32 %v5648_v28, %v4031_v27  ;;  %v5753_v27 = vld [vmem:[#allocation2 + $0x480] sm:$0xf0]  ;;  %v6537_v28 = vpop.f32.mrf.mxu2 }
 0x11d   :  { %2715 = vmatpush.bf16.msrb.mxu2 %v4928_v30  ;;  %v4528_v30 = vor.u32 %v5770_v14, %v4525_v15  ;;  %v3992_v14 = vor.u32 %v5638_v0, %v3991_v62  ;;  %v4152_v15 = vor.u32 %v5678_v5, %v4151_v2  ;;  %v4411_v62 = vld [vmem:[#allocation2 + $0x420] sm:$0xf]  ;;  %v5743_v0 = vld [vmem:[#allocation2 + $0x430] sm:$0xf0] }
 0x11e   :  { %2729 = vmatpush.bf16.msrb.mxu3 %v5088_v34  ;;  %v4688_v34 = vor.u32 %v5810_v20, %v4685_v21  ;;  %v5633_v20 = vld [vmem:[#allocation2 + $0xc0] sm:$0xf0]  ;;  %v4131_v21 = vld [vmem:[#allocation2 + $0x1f0] sm:$0xf] }
 0x11f   :  { %2688 = vmatpush.bf16.msrb.mxu0 %v4588_v9  ;;  %v4192_v9 = vor.u32 %v5688_v31, %v4191_v29 }
 0x120   :  { %2702 = vmatpush.bf16.msrb.mxu1 %v4748_v42  ;;  %v4352_v42 = vor.u32 %v5728_v33, %v4351_v32  ;;  %v4292_v33 = vor.u32 %v5713_v25, %v4291_v24 }
 0x121   :  { %2716 = vmatpush.bf16.msrb.mxu2 %v4908_v45  ;;  %v4011_v45 = vld [vmem:[#allocation2 + $0x100] sm:$0xf] }
 0x122   :  { %2730 = vmatpush.bf16.msrb.mxu3 %v5068_v50  ;;  %v5683_v50 = vld [vmem:[#allocation2 + $0x250] sm:$0xf0]  ;;  %v4012_v56 = vor.u32 %v5643_v46, %v4011_v45  ;;  %v4431_v45 = vld [vmem:[#allocation2 + $0x448] sm:$0xf]  ;;  %v5748_v46 = vld [vmem:[#allocation2 + $0x458] sm:$0xf0] }
 0x123   :  { %2689 = vmatpush.bf16.msrb.mxu0 %v4568_v57  ;;  %v6529_v57 = vpop.f32.mrf.mxu0  ;;  %v4432_v55 = vor.u32 %v5748_v46, %v4431_v45  ;;  %v5808_v45 = vld [vmem:[#allocation2 + $0x638] sm:$0xf0]  ;;  %v4831_v46 = vld [vmem:[#allocation2 + $0x768] sm:$0xf] }
 0x124   :  { %2703 = vmatpush.bf16.msrb.mxu1 %v4728_v59  ;;  %v4172_v59 = vor.u32 %v5683_v50, %v4171_v48  ;;  %v6545_v2 = vpop.f32.mrf.mxu2 }
 0x125   :  { %2717 = vmatpush.bf16.msrb.mxu2 %v4888_v60  ;;  %v4332_v60 = vor.u32 %v5723_v52, %v4331_v51  ;;  %v3931_v51 = vld [vmem:[#allocation2 + $0x60] sm:$0xf]  ;;  %v5623_v52 = vld [vmem:[#allocation2 + $0x70] sm:$0xf0] }
 0x126   :  { %2731 = vmatpush.bf16.msrb.mxu3 %v5048_v3  ;;  %v6531_v3 = vpop.f32.mrf.mxu1 }
 0x127   :  { %2690 = vmatpush.bf16.msrb.mxu0 %v4548_v13  ;;  %v5758_v13 = vld [vmem:[#allocation2 + $0x4a8] sm:$0xf0] }
 0x128   :  { %2704 = vmatpush.bf16.msrb.mxu1 %v4708_v18  ;;  %v4312_v18 = vor.u32 %v5718_v11, %v4311_v7  ;;  %v4472_v22 = vor.u32 %v5758_v13, %v4471_v12  ;;  %v3911_v12 = vld [vmem:[#allocation2 + $0x38] sm:$0xf]  ;;  %v5618_v13 = vld [vmem:[#allocation2 + $0x48] sm:$0xf0] }
 0x129   :  { %2718 = vmatpush.bf16.msrb.mxu2 %v4868_v19  ;;  %v3971_v19 = vld [vmem:[#allocation2 + $0xb0] sm:$0xf]  ;;  %v3912_v25 = vor.u32 %v5618_v13, %v3911_v12  ;;  %v5803_v12 = vld [vmem:[#allocation2 + $0x610] sm:$0xf0]  ;;  %v4811_v13 = vld [vmem:[#allocation2 + $0x740] sm:$0xf] }
 0x12a   :  { %2732 = vmatpush.bf16.msrb.mxu3 %v5028_v23  ;;  %v5673_v23 = vld [vmem:[#allocation2 + $0x200] sm:$0xf0]  ;;  %v3972_v29 = vor.u32 %v5633_v20, %v3971_v19  ;;  %v4231_v19 = vld [vmem:[#allocation2 + $0x2b8] sm:$0xf]  ;;  %v5698_v20 = vld [vmem:[#allocation2 + $0x2c8] sm:$0xf0] }
 0x12b   :  { %2691 = vmatpush.bf16.msrb.mxu0 %v4528_v30  ;;  %v6539_v30 = vpop.f32.mrf.mxu3  ;;  %v6541_v31 = vpop.f32.mrf.mxu0  ;;  %v4132_v32 = vor.u32 %v5673_v23, %v4131_v21  ;;  %v5738_v23 = vld [vmem:[#allocation2 + $0x408] sm:$0xf0] }
 0x12c   :  { %2705 = vmatpush.bf16.msrb.mxu1 %v4688_v34  ;;  %v3951_v34 = vld [vmem:[#allocation2 + $0x88] sm:$0xf] }
 0x12d   :  { %2719 = vmatpush.bf16.msrb.mxu2 %v4848_v35  ;;  %v5628_v35 = vld [vmem:[#allocation2 + $0x98] sm:$0xf0] }
 0x12e   :  { %2733 = vmatpush.bf16.msrb.mxu3 %v5008_v38  ;;  %2692 = vmatmul.bf16.vlgmr.msrb.gmra.mxu0 %v6479_v39  ;;  %v6543_v37 = vpop.f32.mrf.mxu1  ;;  %v4452_v38 = vor.u32 %v5753_v27, %v4451_v26  ;;  %v3952_v48 = vor.u32 %v5628_v35, %v3951_v34  ;;  %v3891_v26 = vld [vmem:[#allocation2 + $0x10] sm:$0xf]  ;;  %v5613_v27 = vld [vmem:[#allocation2 + $0x20] sm:$0xf0] }
 0x12f   :  { %2740 = vmatpush.bf16.msra.mxu0 %v4032_v41  ;;  %2706 = vmatmul.bf16.vlgmr.msrb.gmra.mxu1 %v6483_v44  ;;  %v5668_v41 = vld [vmem:[#allocation2 + $0x1d8] sm:$0xf0]  ;;  %v5653_v34 = vld [vmem:[#allocation2 + $0x160] sm:$0xf0]  ;;  %v4211_v35 = vld [vmem:[#allocation2 + $0x290] sm:$0xf] }
 0x130   :  { %2754 = vmatpush.bf16.msra.mxu1 %v4192_v9  ;;  %2720 = vmatmul.bf16.vlgmr.msrb.gmra.mxu2 %v6481_v43  ;;  %v4271_v9 = vld [vmem:[#allocation2 + $0x308] sm:$0xf] }
 0x131   :  { %2768 = vmatpush.bf16.msra.mxu2 %v4352_v42  ;;  %2734 = vmatmul.bf16.vlgmr.msrb.gmra.mxu3 %v6485_v47  ;;  %v5708_v42 = vld [vmem:[#allocation2 + $0x318] sm:$0xf0] }
 0x132   :  { %2782 = vmatpush.bf16.msra.mxu3 %v4512_v49  ;;  %v4112_v49 = vor.u32 %v5668_v41, %v4111_v36  ;;  %v4272_v50 = vor.u32 %v5708_v42, %v4271_v9  ;;  %v4371_v41 = vld [vmem:[#allocation2 + $0x3d0] sm:$0xf]  ;;  %v5733_v9 = vld [vmem:[#allocation2 + $0x3e0] sm:$0xf0]  ;;  %v4671_v42 = vld [vmem:[#allocation2 + $0x628] sm:$0xf] }
 0x133   :  { %2741 = vmatpush.bf16.msra.mxu0 %v4012_v56  ;;  %v5663_v56 = vld [vmem:[#allocation2 + $0x1b0] sm:$0xf0]  ;;  %v6547_v5 = vpop.f32.mrf.mxu3  ;;  %v6549_v21 = vpop.f32.mrf.mxu0 }
 0x134   :  { %2755 = vmatpush.bf16.msra.mxu1 %v4172_v59  ;;  %v4251_v59 = vld [vmem:[#allocation2 + $0x2e0] sm:$0xf]  ;;  %v4092_v7 = vor.u32 %v5663_v56, %v4091_v54  ;;  %v5928_v56 = vld [vmem:[#allocation2 + $0x9f8] sm:$0xf0] }
 0x135   :  { %2769 = vmatpush.bf16.msra.mxu2 %v4332_v60  ;;  %v5703_v60 = vld [vmem:[#allocation2 + $0x2f0] sm:$0xf0] }
 0x136   :  { %2783 = vmatpush.bf16.msra.mxu3 %v4492_v4  ;;  %v3932_v4 = vor.u32 %v5623_v52, %v3931_v51  ;;  %v4252_v11 = vor.u32 %v5703_v60, %v4251_v59  ;;  %v6551_v24 = vpop.f32.mrf.mxu1  ;;  %v5888_v51 = vld [vmem:[#allocation2 + $0x8b8] sm:$0xf0]  ;;  %v6553_v59 = vpop.f32.mrf.mxu2  ;;  %v4372_v60 = vor.u32 %v5733_v9, %v4371_v41  ;;  %v5878_v41 = vld [vmem:[#allocation2 + $0x868] sm:$0xf0]  ;;  %v5111_v9 = vld [vmem:[#allocation2 + $0x998] sm:$0xf] }
 0x137   :  { %2742 = vmatpush.bf16.msra.mxu0 %v3992_v14  ;;  %v4071_v14 = vld [vmem:[#allocation2 + $0x178] sm:$0xf] }
 0x138   :  { %2756 = vmatpush.bf16.msra.mxu1 %v4152_v15  ;;  %v4412_v15 = vor.u32 %v5743_v0, %v4411_v62  ;;  %v4672_v62 = vor.u32 %v5808_v45, %v4671_v42  ;;  %v5918_v42 = vld [vmem:[#allocation2 + $0x9a8] sm:$0xf0] }
 0x139   :  { %2770 = vmatpush.bf16.msra.mxu2 %v4312_v18  ;;  %v5658_v18 = vld [vmem:[#allocation2 + $0x188] sm:$0xf0] }
 0x13a   :  { %2784 = vmatpush.bf16.msra.mxu3 %v4472_v22  ;;  %v4391_v22 = vld [vmem:[#allocation2 + $0x3f8] sm:$0xf] }
 0x13b   :  { %2743 = vmatpush.bf16.msra.mxu0 %v3972_v29  ;;  %v4072_v29 = vor.u32 %v5658_v18, %v4071_v14  ;;  %v4392_v36 = vor.u32 %v5738_v23, %v4391_v22  ;;  %v6555_v0 = vpop.f32.mrf.mxu3  ;;  %v4971_v18 = vld [vmem:[#allocation2 + $0x880] sm:$0xf]  ;;  %v5923_v23 = vld [vmem:[#allocation2 + $0x9d0] sm:$0xf0] }
 0x13c   :  { %2757 = vmatpush.bf16.msra.mxu1 %v4132_v32  ;;  %v4232_v32 = vor.u32 %v5698_v20, %v4231_v19  ;;  %v5883_v19 = vld [vmem:[#allocation2 + $0x890] sm:$0xf0]  ;;  %v6557_v20 = vpop.f32.mrf.mxu0  ;;  %v5131_v22 = vld [vmem:[#allocation2 + $0x9c0] sm:$0xf] }
 0x13d   :  { %2771 = vmatpush.bf16.msra.mxu2 %v4292_v33  ;;  %v4051_v33 = vld [vmem:[#allocation2 + $0x150] sm:$0xf] }
 0x13e   :  { %2785 = vmatpush.bf16.msra.mxu3 %v4452_v38  ;;  %v5693_v38 = vld [vmem:[#allocation2 + $0x2a0] sm:$0xf0]  ;;  %v4052_v52 = vor.u32 %v5653_v34, %v4051_v33  ;;  %v5798_v33 = vld [vmem:[#allocation2 + $0x5e8] sm:$0xf0]  ;;  %v4791_v34 = vld [vmem:[#allocation2 + $0x718] sm:$0xf] }
 0x13f   :  { %2744 = vmatpush.bf16.msra.mxu0 %v3952_v48  ;;  %v3892_v48 = vor.u32 %v5613_v27, %v3891_v26  ;;  %v4212_v54 = vor.u32 %v5693_v38, %v4211_v35  ;;  %v5132_v35 = vor.u32 %v5923_v23, %v5131_v22  ;;  %v4951_v38 = vld [vmem:[#allocation2 + $0x858] sm:$0xf]  ;;  %v5868_v22 = vld [vmem:[#allocation2 + $0x818] sm:$0xf0]  ;;  %v5071_v23 = vld [vmem:[#allocation2 + $0x948] sm:$0xf] }
 0x140   :  { %2758 = vmatpush.bf16.msra.mxu1 %v4112_v49  ;;  %v5848_v49 = vld [vmem:[#allocation2 + $0x778] sm:$0xf0] }
 0x141   :  { %2772 = vmatpush.bf16.msra.mxu2 %v4272_v50  ;;  %v4991_v50 = vld [vmem:[#allocation2 + $0x8a8] sm:$0xf] }
 0x142   :  { %2786 = vmatpush.bf16.msra.mxu3 %v4432_v55  ;;  %v5151_v55 = vld [vmem:[#allocation2 + $0x9e8] sm:$0xf] }
 0x143   :  { %2745 = vmatpush.bf16.msra.mxu0 %v3932_v4  ;;  %v4832_v4 = vor.u32 %v5848_v49, %v4831_v46  ;;  %v5152_v14 = vor.u32 %v5928_v56, %v5151_v55  ;;  %v4611_v49 = vld [vmem:[#allocation2 + $0x5b0] sm:$0xf]  ;;  %v6567_v56 = vpop.f32.mrf.mxu3 }
 0x144   :  { %2759 = vmatpush.bf16.msra.mxu1 %v4092_v7  ;;  %v4992_v7 = vor.u32 %v5888_v51, %v4991_v50  ;;  %v5793_v50 = vld [vmem:[#allocation2 + $0x5c0] sm:$0xf0]  ;;  %v6565_v51 = vpop.f32.mrf.mxu2  ;;  %v4931_v55 = vld [vmem:[#allocation2 + $0x830] sm:$0xf] }
 0x145   :  { %2773 = vmatpush.bf16.msra.mxu2 %v4252_v11  ;;  %v4651_v11 = vld [vmem:[#allocation2 + $0x600] sm:$0xf] }
 0x146   :  { %2787 = vmatpush.bf16.msra.mxu3 %v4412_v15  ;;  %v5843_v15 = vld [vmem:[#allocation2 + $0x750] sm:$0xf0]  ;;  %v4652_v26 = vor.u32 %v5803_v12, %v4651_v11  ;;  %v4591_v11 = vld [vmem:[#allocation2 + $0x588] sm:$0xf]  ;;  %v5788_v12 = vld [vmem:[#allocation2 + $0x598] sm:$0xf0] }
 0x147   :  { %2746 = vmatpush.bf16.msra.mxu0 %v3912_v25  ;;  %v6559_v25 = vpop.f32.mrf.mxu1  ;;  %v4812_v27 = vor.u32 %v5843_v15, %v4811_v13  ;;  %v4751_v13 = vld [vmem:[#allocation2 + $0x6c8] sm:$0xf] }
 0x148   :  { %2760 = vmatpush.bf16.msra.mxu1 %v4072_v29  ;;  %v4972_v29 = vor.u32 %v5883_v19, %v4971_v18  ;;  %v5828_v18 = vld [vmem:[#allocation2 + $0x6d8] sm:$0xf0]  ;;  %v4911_v19 = vld [vmem:[#allocation2 + $0x808] sm:$0xf] }
 0x149   :  { %2774 = vmatpush.bf16.msra.mxu2 %v4232_v32  ;;  %v4631_v32 = vld [vmem:[#allocation2 + $0x5d8] sm:$0xf] }
 0x14a   :  { %2788 = vmatpush.bf16.msra.mxu3 %v4392_v36  ;;  %v5838_v36 = vld [vmem:[#allocation2 + $0x728] sm:$0xf0]  ;;  %v4632_v45 = vor.u32 %v5798_v33, %v4631_v32  ;;  %v4912_v32 = vor.u32 %v5868_v22, %v4911_v19  ;;  %v4571_v33 = vld [vmem:[#allocation2 + $0x560] sm:$0xf]  ;;  %v4531_v22 = vld [vmem:[#allocation2 + $0x510] sm:$0xf] }
 0x14b   :  { %2747 = vmatpush.bf16.msra.mxu0 %v3892_v48  ;;  %v4792_v46 = vor.u32 %v5838_v36, %v4791_v34  ;;  %v4952_v48 = vor.u32 %v5878_v41, %v4951_v38  ;;  %v5783_v34 = vld [vmem:[#allocation2 + $0x570] sm:$0xf0]  ;;  %v4891_v41 = vld [vmem:[#allocation2 + $0x7e0] sm:$0xf] }
 0x14c   :  { %2761 = vmatpush.bf16.msra.mxu1 %v4052_v52  ;;  %v5112_v52 = vor.u32 %v5918_v42, %v5111_v9  ;;  %v5823_v38 = vld [vmem:[#allocation2 + $0x6b0] sm:$0xf0]  ;;  %v5051_v42 = vld [vmem:[#allocation2 + $0x920] sm:$0xf] }
 0x14d   :  { %2775 = vmatpush.bf16.msra.mxu2 %v4212_v54  ;;  %v5833_v54 = vld [vmem:[#allocation2 + $0x700] sm:$0xf0]  ;;  %v5863_v9 = vld [vmem:[#allocation2 + $0x7f0] sm:$0xf0] }
 0x14e   :  { %2789 = vmatpush.bf16.msra.mxu3 %v4372_v60  ;;  %2748 = vmatmul.bf16.vlgmr.msra.gmra.mxu0 %v6428_v58  ;;  %v5873_v58 = vld [vmem:[#allocation2 + $0x840] sm:$0xf0] }
 0x14f   :  { %2796 = vmatpush.bf16.msrb.mxu0 %v4672_v62  ;;  %2762 = vmatmul.bf16.vlgmr.msra.gmra.mxu1 %v6446_v10  ;;  %v5913_v60 = vld [vmem:[#allocation2 + $0x980] sm:$0xf0]  ;;  %v4612_v10 = vor.u32 %v5793_v50, %v4611_v49  ;;  %v6569_v62 = vpop.f32.mrf.mxu0  ;;  %v6575_v49 = vpop.f32.mrf.mxu3 }
 0x150   :  { %2810 = vmatpush.bf16.msrb.mxu1 %v4832_v4  ;;  %2776 = vmatmul.bf16.vlgmr.msra.gmra.mxu2 %v6433_v1  ;;  %v4771_v1 = vld [vmem:[#allocation2 + $0x6f0] sm:$0xf] }
 0x151   :  { %2824 = vmatpush.bf16.msrb.mxu2 %v4992_v7  ;;  %2790 = vmatmul.bf16.vlgmr.msra.gmra.mxu3 %v6451_v17  ;;  %v5091_v17 = vld [vmem:[#allocation2 + $0x970] sm:$0xf]  ;;  %v4772_v4 = vor.u32 %v5833_v54, %v4771_v1  ;;  %v4932_v7 = vor.u32 %v5873_v58, %v4931_v55  ;;  %v4892_v1 = vor.u32 %v5863_v9, %v4891_v41  ;;  %v4551_v54 = vld [vmem:[#allocation2 + $0x538] sm:$0xf]  ;;  %v5778_v55 = vld [vmem:[#allocation2 + $0x548] sm:$0xf0] }
 0x152   :  { %2838 = vmatpush.bf16.msrb.mxu3 %v5152_v14  ;;  %v6571_v14 = vpop.f32.mrf.mxu1  ;;  %v5092_v15 = vor.u32 %v5913_v60, %v5091_v17  ;;  %v4711_v58 = vld [vmem:[#allocation2 + $0x678] sm:$0xf]  ;;  %v5818_v60 = vld [vmem:[#allocation2 + $0x688] sm:$0xf0]  ;;  %v4552_v19 = vor.u32 %v5778_v55, %v4551_v54  ;;  %v5944_v9 = vld [vmem:[#allocation6 + $0x74] sm:$0xf0] }
 0x153   :  { %2797 = vmatpush.bf16.msrb.mxu0 %v4652_v26  ;;  %v5908_v26 = vld [vmem:[#allocation2 + $0x958] sm:$0xf0]  ;;  %v5211_v41 = vld [vmem:[#allocation6 + $0x70] sm:$0xf] }
 0x154   :  { %2811 = vmatpush.bf16.msrb.mxu1 %v4812_v27  ;;  %v4592_v27 = vor.u32 %v5788_v12, %v4591_v11  ;;  %v5072_v36 = vor.u32 %v5908_v26, %v5071_v23  ;;  %v5031_v11 = vld [vmem:[#allocation2 + $0x8f8] sm:$0xf]  ;;  %v5898_v12 = vld [vmem:[#allocation2 + $0x908] sm:$0xf0]  ;;  %v5773_v23 = vld [vmem:[#allocation2 + $0x520] sm:$0xf0]  ;;  %v4712_v26 = vor.u32 %v5818_v60, %v4711_v58 }
 0x155   :  { %2825 = vmatpush.bf16.msrb.mxu2 %v4972_v29  ;;  %v4752_v29 = vor.u32 %v5828_v18, %v4751_v13  ;;  %v6577_v13 = vld [vmem:[#allocation4] sm:$0x1f]  ;;  %v5339_v54 = vld [vmem:[#allocation6 + $0x170] sm:$0xf] }
 0x156   :  { %2839 = vmatpush.bf16.msrb.mxu3 %v5132_v35  ;;  %v4731_v35 = vld [vmem:[#allocation2 + $0x6a0] sm:$0xf]  ;;  %6650 = vst [vmem:[#allocation24_spill] sm:$0xff] %v6577_v13  ;;  %v580_v18 = vperm.slane %v6577_v13, 2 }
 0x157   :  { %2798 = vmatpush.bf16.msrb.mxu0 %v4632_v45  ;;  %v5903_v45 = vld [vmem:[#allocation2 + $0x930] sm:$0xf0]  ;;  %v4732_v50 = vor.u32 %v5823_v38, %v4731_v35  ;;  %v5853_v35 = vld [vmem:[#allocation2 + $0x7a0] sm:$0xf0]  ;;  %v5976_v55 = vld [vmem:[#allocation6 + $0x174] sm:$0xf0] }
 0x158   :  { %2812 = vmatpush.bf16.msrb.mxu1 %v4792_v46  ;;  %v6573_v46 = vpop.f32.mrf.mxu2  ;;  %v5052_v17 = vor.u32 %v5903_v45, %v5051_v42  ;;  %v5893_v38 = vld [vmem:[#allocation2 + $0x8e0] sm:$0xf0]  ;;  %v5275_v42 = vld [vmem:[#allocation6 + $0xf0] sm:$0xf]  ;;  %v2304_v45 = vadd.f32 %v6510_v40, %v578_v8  ;;  %v5340_v40 = vor.u32 %v5976_v55, %v5339_v54 }
 0x159   :  { %2826 = vmatpush.bf16.msrb.mxu2 %v4952_v48  ;;  %v4572_v48 = vor.u32 %v5783_v34, %v4571_v33  ;;  %v4851_v33 = vld [vmem:[#allocation2 + $0x790] sm:$0xf]  ;;  %v5032_v34 = vor.u32 %v5898_v12, %v5031_v11  ;;  %v5212_v12 = vor.u32 %v5944_v9, %v5211_v41  ;;  %v5251_v54 = vld [vmem:[#allocation6 + $0xc0] sm:$0xf] }
 0x15a   :  { %2840 = vmatpush.bf16.msrb.mxu3 %v5112_v52  ;;  %v2525_v52 = vpop.f32.mrf.mxu0 }
 0x15b   :  { %2799 = vmatpush.bf16.msrb.mxu0 %v4612_v10  ;;  %v4871_v10 = vld [vmem:[#allocation2 + $0x7b8] sm:$0xf] }
 0x15c   :  { %2813 = vmatpush.bf16.msrb.mxu1 %v4772_v4  ;;  %v5858_v4 = vld [vmem:[#allocation2 + $0x7c8] sm:$0xf0] }
 0x15d   :  { %2827 = vmatpush.bf16.msrb.mxu2 %v4932_v7  ;;  %v2539_v7 = vpop.f32.mrf.mxu1 }
 0x15e   :  { %2841 = vmatpush.bf16.msrb.mxu3 %v5092_v15  ;;  %v579_v15 = vperm.slane %v6577_v13, 1  ;;  %v2318_v13 = vadd.f32 %v6512_v53, %v2304_v45 }
 0x15f   :  { %2800 = vmatpush.bf16.msrb.mxu0 %v4592_v27  ;;  %v4872_v27 = vor.u32 %v5858_v4, %v4871_v10  ;;  %v4852_v10 = vor.u32 %v5853_v35, %v4851_v33  ;;  %v2567_v4 = vpop.f32.mrf.mxu3 }
 0x160   :  { %2814 = vmatpush.bf16.msrb.mxu1 %v4752_v29  ;;  %v4691_v29 = vld [vmem:[#allocation2 + $0x650] sm:$0xf]  ;;  %v2553_v58 = vpop.f32.mrf.mxu2  ;;  %v2414_v11 = vadd.f32 %v6541_v31, %v579_v15  ;;  %v2332_v41 = vadd.f32 %v6518_v6, %v2318_v13 }
 0x161   :  { %2828 = vmatpush.bf16.msrb.mxu2 %v4912_v32  ;;  %v5813_v32 = vld [vmem:[#allocation2 + $0x660] sm:$0xf0] }
 0x162   :  { %2842 = vmatpush.bf16.msrb.mxu3 %v5072_v36  ;;  %v5011_v36 = vld [vmem:[#allocation2 + $0x8d0] sm:$0xf]  ;;  %v4692_v60 = vor.u32 %v5813_v32, %v4691_v29  ;;  %v2428_v31 = vadd.f32 %v6543_v37, %v2414_v11  ;;  %v5956_v37 = vld [vmem:[#allocation6 + $0xd4] sm:$0xf0]  ;;  %v2346_v55 = vadd.f32 %v6520_v16, %v2332_v41  ;;  %v5243_v16 = vld [vmem:[#allocation6 + $0xb0] sm:$0xf] }
 0x163   :  { %2801 = vmatpush.bf16.msrb.mxu0 %v4572_v48  ;;  %v2416_v48 = vadd.f32 %v6549_v21, %v579_v15  ;;  %v5012_v63 = vor.u32 %v5893_v38, %v5011_v36  ;;  %v2527_v21 = vpop.f32.mrf.mxu0  ;;  %v5974_v29 = vld [vmem:[#allocation6 + $0x164] sm:$0xf0]  ;;  %v5195_v36 = vld [vmem:[#allocation6 + $0x50] sm:$0xf] }
 0x164   :  { %2815 = vmatpush.bf16.msrb.mxu1 %v4732_v50  ;;  %v4532_v50 = vor.u32 %v5773_v23, %v4531_v22  ;;  %v5942_v22 = vld [vmem:[#allocation6 + $0x64] sm:$0xf0]  ;;  %v5267_v23 = vld [vmem:[#allocation6 + $0xe0] sm:$0xf]  ;;  %v5259_v38 = vld [vmem:[#allocation6 + $0xd0] sm:$0xf] }
 0x165   :  { %2829 = vmatpush.bf16.msrb.mxu2 %v4892_v1  ;;  %v5960_v1 = vld [vmem:[#allocation6 + $0xf4] sm:$0xf0]  ;;  %v2541_v32 = vpop.f32.mrf.mxu1 }
 0x166   :  { %2843 = vmatpush.bf16.msrb.mxu3 %v5052_v17  ;;  %v2526_v17 = vadd.f32 %v2525_v52, %v580_v18  ;;  %v5276_v8 = vor.u32 %v5960_v1, %v5275_v42  ;;  %v2430_v52 = vadd.f32 %v6551_v24, %v2416_v48  ;;  %v5940_v24 = vld [vmem:[#allocation6 + $0x54] sm:$0xf0]  ;;  %v5938_v1 = vld [vmem:[#allocation6 + $0x44] sm:$0xf0] }
 0x167   :  { %2802 = vmatpush.bf16.msrb.mxu0 %v4552_v19  ;;  %v5203_v19 = vld [vmem:[#allocation6 + $0x60] sm:$0xf]  ;;  %v5972_v42 = vld [vmem:[#allocation6 + $0x154] sm:$0xf0]  ;;  %v5196_v48 = vor.u32 %v5940_v24, %v5195_v36  ;;  %v2569_v13 = vpop.f32.mrf.mxu3  ;;  %v5966_v24 = vld [vmem:[#allocation6 + $0x124] sm:$0xf0] }
 0x168   :  { %2816 = vmatpush.bf16.msrb.mxu1 %v4712_v26  ;;  %v5958_v26 = vld [vmem:[#allocation6 + $0xe4] sm:$0xf0]  ;;  %v2540_v33 = vadd.f32 %v2539_v7, %v2526_v17  ;;  %v5204_v15 = vor.u32 %v5942_v22, %v5203_v19  ;;  %v2444_v9 = vadd.f32 %v6553_v59, %v2430_v52  ;;  %v5323_v7 = vld [vmem:[#allocation6 + $0x150] sm:$0xf]  ;;  %v5260_v59 = vor.u32 %v5956_v37, %v5259_v38  ;;  %v5936_v19 = vld [vmem:[#allocation6 + $0x34] sm:$0xf0] }
 0x169   :  { %2830 = vmatpush.bf16.msrb.mxu2 %v4872_v27  ;;  %v5331_v27 = vld [vmem:[#allocation6 + $0x160] sm:$0xf]  ;;  %v5268_v35 = vor.u32 %v5958_v26, %v5267_v23  ;;  %v5970_v17 = vld [vmem:[#allocation6 + $0x144] sm:$0xf0]  ;;  %v5952_v23 = vld [vmem:[#allocation6 + $0xb4] sm:$0xf0] }
 0x16a   :  { %2844 = vmatpush.bf16.msrb.mxu3 %v5032_v34  ;;  %v2528_v34 = vadd.f32 %v2527_v21, %v580_v18  ;;  %v5332_v53 = vor.u32 %v5974_v29, %v5331_v27  ;;  %v2554_v45 = vadd.f32 %v2553_v58, %v2540_v33  ;;  %v2442_v18 = vadd.f32 %v6545_v2, %v2428_v31  ;;  %v5954_v58 = vld [vmem:[#allocation6 + $0xc4] sm:$0xf0]  ;;  %v5179_v21 = vld [vmem:[#allocation6 + $0x30] sm:$0xf]  ;;  %v5968_v52 = vld [vmem:[#allocation6 + $0x134] sm:$0xf0] }
 0x16b   :  { %2803 = vmatpush.bf16.msrb.mxu0 %v4532_v50  ;;  %v2555_v50 = vpop.f32.mrf.mxu2  ;;  %v5180_v27 = vor.u32 %v5936_v19, %v5179_v21  ;;  %v5171_v29 = vld [vmem:[#allocation6 + $0x20] sm:$0xf]  ;;  %v5244_v31 = vor.u32 %v5952_v23, %v5243_v16  ;;  %v5403_v38 = vld [vmem:[#allocation6 + $0x1f0] sm:$0xf]  ;;  %v5962_v21 = vld [vmem:[#allocation6 + $0x104] sm:$0xf0] }
 0x16c   :  { %2817 = vmatpush.bf16.msrb.mxu1 %v4692_v60  ;;  %v2542_v6 = vadd.f32 %v2541_v32, %v2528_v34  ;;  %v2568_v2 = vadd.f32 %v2567_v4, %v2554_v45  ;;  %v2581_v60 = vpop.f32.mrf.mxu0  ;;  %v5307_v4 = vld [vmem:[#allocation6 + $0x130] sm:$0xf]  ;;  %v5934_v32 = vld [vmem:[#allocation6 + $0x24] sm:$0xf0]  ;;  %v5235_v34 = vld [vmem:[#allocation6 + $0xa0] sm:$0xf] }
 0x16d   :  { %2831 = vmatpush.bf16.msrb.mxu2 %v4852_v10  ;;  %v2456_v10 = vadd.f32 %v6547_v5, %v2442_v18  ;;  %v5943_v16 = vld [vmem:[#allocation6 + $0x74] sm:$0xf]  ;;  %v5213_v23 = vld [vmem:[#allocation6 + $0x78] sm:$0xf0] }
 0x16e   :  { %2845 = vmatpush.bf16.msrb.mxu3 %v5012_v63  ;;  %2804 = vmatmul.bf16.vlgmr.msrb.gmra.mxu0 %v6479_v39  ;;  %v5324_v39 = vor.u32 %v5972_v42, %v5323_v7  ;;  %v2595_v63 = vpop.f32.mrf.mxu1  ;;  %v2582_v26 = vadd.f32 %v2581_v60, %v2568_v2  ;;  %v5155_v2 = vld [vmem:[#allocation6] sm:$0xf]  ;;  %v5930_v60 = vld [vmem:[#allocation6 + $0x4] sm:$0xf0] }
 0x16f   :  { %3353 = vmatpush.bf16.msra.mxu0 %v5212_v12  ;;  %2818 = vmatmul.bf16.vlgmr.msrb.gmra.mxu1 %v6483_v44  ;;  %v5187_v44 = vld [vmem:[#allocation6 + $0x40] sm:$0xf]  ;;  %v2556_v12 = vadd.f32 %v2555_v50, %v2542_v6  ;;  %v2470_v5 = vadd.f32 %v6557_v20, %v2456_v10  ;;  %v5992_v20 = vld [vmem:[#allocation6 + $0x1f4] sm:$0xf0]  ;;  %v5163_v50 = vld [vmem:[#allocation6 + $0x10] sm:$0xf] }
 0x170   :  { %3367 = vmatpush.bf16.msra.mxu1 %v5276_v8  ;;  %2832 = vmatmul.bf16.vlgmr.msrb.gmra.mxu2 %v6481_v43  ;;  %v2458_v43 = vadd.f32 %v6555_v0, %v2444_v9  ;;  %v5188_v11 = vor.u32 %v5938_v1, %v5187_v44  ;;  %v5252_v8 = vor.u32 %v5954_v58, %v5251_v54  ;;  %v5291_v44 = vld [vmem:[#allocation6 + $0x110] sm:$0xf]  ;;  %v5964_v54 = vld [vmem:[#allocation6 + $0x114] sm:$0xf0]  ;;  %v5219_v10 = vld [vmem:[#allocation6 + $0x80] sm:$0xf] }
 0x171   :  { %3381 = vmatpush.bf16.msra.mxu2 %v5340_v40  ;;  %2846 = vmatmul.bf16.vlgmr.msrb.gmra.mxu3 %v6485_v47  ;;  %v5315_v47 = vld [vmem:[#allocation6 + $0x140] sm:$0xf]  ;;  %v2360_v0 = vadd.f32 %v6529_v57, %v2346_v55  ;;  %v2570_v33 = vadd.f32 %v2569_v13, %v2556_v12  ;;  %v2596_v41 = vadd.f32 %v2595_v63, %v2582_v26  ;;  %v5948_v13 = vld [vmem:[#allocation6 + $0x94] sm:$0xf0]  ;;  %v5990_v55 = vld [vmem:[#allocation6 + $0x1e4] sm:$0xf0] }
 0x172   :  { %v5316_v40 = vor.u32 %v5970_v17, %v5315_v47  ;;  %v2472_v22 = vadd.f32 %v6569_v62, %v2458_v43  ;;  %v5299_v57 = vld [vmem:[#allocation6 + $0x120] sm:$0xf]  ;;  %v5404_v7 = vor.u32 %v5992_v20, %v5403_v38  ;;  %v2484_v45 = vadd.f32 %v6559_v25, %v2470_v5  ;;  %v5957_v20 = vld [vmem:[#allocation6 + $0xe4] sm:$0xf] }
 0x173   :  { %3354 = vmatpush.bf16.msra.mxu0 %v5204_v15  ;;  %v5308_v15 = vor.u32 %v5968_v52, %v5307_v4  ;;  %v2374_v62 = vadd.f32 %v6531_v3, %v2360_v0  ;;  %v2609_v36 = vpop.f32.mrf.mxu2  ;;  %v5932_v3 = vld [vmem:[#allocation6 + $0x14] sm:$0xf0]  ;;  %v5292_v12 = vor.u32 %v5964_v54, %v5291_v44  ;;  %v5959_v4 = vld [vmem:[#allocation6 + $0xf4] sm:$0xf]  ;;  %v5277_v52 = vld [vmem:[#allocation6 + $0xf8] sm:$0xf0] }
 0x174   :  { %3368 = vmatpush.bf16.msra.mxu1 %v5268_v35  ;;  %v5950_v35 = vld [vmem:[#allocation6 + $0xa4] sm:$0xf0]  ;;  %v2583_v9 = vpop.f32.mrf.mxu0  ;;  %v2623_v37 = vpop.f32.mrf.mxu3  ;;  %3395 = vmatpush.bf16.msra.mxu3 %v5404_v7  ;;  %v2610_v25 = vadd.f32 %v2609_v36, %v2596_v41  ;;  %v2498_v58 = vadd.f32 %v6565_v51, %v2484_v45  ;;  %v5164_v17 = vor.u32 %v5932_v3, %v5163_v50  ;;  %v5988_v51 = vld [vmem:[#allocation6 + $0x1d4] sm:$0xf0]  ;;  %v2852_v5 = vmax.f32 %v6523_v61, 0.0 }
 0x175   :  { %3382 = vmatpush.bf16.msra.mxu2 %v5332_v53  ;;  %v2486_v53 = vadd.f32 %v6571_v14, %v2472_v22  ;;  %v2388_v42 = vadd.f32 %v6537_v28, %v2374_v62  ;;  %v2584_v14 = vadd.f32 %v2583_v9, %v2570_v33  ;;  %v5236_v6 = vor.u32 %v5950_v35, %v5235_v34  ;;  %v5395_v28 = vld [vmem:[#allocation6 + $0x1e0] sm:$0xf]  ;;  %v5941_v35 = vld [vmem:[#allocation6 + $0x64] sm:$0xf]  ;;  %v5269_v41 = vld [vmem:[#allocation6 + $0xe8] sm:$0xf0] }
 0x176   :  { %v2597_v1 = vpop.f32.mrf.mxu1  ;;  %v5396_v43 = vor.u32 %v5990_v55, %v5395_v28  ;;  %v2624_v0 = vadd.f32 %v2623_v37, %v2610_v25  ;;  %v5280_v62 = vor.u32 %v5959_v4, %v5277_v52  ;;  %v5379_v36 = vld [vmem:[#allocation6 + $0x1c0] sm:$0xf]  ;;  %v5984_v45 = vld [vmem:[#allocation6 + $0x1b4] sm:$0xf0]  ;;  %v5272_v50 = vor.u32 %v5957_v20, %v5269_v41  ;;  %v5939_v3 = vld [vmem:[#allocation6 + $0x54] sm:$0xf] }
 0x177   :  { %3355 = vmatpush.bf16.msra.mxu0 %v5196_v48  ;;  %v2500_v18 = vadd.f32 %v6573_v46, %v2486_v53  ;;  %v5172_v48 = vor.u32 %v5934_v32, %v5171_v29  ;;  %v2402_v46 = vadd.f32 %v6539_v30, %v2388_v42  ;;  %v5387_v30 = vld [vmem:[#allocation6 + $0x1d0] sm:$0xf]  ;;  %v2512_v29 = vadd.f32 %v6567_v56, %v2498_v58  ;;  %v5205_v53 = vld [vmem:[#allocation6 + $0x68] sm:$0xf0]  ;;  %v5982_v44 = vld [vmem:[#allocation6 + $0x1a4] sm:$0xf0] }
 0x178   :  { %3369 = vmatpush.bf16.msra.mxu1 %v5260_v59  ;;  %v5300_v59 = vor.u32 %v5966_v24, %v5299_v57  ;;  %3396 = vmatpush.bf16.msra.mxu3 %v5396_v43  ;;  %v5388_v26 = vor.u32 %v5988_v51, %v5387_v30  ;;  %v5156_v32 = vor.u32 %v5930_v60, %v5155_v2  ;;  %v5986_v24 = vld [vmem:[#allocation6 + $0x1c4] sm:$0xf0]  ;;  %v2854_v38 = vmax.f32 %v2624_v0, 0.0  ;;  %v5371_v42 = vld [vmem:[#allocation6 + $0x1b0] sm:$0xf] }
 0x179   :  { %3383 = vmatpush.bf16.msra.mxu2 %v5324_v39  ;;  %v5227_v39 = vld [vmem:[#allocation6 + $0x90] sm:$0xf]  ;;  %v2514_v47 = vadd.f32 %v6575_v49, %v2500_v18  ;;  %v5216_v57 = vor.u32 %v5943_v16, %v5213_v23  ;;  %v5380_v56 = vor.u32 %v5986_v24, %v5379_v36  ;;  %v2853_v9 = vmax.f32 %v2512_v29, 0.0  ;;  %v5937_v28 = vld [vmem:[#allocation6 + $0x44] sm:$0xf] }
 0x17a   :  { %v5228_v63 = vor.u32 %v5948_v13, %v5227_v39  ;;  %v5372_v39 = vor.u32 %v5984_v45, %v5371_v42  ;;  %v5363_v13 = vld [vmem:[#allocation6 + $0x1a0] sm:$0xf]  ;;  %v5189_v55 = vld [vmem:[#allocation6 + $0x48] sm:$0xf0]  ;;  %v5953_v25 = vld [vmem:[#allocation6 + $0xc4] sm:$0xf] }
 0x17b   :  { %3356 = vmatpush.bf16.msra.mxu0 %v5188_v11  ;;  %v2598_v11 = vadd.f32 %v2597_v1, %v2584_v14  ;;  %v2611_v19 = vpop.f32.mrf.mxu2  ;;  %v2858_v33 = vmax.f32 %v2514_v47, 0.0  ;;  %v5197_v14 = vld [vmem:[#allocation6 + $0x58] sm:$0xf0]  ;;  %v5253_v43 = vld [vmem:[#allocation6 + $0xc8] sm:$0xf0]  ;;  %v5192_v58 = vor.u32 %v5937_v28, %v5189_v55 }
 0x17c   :  { %3370 = vmatpush.bf16.msra.mxu1 %v5252_v8  ;;  %v5946_v8 = vld [vmem:[#allocation6 + $0x84] sm:$0xf0]  ;;  %v2625_v22 = vpop.f32.mrf.mxu3  ;;  %3397 = vmatpush.bf16.msra.mxu3 %v5388_v26  ;;  %v5200_v1 = vor.u32 %v5939_v3, %v5197_v14  ;;  %v5256_v47 = vor.u32 %v5953_v25, %v5253_v43  ;;  %v5355_v2 = vld [vmem:[#allocation6 + $0x190] sm:$0xf]  ;;  %v5980_v60 = vld [vmem:[#allocation6 + $0x194] sm:$0xf0] }
 0x17d   :  { %3384 = vmatpush.bf16.msra.mxu2 %v5316_v40  ;;  %v5283_v40 = vld [vmem:[#allocation6 + $0x100] sm:$0xf]  ;;  %v2612_v49 = vadd.f32 %v2611_v19, %v2598_v11  ;;  %v6616_v18 = vpack.c.bf16 %v2858_v33, %v2853_v9  ;;  %v5951_v11 = vld [vmem:[#allocation6 + $0xb4] sm:$0xf]  ;;  %v5949_v16 = vld [vmem:[#allocation6 + $0xa4] sm:$0xf] }
 0x17e   :  { %v5284_v34 = vor.u32 %v5962_v21, %v5283_v40  ;;  %v5173_v40 = vld [vmem:[#allocation6 + $0x28] sm:$0xf0]  ;;  %v5347_v30 = vld [vmem:[#allocation6 + $0x180] sm:$0xf]  ;;  %v5978_v51 = vld [vmem:[#allocation6 + $0x184] sm:$0xf0] }
 0x17f   :  { %3357 = vmatpush.bf16.msra.mxu0 %v5180_v27  ;;  %v2857_v27 = vmax.f32 %v2402_v46, 0.0  ;;  %v5364_v46 = vor.u32 %v5982_v44, %v5363_v13  ;;  %v5237_v0 = vld [vmem:[#allocation6 + $0xa8] sm:$0xf0]  ;;  %v5341_v23 = vld [vmem:[#allocation6 + $0x178] sm:$0xf0] }
 0x180   :  { %3371 = vmatpush.bf16.msra.mxu1 %v5244_v31  ;;  %v2626_v31 = vadd.f32 %v2625_v22, %v2612_v49  ;;  %3398 = vmatpush.bf16.msra.mxu3 %v5380_v56  ;;  %v5348_v49 = vor.u32 %v5978_v51, %v5347_v30  ;;  %v5975_v22 = vld [vmem:[#allocation6 + $0x174] sm:$0xf]  ;;  %v5240_v26 = vor.u32 %v5949_v16, %v5237_v0  ;;  %v5229_v33 = vld [vmem:[#allocation6 + $0x98] sm:$0xf0]  ;;  %v5929_v24 = vld [vmem:[#allocation6 + $0x4] sm:$0xf] }
 0x181   :  { %3385 = vmatpush.bf16.msra.mxu2 %v5308_v15  ;;  %v5220_v15 = vor.u32 %v5946_v8, %v5219_v10  ;;  %v6612_v37 = vpack.c.bf16 %v2857_v27, %v2852_v5  ;;  %v5181_v10 = vld [vmem:[#allocation6 + $0x38] sm:$0xf0]  ;;  %v5933_v8 = vld [vmem:[#allocation6 + $0x24] sm:$0xf]  ;;  %v5344_v4 = vor.u32 %v5975_v22, %v5341_v23  ;;  %v5931_v5 = vld [vmem:[#allocation6 + $0x14] sm:$0xf] }
 0x182   :  { %v2859_v61 = vmax.f32 %v2626_v31, 0.0  ;;  %v5176_v52 = vor.u32 %v5933_v8, %v5173_v40  ;;  %v5165_v27 = vld [vmem:[#allocation6 + $0x18] sm:$0xf0]  ;;  %v5947_v29 = vld [vmem:[#allocation6 + $0x94] sm:$0xf] }
 0x183   :  { %3358 = vmatpush.bf16.msra.mxu0 %v5172_v48  ;;  %v5208_v48 = vor.u32 %v5941_v35, %v5205_v53  ;;  %v5973_v31 = vld [vmem:[#allocation6 + $0x164] sm:$0xf]  ;;  %v5168_v53 = vor.u32 %v5931_v5, %v5165_v27  ;;  %v5232_v36 = vor.u32 %v5947_v29, %v5229_v33  ;;  %v5221_v20 = vld [vmem:[#allocation6 + $0x88] sm:$0xf0]  ;;  %v5971_v41 = vld [vmem:[#allocation6 + $0x154] sm:$0xf] }
 0x184   :  { %3372 = vmatpush.bf16.msra.mxu1 %v5236_v6  ;;  %v6614_v7 = vpack.c.bf16 %v2859_v61, %v2854_v38  ;;  %v5955_v6 = vld [vmem:[#allocation6 + $0xd4] sm:$0xf]  ;;  %3399 = vmatpush.bf16.msra.mxu3 %v5372_v39  ;;  %v5157_v38 = vld [vmem:[#allocation6 + $0x8] sm:$0xf0]  ;;  %v5945_v61 = vld [vmem:[#allocation6 + $0x84] sm:$0xf] }
 0x185   :  { %3386 = vmatpush.bf16.msra.mxu2 %v5300_v59  ;;  %v5261_v59 = vld [vmem:[#allocation6 + $0xd8] sm:$0xf0]  ;;  %v5160_v42 = vor.u32 %v5929_v24, %v5157_v38  ;;  %v5224_v45 = vor.u32 %v5945_v61, %v5221_v20  ;;  %v5969_v14 = vld [vmem:[#allocation6 + $0x144] sm:$0xf]  ;;  %v5301_v43 = vld [vmem:[#allocation6 + $0x128] sm:$0xf0] }
 0x186   :  { %v5264_v54 = vor.u32 %v5955_v6, %v5261_v59  ;;  %v5325_v56 = vld [vmem:[#allocation6 + $0x158] sm:$0xf0]  ;;  %v5317_v6 = vld [vmem:[#allocation6 + $0x148] sm:$0xf0]  ;;  %v5965_v25 = vld [vmem:[#allocation6 + $0x124] sm:$0xf] }
 0x187   :  { %3359 = vmatpush.bf16.msra.mxu0 %v5164_v17  ;;  %v5935_v17 = vld [vmem:[#allocation6 + $0x34] sm:$0xf]  ;;  %v5328_v9 = vor.u32 %v5971_v41, %v5325_v56  ;;  %v5320_v59 = vor.u32 %v5969_v14, %v5317_v6  ;;  %v5451_v5 = vld [vmem:[#allocation6 + $0x250] sm:$0xf]  ;;  %v6004_v29 = vld [vmem:[#allocation6 + $0x254] sm:$0xf0] }
 0x188   :  { %3373 = vmatpush.bf16.msra.mxu1 %v5228_v63  ;;  %v5245_v63 = vld [vmem:[#allocation6 + $0xb8] sm:$0xf0]  ;;  %3400 = vmatpush.bf16.msra.mxu3 %v5364_v46  ;;  %v5184_v21 = vor.u32 %v5935_v17, %v5181_v10  ;;  %v6007_v24 = vld [vmem:[#allocation6 + $0x274] sm:$0xf]  ;;  %v5435_v61 = vld [vmem:[#allocation6 + $0x230] sm:$0xf] }
 0x189   :  { %3387 = vmatpush.bf16.msra.mxu2 %v5292_v12  ;;  %v5356_v12 = vor.u32 %v5980_v60, %v5355_v2  ;;  %v5248_v19 = vor.u32 %v5951_v11, %v5245_v63  ;;  %v5963_v60 = vld [vmem:[#allocation6 + $0x114] sm:$0xf]  ;;  %v5293_v10 = vld [vmem:[#allocation6 + $0x118] sm:$0xf0] }
 0x18a   :  { %v5296_v40 = vor.u32 %v5963_v60, %v5293_v10  ;;  %v5469_v38 = vld [vmem:[#allocation6 + $0x278] sm:$0xf0]  ;;  %v5994_v60 = vld [vmem:[#allocation6 + $0x204] sm:$0xf0] }
 0x18b   :  { %3360 = vmatpush.bf16.msra.mxu0 %v5156_v32  ;;  %v2637_v32 = vpop.f32.mrf.mxu0 }
 0x18c   :  { %3374 = vmatpush.bf16.msra.mxu1 %v5220_v15  ;;  %3401 = vmatpush.bf16.msra.mxu3 %v5356_v12  ;;  %v5333_v15 = vld [vmem:[#allocation6 + $0x168] sm:$0xf0]  ;;  %v5467_v12 = vld [vmem:[#allocation6 + $0x270] sm:$0xf] }
 0x18d   :  { %3388 = vmatpush.bf16.msra.mxu2 %v5284_v34  ;;  %v2651_v34 = vpop.f32.mrf.mxu1  ;;  %v5336_v35 = vor.u32 %v5973_v31, %v5333_v15  ;;  %v5452_v31 = vor.u32 %v6004_v29, %v5451_v5  ;;  %v5381_v29 = vld [vmem:[#allocation6 + $0x1c8] sm:$0xf0] }
 0x18e   :  { %3361 = vmatmul.bf16.vlgmr.msra.gmra.mxu0 %v6612_v37 }
 0x18f   :  { %3375 = vmatmul.bf16.vlgmr.msra.gmra.mxu1 %v6616_v18 }
 0x190   :  { %3423 = vmatpush.bf16.msrb.mxu1 %v5216_v57  ;;  %3389 = vmatmul.bf16.vlgmr.msra.gmra.mxu2 %v6614_v7  ;;  %v6651_v57 = vld [vmem:[#allocation24_spill] sm:$0xff] }
 0x191   :  { %3437 = vmatpush.bf16.msrb.mxu2 %v5280_v62  ;;  %3402 = vmatpush.bf16.msra.mxu3 %v5348_v49  ;;  %v581_v62 = vperm.slane %v6651_v57, 3 }
 0x193   :  { %v2639_v39 = vpop.f32.mrf.mxu0 }
 0x194   :  { %3424 = vmatpush.bf16.msrb.mxu1 %v5208_v48  ;;  %v2665_v48 = vpop.f32.mrf.mxu2  ;;  %v2679_v3 = vpop.f32.mrf.mxu3  ;;  %v2640_v55 = vadd.f32 %v2639_v39, %v581_v62  ;;  %v5427_v39 = vld [vmem:[#allocation6 + $0x220] sm:$0xf] }
 0x195   :  { %3438 = vmatpush.bf16.msrb.mxu2 %v5272_v50  ;;  %3451 = vmatpush.bf16.msrb.mxu3 %v5344_v4  ;;  %v2638_v50 = vadd.f32 %v2637_v32, %v581_v62  ;;  %v2653_v13 = vpop.f32.mrf.mxu1 }
 0x196   :  { %v2654_v17 = vadd.f32 %v2653_v13, %v2640_v55  ;;  %v5998_v13 = vld [vmem:[#allocation6 + $0x224] sm:$0xf0] }
 0x197   :  { %v2652_v44 = vadd.f32 %v2651_v34, %v2638_v50  ;;  %v5443_v34 = vld [vmem:[#allocation6 + $0x240] sm:$0xf] }
 0x198   :  { %3425 = vmatpush.bf16.msrb.mxu1 %v5200_v1  ;;  %v5967_v1 = vld [vmem:[#allocation6 + $0x134] sm:$0xf] }
 0x199   :  { %3439 = vmatpush.bf16.msrb.mxu2 %v5264_v54  ;;  %3452 = vmatpush.bf16.msrb.mxu3 %v5336_v35  ;;  %v5309_v54 = vld [vmem:[#allocation6 + $0x138] sm:$0xf0]  ;;  %v2666_v46 = vadd.f32 %v2665_v48, %v2652_v44  ;;  %v6002_v35 = vld [vmem:[#allocation6 + $0x244] sm:$0xf0]  ;;  %v5461_v48 = vld [vmem:[#allocation6 + $0x268] sm:$0xf0] }
 0x19a   :  { %v5312_v28 = vor.u32 %v5967_v1, %v5309_v54  ;;  %v5428_v1 = vor.u32 %v5998_v13, %v5427_v39  ;;  %v6003_v54 = vld [vmem:[#allocation6 + $0x254] sm:$0xf]  ;;  %v5977_v39 = vld [vmem:[#allocation6 + $0x184] sm:$0xf]  ;;  %v5349_v13 = vld [vmem:[#allocation6 + $0x188] sm:$0xf0] }
 0x19b   :  { %v2680_v11 = vadd.f32 %v2679_v3, %v2666_v46 }
 0x19c   :  { %3426 = vmatpush.bf16.msrb.mxu1 %v5192_v58  ;;  %v2667_v58 = vpop.f32.mrf.mxu2  ;;  %v2681_v2 = vpop.f32.mrf.mxu3 }
 0x19d   :  { %3440 = vmatpush.bf16.msrb.mxu2 %v5256_v47  ;;  %3453 = vmatpush.bf16.msrb.mxu3 %v5328_v9  ;;  %v5304_v47 = vor.u32 %v5965_v25, %v5301_v43  ;;  %v5472_v9 = vor.u32 %v6007_v24, %v5469_v38  ;;  %v5419_v25 = vld [vmem:[#allocation6 + $0x210] sm:$0xf]  ;;  %v5996_v43 = vld [vmem:[#allocation6 + $0x214] sm:$0xf0] }
 0x19e   :  { %v5420_v46 = vor.u32 %v5996_v43, %v5419_v25 }
 0x1a0   :  { %3427 = vmatpush.bf16.msrb.mxu1 %v5184_v21  ;;  %v2668_v21 = vadd.f32 %v2667_v58, %v2654_v17  ;;  %v6001_v58 = vld [vmem:[#allocation6 + $0x244] sm:$0xf] }
 0x1a1   :  { %3441 = vmatpush.bf16.msrb.mxu2 %v5248_v19  ;;  %3454 = vmatpush.bf16.msrb.mxu3 %v5320_v59  ;;  %v5285_v19 = vld [vmem:[#allocation6 + $0x108] sm:$0xf0] }
 0x1a2   :  { %v2682_v0 = vadd.f32 %v2681_v2, %v2668_v21  ;;  %v5411_v2 = vld [vmem:[#allocation6 + $0x200] sm:$0xf]  ;;  %v5989_v21 = vld [vmem:[#allocation6 + $0x1e4] sm:$0xf] }
 0x1a3   :  { %v5412_v10 = vor.u32 %v5994_v60, %v5411_v2 }
 0x1a4   :  { %3428 = vmatpush.bf16.msrb.mxu1 %v5176_v52  ;;  %v5459_v52 = vld [vmem:[#allocation6 + $0x260] sm:$0xf] }
 0x1a5   :  { %3442 = vmatpush.bf16.msrb.mxu2 %v5240_v26  ;;  %3455 = vmatpush.bf16.msrb.mxu3 %v5312_v28  ;;  %v6006_v26 = vld [vmem:[#allocation6 + $0x264] sm:$0xf0]  ;;  %v5453_v28 = vld [vmem:[#allocation6 + $0x258] sm:$0xf0] }
 0x1a6   :  { %v5460_v27 = vor.u32 %v6006_v26, %v5459_v52  ;;  %v5456_v55 = vor.u32 %v6003_v54, %v5453_v28  ;;  %v5421_v52 = vld [vmem:[#allocation6 + $0x218] sm:$0xf0] }
 0x1a8   :  { %3429 = vmatpush.bf16.msrb.mxu1 %v5168_v53 }
 0x1a9   :  { %3443 = vmatpush.bf16.msrb.mxu2 %v5232_v36  ;;  %3456 = vmatpush.bf16.msrb.mxu3 %v5304_v47  ;;  %v5444_v36 = vor.u32 %v6002_v35, %v5443_v34  ;;  %v5445_v47 = vld [vmem:[#allocation6 + $0x248] sm:$0xf0] }
 0x1aa   :  { %v5448_v17 = vor.u32 %v6001_v58, %v5445_v47 }
 0x1ab   :  { %v2693_v63 = vpop.f32.mrf.mxu0 }
 0x1ac   :  { %3430 = vmatpush.bf16.msrb.mxu1 %v5160_v42  ;;  %v2707_v8 = vpop.f32.mrf.mxu1  ;;  %v2694_v30 = vadd.f32 %v2693_v63, %v2680_v11  ;;  %v6000_v42 = vld [vmem:[#allocation6 + $0x234] sm:$0xf0]  ;;  %v5991_v11 = vld [vmem:[#allocation6 + $0x1f4] sm:$0xf]  ;;  %v5405_v63 = vld [vmem:[#allocation6 + $0x1f8] sm:$0xf0] }
 0x1ad   :  { %3444 = vmatpush.bf16.msrb.mxu2 %v5224_v45  ;;  %3457 = vmatpush.bf16.msrb.mxu3 %v5296_v40  ;;  %v6005_v45 = vld [vmem:[#allocation6 + $0x264] sm:$0xf]  ;;  %v5436_v14 = vor.u32 %v6000_v42, %v5435_v61  ;;  %v5437_v40 = vld [vmem:[#allocation6 + $0x238] sm:$0xf0] }
 0x1ae   :  { %v2708_v22 = vadd.f32 %v2707_v8, %v2694_v30  ;;  %v5464_v3 = vor.u32 %v6005_v45, %v5461_v48  ;;  %v5408_v8 = vor.u32 %v5991_v11, %v5405_v63  ;;  %v5429_v30 = vld [vmem:[#allocation6 + $0x228] sm:$0xf0]  ;;  %v5981_v61 = vld [vmem:[#allocation6 + $0x1a4] sm:$0xf]  ;;  %v5979_v45 = vld [vmem:[#allocation6 + $0x194] sm:$0xf] }
 0x1af   :  { %3431 = vmatmul.bf16.vlgmr.msrb.gmra.mxu1 %v6612_v37  ;;  %v6008_v37 = vld [vmem:[#allocation6 + $0x274] sm:$0xf0] }
 0x1b0   :  { %3445 = vmatmul.bf16.vlgmr.msrb.gmra.mxu2 %v6616_v18  ;;  %v5961_v18 = vld [vmem:[#allocation6 + $0x104] sm:$0xf]  ;;  %v5468_v16 = vor.u32 %v6008_v37, %v5467_v12  ;;  %3479 = vmatpush.bf16.msra.mxu1 %v5472_v9  ;;  %v5999_v12 = vld [vmem:[#allocation6 + $0x234] sm:$0xf] }
 0x1b1   :  { %v5288_v51 = vor.u32 %v5961_v18, %v5285_v19  ;;  %v5440_v37 = vor.u32 %v5999_v12, %v5437_v40  ;;  %v5397_v18 = vld [vmem:[#allocation6 + $0x1e8] sm:$0xf0]  ;;  %v5997_v19 = vld [vmem:[#allocation6 + $0x224] sm:$0xf] }
 0x1b2   :  { %3409 = vmatpush.bf16.msrb.mxu0 %v5468_v16  ;;  %v5400_v16 = vor.u32 %v5989_v21, %v5397_v18 }
 0x1b3   :  { %v2721_v49 = vpop.f32.mrf.mxu2  ;;  %v2695_v23 = vpop.f32.mrf.mxu0  ;;  %3458 = vmatpush.bf16.msrb.mxu3 %v5288_v51  ;;  %v5432_v51 = vor.u32 %v5997_v19, %v5429_v30  ;;  %v6015_v30 = vld [vmem:[#allocation9 + $0x30] sm:$0xff] }
 0x1b4   :  { %v2735_v4 = vpop.f32.mrf.mxu3  ;;  %v2696_v32 = vadd.f32 %v2695_v23, %v2682_v0  ;;  %v2709_v33 = vpop.f32.mrf.mxu1  ;;  %v2722_v15 = vadd.f32 %v2721_v49, %v2708_v22  ;;  %3480 = vmatpush.bf16.msra.mxu1 %v5464_v3  ;;  %v5987_v49 = vld [vmem:[#allocation6 + $0x1d4] sm:$0xf]  ;;  %v5389_v22 = vld [vmem:[#allocation6 + $0x1d8] sm:$0xf0] }
 0x1b5   :  { %v5995_v23 = vld [vmem:[#allocation6 + $0x214] sm:$0xf] }
 0x1b6   :  { %3410 = vmatpush.bf16.msrb.mxu0 %v5460_v27  ;;  %v2710_v62 = vadd.f32 %v2709_v33, %v2696_v32  ;;  %v2736_v20 = vadd.f32 %v2735_v4, %v2722_v15  ;;  %v5392_v4 = vor.u32 %v5987_v49, %v5389_v22  ;;  %v5424_v26 = vor.u32 %v5995_v23, %v5421_v52  ;;  %v5985_v27 = vld [vmem:[#allocation6 + $0x1c4] sm:$0xf]  ;;  %v6012_v49 = vld [vmem:[#allocation9 + $0x18] sm:$0xff]  ;;  %v6011_v23 = vld [vmem:[#allocation9 + $0x10] sm:$0xff] }
 0x1b7   :  { %v5993_v32 = vld [vmem:[#allocation6 + $0x204] sm:$0xf]  ;;  %v5384_v33 = vor.u32 %v5985_v27, %v5381_v29  ;;  %v6024_v22 = vld [vmem:[#allocation9 + $0x78] sm:$0xff]  ;;  %v6010_v52 = vld [vmem:[#allocation9 + $0x8] sm:$0xff] }
 0x1b8   :  { %v2855_v6 = vmax.f32 %v2736_v20, 0.0  ;;  %3481 = vmatpush.bf16.msra.mxu1 %v5456_v55  ;;  %v5365_v20 = vld [vmem:[#allocation6 + $0x1a8] sm:$0xf0]  ;;  %v6021_v27 = vld [vmem:[#allocation9 + $0x60] sm:$0xff] }
 0x1ba   :  { %3411 = vmatpush.bf16.msrb.mxu0 %v5452_v31  ;;  %v5413_v31 = vld [vmem:[#allocation6 + $0x208] sm:$0xf0] }
 0x1bb   :  { %v2723_v53 = vpop.f32.mrf.mxu2  ;;  %v5416_v15 = vor.u32 %v5993_v32, %v5413_v31  ;;  %v6020_v32 = vld [vmem:[#allocation9 + $0x58] sm:$0xff] }
 0x1bc   :  { %v2724_v41 = vadd.f32 %v2723_v53, %v2710_v62  ;;  %v2737_v56 = vpop.f32.mrf.mxu3  ;;  %3482 = vmatpush.bf16.msra.mxu1 %v5448_v17  ;;  %v5983_v62 = vld [vmem:[#allocation6 + $0x1b4] sm:$0xf]  ;;  %v5373_v53 = vld [vmem:[#allocation6 + $0x1b8] sm:$0xf0] }
 0x1be   :  { %v2738_v50 = vadd.f32 %v2737_v56, %v2724_v41  ;;  %3412 = vmatpush.bf16.msrb.mxu0 %v5444_v36  ;;  %v5376_v36 = vor.u32 %v5983_v62, %v5373_v53  ;;  %v5368_v41 = vor.u32 %v5981_v61, %v5365_v20  ;;  %v6018_v62 = vld [vmem:[#allocation9 + $0x48] sm:$0xff] }
 0x1c0   :  { %v2860_v59 = vmax.f32 %v2738_v50, 0.0  ;;  %3483 = vmatpush.bf16.msra.mxu1 %v5440_v37 }
 0x1c2   :  { %v6624_v44 = vpack.c.bf16 %v2860_v59, %v2855_v6  ;;  %3413 = vmatpush.bf16.msrb.mxu0 %v5436_v14 }
 0x1c4   :  { %3403 = vmatmul.bf16.vlgmr.msra.gmra.mxu3 %v6624_v44  ;;  %3484 = vmatpush.bf16.msra.mxu1 %v5432_v51  ;;  %v6014_v51 = vld [vmem:[#allocation9 + $0x28] sm:$0xff] }
 0x1c5   :  { %3645 = vmatpush.bf16.msra.mxu3 %v6024_v22  ;;  %v6028_v22 = vld [vmem:[#allocation12 + $0x18] sm:$0xff] }
 0x1c6   :  { %3414 = vmatpush.bf16.msrb.mxu0 %v5428_v1  ;;  %v5352_v1 = vor.u32 %v5977_v39, %v5349_v13 }
 0x1c8   :  { %3485 = vmatpush.bf16.msra.mxu1 %v5424_v26  ;;  %v6022_v26 = vld [vmem:[#allocation9 + $0x68] sm:$0xff] }
 0x1ca   :  { %3415 = vmatpush.bf16.msrb.mxu0 %v5420_v46 }
 0x1cb   :  { %v2749_v0 = vpop.f32.mrf.mxu0 }
 0x1cc   :  { %v2763_v5 = vpop.f32.mrf.mxu1  ;;  %3486 = vmatpush.bf16.msra.mxu1 %v5416_v15 }
 0x1ce   :  { %3416 = vmatpush.bf16.msrb.mxu0 %v5412_v10 }
 0x1d2   :  { %3465 = vmatpush.bf16.msra.mxu0 %v5408_v8 }
 0x1d3   :  { %v2777_v34 = vpop.f32.mrf.mxu2  ;;  %v2751_v38 = vpop.f32.mrf.mxu0 }
 0x1d4   :  { %3459 = vmatmul.bf16.vlgmr.msrb.gmra.mxu3 %v6614_v7  ;;  %v582_v7 = vperm.slane %v6651_v57, 4  ;;  %v2791_v35 = vpop.f32.mrf.mxu3  ;;  %v2765_v56 = vpop.f32.mrf.mxu1  ;;  %v5357_v57 = vld [vmem:[#allocation6 + $0x198] sm:$0xf0] }
 0x1d5   :  { %v5360_v3 = vor.u32 %v5979_v45, %v5357_v57 }
 0x1d6   :  { %3466 = vmatpush.bf16.msra.mxu0 %v5400_v16  ;;  %v2750_v24 = vadd.f32 %v2749_v0, %v582_v7  ;;  %v2752_v42 = vadd.f32 %v2751_v38, %v582_v7  ;;  %v6016_v16 = vld [vmem:[#allocation9 + $0x38] sm:$0xff]  ;;  %v6013_v0 = vld [vmem:[#allocation9 + $0x20] sm:$0xff] }
 0x1d7   :  { %3631 = vmatpush.bf16.msra.mxu2 %v6016_v16  ;;  %v2947_v7 = vld [vmem:[#allocation7] sm:$0x3] }
 0x1d8   :  { %v2764_v9 = vadd.f32 %v2763_v5, %v2750_v24  ;;  %v2766_v6 = vadd.f32 %v2765_v56, %v2752_v42  ;;  %v2949_v53 = vperm.slane %v2947_v7, 0 }
 0x1da   :  { %3467 = vmatpush.bf16.msra.mxu0 %v5392_v4  ;;  %v2778_v14 = vadd.f32 %v2777_v34, %v2764_v9  ;;  %v6023_v4 = vld [vmem:[#allocation9 + $0x70] sm:$0xff] }
 0x1db   :  { %v2779_v48 = vpop.f32.mrf.mxu2  ;;  %3632 = vmatpush.bf16.msra.mxu2 %v6015_v30  ;;  %3646 = vmatpush.bf16.msra.mxu3 %v6023_v4  ;;  %v6032_v30 = vld [vmem:[#allocation12 + $0x38] sm:$0xff]  ;;  %v6026_v4 = vld [vmem:[#allocation12 + $0x8] sm:$0xff] }
 0x1dc   :  { %v2793_v50 = vpop.f32.mrf.mxu3  ;;  %v2792_v28 = vadd.f32 %v2791_v35, %v2778_v14  ;;  %v2780_v55 = vadd.f32 %v2779_v48, %v2766_v6 }
 0x1de   :  { %3468 = vmatpush.bf16.msra.mxu0 %v5384_v33  ;;  %v2794_v58 = vadd.f32 %v2793_v50, %v2780_v55  ;;  %v6019_v33 = vld [vmem:[#allocation9 + $0x50] sm:$0xff] }
 0x1df   :  { %3633 = vmatpush.bf16.msra.mxu2 %v6014_v51  ;;  %3647 = vmatpush.bf16.msra.mxu3 %v6022_v26  ;;  %v6031_v51 = vld [vmem:[#allocation12 + $0x30] sm:$0xff]  ;;  %v6040_v26 = vld [vmem:[#allocation15 + $0x38] sm:$0xff] }
 0x1e0   :  { %3815 = vmatpush.bf16.msrb.mxu1 %v6040_v26 }
 0x1e2   :  { %3469 = vmatpush.bf16.msra.mxu0 %v5376_v36  ;;  %v6017_v36 = vld [vmem:[#allocation9 + $0x40] sm:$0xff] }
 0x1e3   :  { %3634 = vmatpush.bf16.msra.mxu2 %v6013_v0  ;;  %3648 = vmatpush.bf16.msra.mxu3 %v6021_v27  ;;  %v6030_v0 = vld [vmem:[#allocation12 + $0x28] sm:$0xff] }
 0x1e4   :  { %v6037_v27 = vld [vmem:[#allocation15 + $0x20] sm:$0xff] }
 0x1e6   :  { %3470 = vmatpush.bf16.msra.mxu0 %v5368_v41 }
 0x1e7   :  { %3635 = vmatpush.bf16.msra.mxu2 %v6012_v49  ;;  %3649 = vmatpush.bf16.msra.mxu3 %v6020_v32  ;;  %v6029_v49 = vld [vmem:[#allocation12 + $0x20] sm:$0xff] }
 0x1ea   :  { %3471 = vmatpush.bf16.msra.mxu0 %v5360_v3 }
 0x1eb   :  { %v2805_v59 = vpop.f32.mrf.mxu0  ;;  %3636 = vmatpush.bf16.msra.mxu2 %v6011_v23  ;;  %3650 = vmatpush.bf16.msra.mxu3 %v6019_v33  ;;  %v6027_v23 = vld [vmem:[#allocation12 + $0x10] sm:$0xff]  ;;  %v6057_v33 = vld [vmem:[#allocation10] ss:$0 sm:$0xff] }
 0x1ec   :  { %v2819_v54 = vpop.f32.mrf.mxu1  ;;  %v2806_v25 = vadd.f32 %v2805_v59, %v2792_v28 }
 0x1ee   :  { %3472 = vmatpush.bf16.msra.mxu0 %v5352_v1  ;;  %v2820_v17 = vadd.f32 %v2819_v54, %v2806_v25  ;;  %v2950_v1 = vperm.slane %v2947_v7, 1 }
 0x1ef   :  { %3637 = vmatpush.bf16.msra.mxu2 %v6010_v52  ;;  %3651 = vmatpush.bf16.msra.mxu3 %v6018_v62  ;;  %v6025_v52 = vld [vmem:[#allocation12] sm:$0xff] }
 0x1f3   :  { %v2833_v43 = vpop.f32.mrf.mxu2  ;;  %v2807_v47 = vpop.f32.mrf.mxu0  ;;  %3652 = vmatpush.bf16.msra.mxu3 %v6017_v36 }
 0x1f4   :  { %v2847_v46 = vpop.f32.mrf.mxu3  ;;  %v2808_v2 = vadd.f32 %v2807_v47, %v2794_v58  ;;  %v2834_v60 = vadd.f32 %v2833_v43, %v2820_v17  ;;  %v2821_v10 = vpop.f32.mrf.mxu1 }
 0x1f6   :  { %v2822_v11 = vadd.f32 %v2821_v10, %v2808_v2  ;;  %v2848_v12 = vadd.f32 %v2847_v46, %v2834_v60 }
 0x1f8   :  { %v2856_v21 = vmax.f32 %v2848_v12, 0.0 }
 0x1fb   :  { %v2835_v63 = vpop.f32.mrf.mxu2 }
 0x1fc   :  { %v2836_v8 = vadd.f32 %v2835_v63, %v2822_v11  ;;  %v2849_v40 = vpop.f32.mrf.mxu3 }
 0x1fe   :  { %v2850_v37 = vadd.f32 %v2849_v40, %v2836_v8 }
 0x200   :  { %v2861_v18 = vmax.f32 %v2850_v37, 0.0 }
 0x202   :  { %v2866_v19 = vpack.c.bf16 %v2861_v18, %v2856_v21 }
 0x204   :  { %3417 = vmatmul.bf16.vlgmr.msrb.gmra.mxu0 %v2866_v19  ;;  %3487 = vmatmul.bf16.vlgmr.msra.gmra.mxu1 %v2866_v19 }
 0x205   :  { %3730 = vmatpush.bf16.msrb.mxu0 %v6032_v30 }
 0x209   :  { %3731 = vmatpush.bf16.msrb.mxu0 %v6031_v51 }
 0x20b   :  { %v3362_v29 = vpop.f32.mrf.mxu0 }
 0x20c   :  { %v3376_v5 = vpop.f32.mrf.mxu1  ;;  %v3363_v24 = vadd.f32 %v3362_v29, %v2949_v53 }
 0x20d   :  { %3732 = vmatpush.bf16.msrb.mxu0 %v6030_v0 }
 0x20e   :  { %v3377_v9 = vadd.f32 %v3376_v5, %v3363_v24  ;;  %v6038_v5 = vld [vmem:[#allocation15 + $0x28] sm:$0xff] }
 0x211   :  { %3733 = vmatpush.bf16.msrb.mxu0 %v6029_v49 }
 0x213   :  { %v3390_v31 = vpop.f32.mrf.mxu2  ;;  %v3364_v35 = vpop.f32.mrf.mxu0 }
 0x214   :  { %3473 = vmatmul.bf16.vlgmr.msra.gmra.mxu0 %v6624_v44  ;;  %v6009_v44 = vld [vmem:[#allocation9] sm:$0xff]  ;;  %v3378_v15 = vpop.f32.mrf.mxu1  ;;  %v3365_v61 = vadd.f32 %v3364_v35, %v2949_v53  ;;  %v3391_v45 = vadd.f32 %v3390_v31, %v3377_v9 }
 0x215   :  { %3638 = vmatpush.bf16.msra.mxu2 %v6009_v44  ;;  %3734 = vmatpush.bf16.msrb.mxu0 %v6028_v22  ;;  %v6039_v44 = vld [vmem:[#allocation15 + $0x30] sm:$0xff]  ;;  %v6058_v9 = vld [vmem:[#allocation13] ss:$0 sm:$0xff] }
 0x216   :  { %v3379_v42 = vadd.f32 %v3378_v15, %v3365_v61  ;;  %3816 = vmatpush.bf16.msrb.mxu1 %v6039_v44  ;;  %v6035_v61 = vld [vmem:[#allocation15 + $0x10] sm:$0xff] }
 0x219   :  { %3735 = vmatpush.bf16.msrb.mxu0 %v6027_v23 }
 0x21a   :  { %3817 = vmatpush.bf16.msrb.mxu1 %v6038_v5 }
 0x21b   :  { %v3392_v20 = vpop.f32.mrf.mxu2 }
 0x21c   :  { %v3393_v57 = vadd.f32 %v3392_v20, %v3379_v42  ;;  %v6034_v20 = vld [vmem:[#allocation15 + $0x8] sm:$0xff] }
 0x21d   :  { %3736 = vmatpush.bf16.msrb.mxu0 %v6026_v4 }
 0x21e   :  { %3818 = vmatpush.bf16.msrb.mxu1 %v6037_v27 }
 0x221   :  { %3737 = vmatpush.bf16.msrb.mxu0 %v6025_v52 }
 0x22c   :  { %v3432_v38 = vpop.f32.mrf.mxu1 }
 0x22d   :  { %v3433_v25 = vadd.f32 %v3432_v38, %v2950_v1  ;;  %v6036_v38 = vld [vmem:[#allocation15 + $0x18] sm:$0xff] }
 0x22e   :  { %3819 = vmatpush.bf16.msrb.mxu1 %v6036_v38 }
 0x232   :  { %3820 = vmatpush.bf16.msrb.mxu1 %v6035_v61 }
 0x233   :  { %v3446_v50 = vpop.f32.mrf.mxu2 }
 0x234   :  { %v3434_v6 = vpop.f32.mrf.mxu1  ;;  %v3447_v58 = vadd.f32 %v3446_v50, %v3433_v25 }
 0x235   :  { %v3435_v17 = vadd.f32 %v3434_v6, %v2950_v1 }
 0x236   :  { %3821 = vmatpush.bf16.msrb.mxu1 %v6034_v20 }
 0x23b   :  { %v3448_v47 = vpop.f32.mrf.mxu2 }
 0x23c   :  { %v3449_v10 = vadd.f32 %v3448_v47, %v3435_v17 }
 0x247   :  { %v3404_v34 = vpop.f32.mrf.mxu3 }
 0x248   :  { %v3405_v48 = vadd.f32 %v3404_v34, %v3391_v45 }
 0x24f   :  { %v3406_v41 = vpop.f32.mrf.mxu3 }
 0x250   :  { %v3407_v3 = vadd.f32 %v3406_v41, %v3393_v57  ;;  %v6033_v41 = vld [vmem:[#allocation15] sm:$0xff] }
 0x251   :  { %3822 = vmatpush.bf16.msrb.mxu1 %v6033_v41 }
 0x257   :  { %v3460_v13 = vpop.f32.mrf.mxu3 }
 0x258   :  { %v3461_v2 = vadd.f32 %v3460_v13, %v3447_v58 }
 0x25f   :  { %v3462_v60 = vpop.f32.mrf.mxu3 }
 0x260   :  { %v3463_v63 = vadd.f32 %v3462_v60, %v3449_v10 }
 0x281   :  { %v3418_v56 = vpop.f32.mrf.mxu0  ;;  %v3488_v43 = vpop.f32.mrf.mxu1 }
 0x282   :  { %v3419_v14 = vadd.f32 %v3418_v56, %v3405_v48 }
 0x284   :  { %v3493_v54 = vmax.f32 %v3419_v14, 0.0  ;;  %v6059_v14 = vld [vmem:[#allocation16] ss:$0 sm:$0xff] }
 0x289   :  { %v3420_v59 = vpop.f32.mrf.mxu0  ;;  %v3490_v37 = vpop.f32.mrf.mxu1 }
 0x28a   :  { %v3421_v39 = vadd.f32 %v3420_v59, %v3407_v3 }
 0x28c   :  { %v3495_v28 = vmax.f32 %v3421_v39, 0.0 }
 0x28e   :  { %v3497_v55 = vpack.c.bf16 %v3495_v28, %v3493_v54 }
 0x290   :  { %3639 = vmatmul.bf16.vlgmr.msra.gmra.mxu2 %v3497_v55 }
 0x291   :  { %v3474_v46 = vpop.f32.mrf.mxu0 }
 0x292   :  { %v3475_v11 = vadd.f32 %v3474_v46, %v3461_v2 }
 0x294   :  { %v3489_v8 = vadd.f32 %v3488_v43, %v3475_v11 }
 0x296   :  { %v3494_v18 = vmax.f32 %v3489_v8, 0.0 }
 0x299   :  { %v3476_v12 = vpop.f32.mrf.mxu0 }
 0x29a   :  { %v3477_v40 = vadd.f32 %v3476_v12, %v3463_v63 }
 0x29c   :  { %v3491_v21 = vadd.f32 %v3490_v37, %v3477_v40 }
 0x29e   :  { %v3496_v19 = vmax.f32 %v3491_v21, 0.0 }
 0x2a0   :  { %v3498_v16 = vpack.c.bf16 %v3496_v19, %v3494_v18 }
 0x2a2   :  { %3653 = vmatmul.bf16.vlgmr.msra.gmra.mxu3 %v3498_v16 }
 0x313   :  { %v3640_v29 = vpop.f32.mrf.mxu2 }
 0x314   :  { %v3641_v7 = vadd.f32 %v6057_v33, %v3640_v29 }
 0x31b   :  { %v3642_v31 = vpop.f32.mrf.mxu2 }
 0x31c   :  { %v3643_v15 = vadd.f32 %v6057_v33, %v3642_v31 }
 0x325   :  { %v3654_v32 = vpop.f32.mrf.mxu3 }
 0x326   :  { %v3655_v34 = vadd.f32 %v3654_v32, %v3641_v7 }
 0x328   :  { %v3659_v53 = vmax.f32 %v3655_v34, 0.0 }
 0x32d   :  { %v3656_v35 = vpop.f32.mrf.mxu3 }
 0x32e   :  { %v3657_v62 = vadd.f32 %v3656_v35, %v3643_v15 }
 0x330   :  { %v3660_v36 = vmax.f32 %v3657_v62, 0.0 }
 0x332   :  { %v3661_v24 = vpack.c.bf16 %v3660_v36, %v3659_v53 }
 0x334   :  { %3738 = vmatmul.bf16.vlgmr.msrb.gmra.mxu0 %v3661_v24 }
 0x3b1   :  { %v3739_v56 = vpop.f32.mrf.mxu0 }
 0x3b2   :  { %v3740_v42 = vadd.f32 %v6058_v9, %v3739_v56 }
 0x3b4   :  { %v3744_v48 = vmax.f32 %v3740_v42, 0.0 }
 0x3b9   :  { %v3741_v45 = vpop.f32.mrf.mxu0 }
 0x3ba   :  { %v3742_v57 = vadd.f32 %v6058_v9, %v3741_v45 }
 0x3bc   :  { %v3745_v50 = vmax.f32 %v3742_v57, 0.0 }
 0x3be   :  { %v3746_v3 = vpack.c.bf16 %v3745_v50, %v3744_v48 }
 0x3c0   :  { %3823 = vmatmul.bf16.vlgmr.msrb.gmra.mxu1 %v3746_v3 }
 0x43d   :  { %v3824_v6 = vpop.f32.mrf.mxu1 }
 0x43e   :  { %v3825_v59 = vadd.f32 %v6059_v14, %v3824_v6 }
 0x440   :  { %3829 = vst [vmem:[%s6647_s11] sm:$0xff] %v3825_v59 }
 0x445   :  { %v3826_v39 = vpop.f32.mrf.mxu1 }
 0x446   :  { %v3827_v13 = vadd.f32 %v6059_v14, %v3826_v39 }
 0x448   :  { %3830 = vst [vmem:[%s6647_s11 + $0x8] sm:$0xff] %v3827_v13 }
 0x449   :  { %3835 = vsyncpa [#allocation3], 1 }
 0x44a   :  { %3836 = vsyncpa [#allocation5], 1 }
 0x44b   :  { %3837 = vsyncpa [#allocation8], 1 }
 0x44c   :  { %3838 = vsyncpa [#allocation11], 1 }
 0x44d   :  { %3839 = vsyncpa [#allocation14], 1 }
 0x44e   :  { %3840 = vsyncpa [#allocation17], 1 }

</bundles_post_ra>
